<compile_context>
chip_gen: v6e
topology: v6e:2x2x1
jax: 0.10.0
libtpu: 0.0.40
codegen_flags: <defaults>
</compile_context>

<pallas_src>
from functools import partial

import numpy as np
import jax
import jax.numpy as jnp
from jax import lax
from jax.experimental import pallas as pl
from jax.experimental.pallas import tpu as pltpu


# ----------------------------- Pallas kernel --------------------------------
def upsample_block_kernel(x_ref, ut_ref, m_ref, w1_ref, w2_ref, sb_ref, out_ref,
                          *, w2_out):
    # x_ref:   (1, Cpad, H*W)     per-batch input, channels on sublanes, H*W on lanes
    # ut_ref:  (H*W, S)           kron(Ah, Aw)^T bilinear 2x upsample matrix
    # m_ref:   (8, S)             boundary masks for the 8 non-center conv taps
    # w1_ref:  (9, Cout, Cpad)    conv1 taps, k = (dy+1)*3 + (dx+1)
    # w2_ref:  (9, Cout, Cout)    conv2 taps
    # sb_ref:  (Cout, 4)          [scale1, shift1, scale2, shift2] (folded BatchNorm)
    # out_ref: (1, Cout, S)       S = H2*W2 = 4*H*W
    S = out_ref.shape[2]

    xf = x_ref[0]                                                   # (Cpad, H*W)

    # ---- bilinear 2x upsample: one MXU matmul (K = H*W, N = S) --------------
    u = jnp.dot(xf, ut_ref[...], preferred_element_type=jnp.float32)  # (Cpad, S)

    sb = sb_ref[...]                                                # (Cout, 4)
    s1, b1 = sb[:, 0:1], sb[:, 1:2]
    s2, b2 = sb[:, 2:3], sb[:, 3:4]
    masks = m_ref[...]                                              # (8, S)

    def conv3x3_bn_relu(inp, w_ref_, scale, shift):
        # Tap-accumulated 3x3 conv (padding=1) on the flattened spatial axis:
        #   y = sum_k  W_k @ (mask_k * roll(inp, off_k))
        y = None
        mrow = 0
        for k in range(9):
            dy, dx = k // 3 - 1, k % 3 - 1
            off = dy * w2_out + dx
            if off == 0:
                sh = inp
            else:
                # want sh[:, p] = inp[:, (p + off) mod S]  =>  jnp.roll shift = -off
                sh = pltpu.roll(inp, shift=(-off) % S, axis=1)
            if k != 4:                                   # center tap needs no mask
                sh = sh * masks[mrow:mrow + 1, :]
                mrow += 1
            contrib = jnp.dot(w_ref_[k], sh, preferred_element_type=jnp.float32)
            y = contrib if y is None else y + contrib
        return jnp.maximum(y * scale + shift, 0.0)

    h1 = conv3x3_bn_relu(u, w1_ref, s1, b1)                         # (Cout, S)
    h2 = conv3x3_bn_relu(h1, w2_ref, s2, b2)                        # (Cout, S)
    out_ref[0] = h2.astype(out_ref.dtype)


# ------------------------------ wrapper --------------------------------------
def bilinear_upsample_matrix(n):
    """2x bilinear interpolation matrix, align_corners=False (PyTorch semantics)."""
    m = 2 * n
    o = np.arange(m, dtype=np.float64)
    src = np.maximum((o + 0.5) / 2.0 - 0.5, 0.0)
    lo = np.floor(src).astype(np.int64)
    frac = src - lo
    hi = np.minimum(lo + 1, n - 1)
    A = np.zeros((m, n), dtype=np.float32)
    A[np.arange(m), lo] += (1.0 - frac).astype(np.float32)
    A[np.arange(m), hi] += frac.astype(np.float32)
    return A


def upsample_block_forward(x_nchw, w1_oihw, s1, b1, w2_oihw, s2, b2, Ah, Aw):
    N, Cin, H, W = x_nchw.shape
    Cout = w1_oihw.shape[0]
    H2, W2 = 2 * H, 2 * W
    HW, S = H * W, H2 * W2
    Cpad = ((Cin + 7) // 8) * 8               # sublane-align channel slabs

    # ---- host-side precompute (layout plumbing / static tables only) --------
    # kron upsample matrix: U[i*W2+j, h*W+w] = Ah[i,h]*Aw[j,w]; pass U^T (HW, S).
    ut = jnp.kron(jnp.asarray(Ah, jnp.float32), jnp.asarray(Aw, jnp.float32)).T

    # boundary masks for the 8 non-center taps (static, built once on host)
    pos = np.arange(S)
    row, col = pos // W2, pos % W2
    mask_rows = []
    for k in range(9):
        if k == 4:
            continue
        dy, dx = k // 3 - 1, k % 3 - 1
        m = ((row + dy >= 0) & (row + dy < H2) &
             (col + dx >= 0) & (col + dx < W2))
        mask_rows.append(m.astype(np.float32))
    masks = jnp.asarray(np.stack(mask_rows, axis=0))                 # (8, S)

    # lane-dense, channel-padded input
    x_k = x_nchw.reshape(N, Cin, HW).astype(jnp.float32)
    if Cpad > Cin:
        x_k = jnp.pad(x_k, ((0, 0), (0, Cpad - Cin), (0, 0)))

    # tap-major conv weights: (kh, kw, O, I) -> (9, Cout, C)
    w1_k = jnp.transpose(w1_oihw, (2, 3, 0, 1)).reshape(9, Cout, Cin)
    if Cpad > Cin:
        w1_k = jnp.pad(w1_k, ((0, 0), (0, 0), (0, Cpad - Cin)))
    w2_k = jnp.transpose(w2_oihw, (2, 3, 0, 1)).reshape(9, Cout, Cout)

    # folded BN params packed into one small block (cuts DMA descriptors)
    sb = jnp.stack([s1, b1, s2, b2], axis=1).astype(jnp.float32)     # (Cout, 4)

    kernel = partial(upsample_block_kernel, w2_out=W2)

    out = pl.pallas_call(
        kernel,
        out_shape=jax.ShapeDtypeStruct((N, Cout, S), jnp.float32),
        grid_spec=pltpu.PrefetchScalarGridSpec(
            num_scalar_prefetch=0,
            grid=(N,),
            in_specs=[
                pl.BlockSpec((1, Cpad, HW), lambda n: (n, 0, 0)),
                pl.BlockSpec((HW, S), lambda n: (0, 0)),
                pl.BlockSpec((8, S), lambda n: (0, 0)),
                pl.BlockSpec((9, Cout, Cpad), lambda n: (0, 0, 0)),
                pl.BlockSpec((9, Cout, Cout), lambda n: (0, 0, 0)),
                pl.BlockSpec((Cout, 4), lambda n: (0, 0)),
            ],
            out_specs=pl.BlockSpec((1, Cout, S), lambda n: (n, 0, 0)),
        ),
        compiler_params=pltpu.CompilerParams(
            dimension_semantics=("parallel",),
            vmem_limit_bytes=32 * 1024 * 1024,
        ),
    )(x_k, ut, masks, w1_k, w2_k, sb)

    return out.reshape(N, Cout, H2, W2)        # already NCHW


# ---------------------------- pure-JAX reference ------------------------------
def reference_forward(x_nchw, w1_oihw, s1, b1, w2_oihw, s2, b2, Ah, Aw):
    up = jnp.einsum('ih,jw,nchw->ncij', Ah, Aw, x_nchw)
    y = lax.conv_general_dilated(up, w1_oihw, (1, 1), ((1, 1), (1, 1)),
                                 dimension_numbers=('NCHW', 'OIHW', 'NCHW'))
    y = jnp.maximum(y * s1[None, :, None, None] + b1[None, :, None, None], 0.0)
    y = lax.conv_general_dilated(y, w2_oihw, (1, 1), ((1, 1), (1, 1)),
                                 dimension_numbers=('NCHW', 'OIHW', 'NCHW'))
    y = jnp.maximum(y * s2[None, :, None, None] + b2[None, :, None, None], 0.0)
    return y


# ---------------------------------- main --------------------------------------
if __name__ == "__main__":
    N, Cin, H, W = 2, 4, 16, 16
    Cout = 8                      # UpsampleBlock(in_channels=4, out_channels=8)
    eps = 1e-5

    key = jax.random.PRNGKey(0)
    ks = jax.random.split(key, 11)

    # deterministic synthetic parameters (shapes per nn.Conv2d / nn.BatchNorm2d)
    w1 = 0.1 * jax.random.normal(ks[0], (Cout, Cin, 3, 3), jnp.float32)
    w2 = 0.1 * jax.random.normal(ks[1], (Cout, Cout, 3, 3), jnp.float32)
    g1 = 1.0 + 0.1 * jax.random.normal(ks[2], (Cout,), jnp.float32)
    be1 = 0.1 * jax.random.normal(ks[3], (Cout,), jnp.float32)
    m1 = 0.1 * jax.random.normal(ks[4], (Cout,), jnp.float32)
    v1 = jax.random.uniform(ks[5], (Cout,), jnp.float32, 0.5, 1.5)
    g2 = 1.0 + 0.1 * jax.random.normal(ks[6], (Cout,), jnp.float32)
    be2 = 0.1 * jax.random.normal(ks[7], (Cout,), jnp.float32)
    m2 = 0.1 * jax.random.normal(ks[8], (Cout,), jnp.float32)
    v2 = jax.random.uniform(ks[9], (Cout,), jnp.float32, 0.5, 1.5)

    # fold BN (inference) into scale/shift
    s1 = g1 / jnp.sqrt(v1 + eps)
    b1 = be1 - m1 * s1
    s2 = g2 / jnp.sqrt(v2 + eps)
    b2 = be2 - m2 * s2

    x = jax.random.normal(ks[10], (N, Cin, H, W), jnp.float32)

    Ah = jnp.asarray(bilinear_upsample_matrix(H))
    Aw = jnp.asarray(bilinear_upsample_matrix(W))

    out = upsample_block_forward(x, w1, s1, b1, w2, s2, b2, Ah, Aw)
    out = jax.block_until_ready(out)

    ref = jax.block_until_ready(
        reference_forward(x, w1, s1, b1, w2, s2, b2, Ah, Aw))

    np.testing.assert_allclose(np.asarray(out), np.asarray(ref),
                               rtol=1e-4, atol=1e-4)
    print("KERNEL_OK")
</pallas_src>

<mosaic_0001>
module attributes {stable_mosaic.version = 11 : i64} {
  func.func @upsample_block_kernel(%arg0: i32, %arg1: memref<1x8x256xf32, #tpu.memory_space<vmem>>, %arg2: memref<256x1024xf32, #tpu.memory_space<vmem>>, %arg3: memref<8x1024xf32, #tpu.memory_space<vmem>>, %arg4: memref<9x8x8xf32, #tpu.memory_space<vmem>>, %arg5: memref<9x8x8xf32, #tpu.memory_space<vmem>>, %arg6: memref<8x4xf32, #tpu.memory_space<vmem>>, %arg7: memref<1x8x1024xf32, #tpu.memory_space<vmem>>) attributes {dimension_semantics = [#tpu.dimension_semantics<parallel>], iteration_bounds = array<i64: 2>, scalar_prefetch = 0 : i64, scratch_operands = 0 : i64, tpu.core_type = #tpu.core_type<tc>, window_params = [{transform_indices = @transform_0, window_bounds = array<i64: 1, 8, 256>}, {pipeline_mode = #tpu.pipeline_mode<synchronous>, transform_indices = @transform_1, window_bounds = array<i64: 256, 1024>}, {pipeline_mode = #tpu.pipeline_mode<synchronous>, transform_indices = @transform_2, window_bounds = array<i64: 8, 1024>}, {pipeline_mode = #tpu.pipeline_mode<synchronous>, transform_indices = @transform_3, window_bounds = array<i64: 9, 8, 8>}, {pipeline_mode = #tpu.pipeline_mode<synchronous>, transform_indices = @transform_4, window_bounds = array<i64: 9, 8, 8>}, {pipeline_mode = #tpu.pipeline_mode<synchronous>, transform_indices = @transform_5, window_bounds = array<i64: 8, 4>}, {transform_indices = @transform_6, window_bounds = array<i64: 1, 8, 1024>}]} {
    %c0 = arith.constant 0 : index
    %c0_0 = arith.constant 0 : index
    %c0_1 = arith.constant 0 : index
    %0 = vector.load %arg1[%c0, %c0_0, %c0_1] : memref<1x8x256xf32, #tpu.memory_space<vmem>>, vector<1x8x256xf32>
    %1 = vector.shape_cast %0 : vector<1x8x256xf32> to vector<8x256xf32>
    %c0_2 = arith.constant 0 : index
    %c0_3 = arith.constant 0 : index
    %2 = vector.load %arg2[%c0_2, %c0_3] : memref<256x1024xf32, #tpu.memory_space<vmem>>, vector<256x1024xf32>
    %cst = arith.constant dense<0.000000e+00> : vector<8x1024xf32>
    %3 = tpu.matmul %1, %2, %cst {dimension_numbers = #tpu.dot_dimension_numbers<[1], [0], [0], [1], [0, 0, 1, 1], [], []>} : vector<8x256xf32>, vector<256x1024xf32>, vector<8x1024xf32> -> vector<8x1024xf32>
    %c0_4 = arith.constant 0 : index
    %c0_5 = arith.constant 0 : index
    %4 = vector.load %arg6[%c0_4, %c0_5] : memref<8x4xf32, #tpu.memory_space<vmem>>, vector<8x4xf32>
    %5 = vector.extract_strided_slice %4 {offsets = [0, 0], sizes = [8, 1], strides = [1, 1]} : vector<8x4xf32> to vector<8x1xf32>
    %6 = vector.extract_strided_slice %4 {offsets = [0, 1], sizes = [8, 1], strides = [1, 1]} : vector<8x4xf32> to vector<8x1xf32>
    %7 = vector.extract_strided_slice %4 {offsets = [0, 2], sizes = [8, 1], strides = [1, 1]} : vector<8x4xf32> to vector<8x1xf32>
    %8 = vector.extract_strided_slice %4 {offsets = [0, 3], sizes = [8, 1], strides = [1, 1]} : vector<8x4xf32> to vector<8x1xf32>
    %c0_6 = arith.constant 0 : index
    %c0_7 = arith.constant 0 : index
    %9 = vector.load %arg3[%c0_6, %c0_7] : memref<8x1024xf32, #tpu.memory_space<vmem>>, vector<8x1024xf32>
    %c33_i32 = arith.constant 33 : i32
    %10 = tpu.dynamic_rotate %3 by %c33_i32 dim 1 : vector<8x1024xf32>, i32 -> vector<8x1024xf32>
    %11 = vector.extract_strided_slice %9 {offsets = [0, 0], sizes = [1, 1024], strides = [1, 1]} : vector<8x1024xf32> to vector<1x1024xf32>
    %12 = vector.broadcast %11 : vector<1x1024xf32> to vector<8x1024xf32>
    %13 = arith.mulf %10, %12 : vector<8x1024xf32>
    %c0_8 = arith.constant 0 : index
    %c0_9 = arith.constant 0 : index
    %c0_10 = arith.constant 0 : index
    %14 = vector.load %arg4[%c0_8, %c0_9, %c0_10] : memref<9x8x8xf32, #tpu.memory_space<vmem>>, vector<1x8x8xf32>
    %15 = vector.shape_cast %14 : vector<1x8x8xf32> to vector<8x8xf32>
    %cst_11 = arith.constant dense<0.000000e+00> : vector<8x1024xf32>
    %16 = tpu.matmul %15, %13, %cst_11 {dimension_numbers = #tpu.dot_dimension_numbers<[1], [0], [0], [1], [0, 0, 1, 1], [], []>} : vector<8x8xf32>, vector<8x1024xf32>, vector<8x1024xf32> -> vector<8x1024xf32>
    %c32_i32 = arith.constant 32 : i32
    %17 = tpu.dynamic_rotate %3 by %c32_i32 dim 1 : vector<8x1024xf32>, i32 -> vector<8x1024xf32>
    %18 = vector.extract_strided_slice %9 {offsets = [1, 0], sizes = [1, 1024], strides = [1, 1]} : vector<8x1024xf32> to vector<1x1024xf32>
    %19 = vector.broadcast %18 : vector<1x1024xf32> to vector<8x1024xf32>
    %20 = arith.mulf %17, %19 : vector<8x1024xf32>
    %c1 = arith.constant 1 : index
    %c0_12 = arith.constant 0 : index
    %c0_13 = arith.constant 0 : index
    %21 = vector.load %arg4[%c1, %c0_12, %c0_13] : memref<9x8x8xf32, #tpu.memory_space<vmem>>, vector<1x8x8xf32>
    %22 = vector.shape_cast %21 : vector<1x8x8xf32> to vector<8x8xf32>
    %cst_14 = arith.constant dense<0.000000e+00> : vector<8x1024xf32>
    %23 = tpu.matmul %22, %20, %cst_14 {dimension_numbers = #tpu.dot_dimension_numbers<[1], [0], [0], [1], [0, 0, 1, 1], [], []>} : vector<8x8xf32>, vector<8x1024xf32>, vector<8x1024xf32> -> vector<8x1024xf32>
    %24 = arith.addf %16, %23 : vector<8x1024xf32>
    %c31_i32 = arith.constant 31 : i32
    %25 = tpu.dynamic_rotate %3 by %c31_i32 dim 1 : vector<8x1024xf32>, i32 -> vector<8x1024xf32>
    %26 = vector.extract_strided_slice %9 {offsets = [2, 0], sizes = [1, 1024], strides = [1, 1]} : vector<8x1024xf32> to vector<1x1024xf32>
    %27 = vector.broadcast %26 : vector<1x1024xf32> to vector<8x1024xf32>
    %28 = arith.mulf %25, %27 : vector<8x1024xf32>
    %c2 = arith.constant 2 : index
    %c0_15 = arith.constant 0 : index
    %c0_16 = arith.constant 0 : index
    %29 = vector.load %arg4[%c2, %c0_15, %c0_16] : memref<9x8x8xf32, #tpu.memory_space<vmem>>, vector<1x8x8xf32>
    %30 = vector.shape_cast %29 : vector<1x8x8xf32> to vector<8x8xf32>
    %cst_17 = arith.constant dense<0.000000e+00> : vector<8x1024xf32>
    %31 = tpu.matmul %30, %28, %cst_17 {dimension_numbers = #tpu.dot_dimension_numbers<[1], [0], [0], [1], [0, 0, 1, 1], [], []>} : vector<8x8xf32>, vector<8x1024xf32>, vector<8x1024xf32> -> vector<8x1024xf32>
    %32 = arith.addf %24, %31 : vector<8x1024xf32>
    %c1_i32 = arith.constant 1 : i32
    %33 = tpu.dynamic_rotate %3 by %c1_i32 dim 1 : vector<8x1024xf32>, i32 -> vector<8x1024xf32>
    %34 = vector.extract_strided_slice %9 {offsets = [3, 0], sizes = [1, 1024], strides = [1, 1]} : vector<8x1024xf32> to vector<1x1024xf32>
    %35 = vector.broadcast %34 : vector<1x1024xf32> to vector<8x1024xf32>
    %36 = arith.mulf %33, %35 : vector<8x1024xf32>
    %c3 = arith.constant 3 : index
    %c0_18 = arith.constant 0 : index
    %c0_19 = arith.constant 0 : index
    %37 = vector.load %arg4[%c3, %c0_18, %c0_19] : memref<9x8x8xf32, #tpu.memory_space<vmem>>, vector<1x8x8xf32>
    %38 = vector.shape_cast %37 : vector<1x8x8xf32> to vector<8x8xf32>
    %cst_20 = arith.constant dense<0.000000e+00> : vector<8x1024xf32>
    %39 = tpu.matmul %38, %36, %cst_20 {dimension_numbers = #tpu.dot_dimension_numbers<[1], [0], [0], [1], [0, 0, 1, 1], [], []>} : vector<8x8xf32>, vector<8x1024xf32>, vector<8x1024xf32> -> vector<8x1024xf32>
    %40 = arith.addf %32, %39 : vector<8x1024xf32>
    %c4 = arith.constant 4 : index
    %c0_21 = arith.constant 0 : index
    %c0_22 = arith.constant 0 : index
    %41 = vector.load %arg4[%c4, %c0_21, %c0_22] : memref<9x8x8xf32, #tpu.memory_space<vmem>>, vector<1x8x8xf32>
    %42 = vector.shape_cast %41 : vector<1x8x8xf32> to vector<8x8xf32>
    %cst_23 = arith.constant dense<0.000000e+00> : vector<8x1024xf32>
    %43 = tpu.matmul %42, %3, %cst_23 {dimension_numbers = #tpu.dot_dimension_numbers<[1], [0], [0], [1], [0, 0, 1, 1], [], []>} : vector<8x8xf32>, vector<8x1024xf32>, vector<8x1024xf32> -> vector<8x1024xf32>
    %44 = arith.addf %40, %43 : vector<8x1024xf32>
    %c1023_i32 = arith.constant 1023 : i32
    %45 = tpu.dynamic_rotate %3 by %c1023_i32 dim 1 : vector<8x1024xf32>, i32 -> vector<8x1024xf32>
    %46 = vector.extract_strided_slice %9 {offsets = [4, 0], sizes = [1, 1024], strides = [1, 1]} : vector<8x1024xf32> to vector<1x1024xf32>
    %47 = vector.broadcast %46 : vector<1x1024xf32> to vector<8x1024xf32>
    %48 = arith.mulf %45, %47 : vector<8x1024xf32>
    %c5 = arith.constant 5 : index
    %c0_24 = arith.constant 0 : index
    %c0_25 = arith.constant 0 : index
    %49 = vector.load %arg4[%c5, %c0_24, %c0_25] : memref<9x8x8xf32, #tpu.memory_space<vmem>>, vector<1x8x8xf32>
    %50 = vector.shape_cast %49 : vector<1x8x8xf32> to vector<8x8xf32>
    %cst_26 = arith.constant dense<0.000000e+00> : vector<8x1024xf32>
    %51 = tpu.matmul %50, %48, %cst_26 {dimension_numbers = #tpu.dot_dimension_numbers<[1], [0], [0], [1], [0, 0, 1, 1], [], []>} : vector<8x8xf32>, vector<8x1024xf32>, vector<8x1024xf32> -> vector<8x1024xf32>
    %52 = arith.addf %44, %51 : vector<8x1024xf32>
    %c993_i32 = arith.constant 993 : i32
    %53 = tpu.dynamic_rotate %3 by %c993_i32 dim 1 : vector<8x1024xf32>, i32 -> vector<8x1024xf32>
    %54 = vector.extract_strided_slice %9 {offsets = [5, 0], sizes = [1, 1024], strides = [1, 1]} : vector<8x1024xf32> to vector<1x1024xf32>
    %55 = vector.broadcast %54 : vector<1x1024xf32> to vector<8x1024xf32>
    %56 = arith.mulf %53, %55 : vector<8x1024xf32>
    %c6 = arith.constant 6 : index
    %c0_27 = arith.constant 0 : index
    %c0_28 = arith.constant 0 : index
    %57 = vector.load %arg4[%c6, %c0_27, %c0_28] : memref<9x8x8xf32, #tpu.memory_space<vmem>>, vector<1x8x8xf32>
    %58 = vector.shape_cast %57 : vector<1x8x8xf32> to vector<8x8xf32>
    %cst_29 = arith.constant dense<0.000000e+00> : vector<8x1024xf32>
    %59 = tpu.matmul %58, %56, %cst_29 {dimension_numbers = #tpu.dot_dimension_numbers<[1], [0], [0], [1], [0, 0, 1, 1], [], []>} : vector<8x8xf32>, vector<8x1024xf32>, vector<8x1024xf32> -> vector<8x1024xf32>
    %60 = arith.addf %52, %59 : vector<8x1024xf32>
    %c992_i32 = arith.constant 992 : i32
    %61 = tpu.dynamic_rotate %3 by %c992_i32 dim 1 : vector<8x1024xf32>, i32 -> vector<8x1024xf32>
    %62 = vector.extract_strided_slice %9 {offsets = [6, 0], sizes = [1, 1024], strides = [1, 1]} : vector<8x1024xf32> to vector<1x1024xf32>
    %63 = vector.broadcast %62 : vector<1x1024xf32> to vector<8x1024xf32>
    %64 = arith.mulf %61, %63 : vector<8x1024xf32>
    %c7 = arith.constant 7 : index
    %c0_30 = arith.constant 0 : index
    %c0_31 = arith.constant 0 : index
    %65 = vector.load %arg4[%c7, %c0_30, %c0_31] : memref<9x8x8xf32, #tpu.memory_space<vmem>>, vector<1x8x8xf32>
    %66 = vector.shape_cast %65 : vector<1x8x8xf32> to vector<8x8xf32>
    %cst_32 = arith.constant dense<0.000000e+00> : vector<8x1024xf32>
    %67 = tpu.matmul %66, %64, %cst_32 {dimension_numbers = #tpu.dot_dimension_numbers<[1], [0], [0], [1], [0, 0, 1, 1], [], []>} : vector<8x8xf32>, vector<8x1024xf32>, vector<8x1024xf32> -> vector<8x1024xf32>
    %68 = arith.addf %60, %67 : vector<8x1024xf32>
    %c991_i32 = arith.constant 991 : i32
    %69 = tpu.dynamic_rotate %3 by %c991_i32 dim 1 : vector<8x1024xf32>, i32 -> vector<8x1024xf32>
    %70 = vector.extract_strided_slice %9 {offsets = [7, 0], sizes = [1, 1024], strides = [1, 1]} : vector<8x1024xf32> to vector<1x1024xf32>
    %71 = vector.broadcast %70 : vector<1x1024xf32> to vector<8x1024xf32>
    %72 = arith.mulf %69, %71 : vector<8x1024xf32>
    %c8 = arith.constant 8 : index
    %c0_33 = arith.constant 0 : index
    %c0_34 = arith.constant 0 : index
    %73 = vector.load %arg4[%c8, %c0_33, %c0_34] : memref<9x8x8xf32, #tpu.memory_space<vmem>>, vector<1x8x8xf32>
    %74 = vector.shape_cast %73 : vector<1x8x8xf32> to vector<8x8xf32>
    %cst_35 = arith.constant dense<0.000000e+00> : vector<8x1024xf32>
    %75 = tpu.matmul %74, %72, %cst_35 {dimension_numbers = #tpu.dot_dimension_numbers<[1], [0], [0], [1], [0, 0, 1, 1], [], []>} : vector<8x8xf32>, vector<8x1024xf32>, vector<8x1024xf32> -> vector<8x1024xf32>
    %76 = arith.addf %68, %75 : vector<8x1024xf32>
    %77 = vector.broadcast %5 : vector<8x1xf32> to vector<8x1024xf32>
    %78 = arith.mulf %76, %77 : vector<8x1024xf32>
    %79 = vector.broadcast %6 : vector<8x1xf32> to vector<8x1024xf32>
    %80 = arith.addf %78, %79 : vector<8x1024xf32>
    %cst_36 = arith.constant 0.000000e+00 : f32
    %81 = vector.broadcast %cst_36 : f32 to vector<8x1024xf32>
    %82 = arith.maximumf %80, %81 : vector<8x1024xf32>
    %c33_i32_37 = arith.constant 33 : i32
    %83 = tpu.dynamic_rotate %82 by %c33_i32_37 dim 1 : vector<8x1024xf32>, i32 -> vector<8x1024xf32>
    %84 = vector.extract_strided_slice %9 {offsets = [0, 0], sizes = [1, 1024], strides = [1, 1]} : vector<8x1024xf32> to vector<1x1024xf32>
    %85 = vector.broadcast %84 : vector<1x1024xf32> to vector<8x1024xf32>
    %86 = arith.mulf %83, %85 : vector<8x1024xf32>
    %c0_38 = arith.constant 0 : index
    %c0_39 = arith.constant 0 : index
    %c0_40 = arith.constant 0 : index
    %87 = vector.load %arg5[%c0_38, %c0_39, %c0_40] : memref<9x8x8xf32, #tpu.memory_space<vmem>>, vector<1x8x8xf32>
    %88 = vector.shape_cast %87 : vector<1x8x8xf32> to vector<8x8xf32>
    %cst_41 = arith.constant dense<0.000000e+00> : vector<8x1024xf32>
    %89 = tpu.matmul %88, %86, %cst_41 {dimension_numbers = #tpu.dot_dimension_numbers<[1], [0], [0], [1], [0, 0, 1, 1], [], []>} : vector<8x8xf32>, vector<8x1024xf32>, vector<8x1024xf32> -> vector<8x1024xf32>
    %c32_i32_42 = arith.constant 32 : i32
    %90 = tpu.dynamic_rotate %82 by %c32_i32_42 dim 1 : vector<8x1024xf32>, i32 -> vector<8x1024xf32>
    %91 = vector.extract_strided_slice %9 {offsets = [1, 0], sizes = [1, 1024], strides = [1, 1]} : vector<8x1024xf32> to vector<1x1024xf32>
    %92 = vector.broadcast %91 : vector<1x1024xf32> to vector<8x1024xf32>
    %93 = arith.mulf %90, %92 : vector<8x1024xf32>
    %c1_43 = arith.constant 1 : index
    %c0_44 = arith.constant 0 : index
    %c0_45 = arith.constant 0 : index
    %94 = vector.load %arg5[%c1_43, %c0_44, %c0_45] : memref<9x8x8xf32, #tpu.memory_space<vmem>>, vector<1x8x8xf32>
    %95 = vector.shape_cast %94 : vector<1x8x8xf32> to vector<8x8xf32>
    %cst_46 = arith.constant dense<0.000000e+00> : vector<8x1024xf32>
    %96 = tpu.matmul %95, %93, %cst_46 {dimension_numbers = #tpu.dot_dimension_numbers<[1], [0], [0], [1], [0, 0, 1, 1], [], []>} : vector<8x8xf32>, vector<8x1024xf32>, vector<8x1024xf32> -> vector<8x1024xf32>
    %97 = arith.addf %89, %96 : vector<8x1024xf32>
    %c31_i32_47 = arith.constant 31 : i32
    %98 = tpu.dynamic_rotate %82 by %c31_i32_47 dim 1 : vector<8x1024xf32>, i32 -> vector<8x1024xf32>
    %99 = vector.extract_strided_slice %9 {offsets = [2, 0], sizes = [1, 1024], strides = [1, 1]} : vector<8x1024xf32> to vector<1x1024xf32>
    %100 = vector.broadcast %99 : vector<1x1024xf32> to vector<8x1024xf32>
    %101 = arith.mulf %98, %100 : vector<8x1024xf32>
    %c2_48 = arith.constant 2 : index
    %c0_49 = arith.constant 0 : index
    %c0_50 = arith.constant 0 : index
    %102 = vector.load %arg5[%c2_48, %c0_49, %c0_50] : memref<9x8x8xf32, #tpu.memory_space<vmem>>, vector<1x8x8xf32>
    %103 = vector.shape_cast %102 : vector<1x8x8xf32> to vector<8x8xf32>
    %cst_51 = arith.constant dense<0.000000e+00> : vector<8x1024xf32>
    %104 = tpu.matmul %103, %101, %cst_51 {dimension_numbers = #tpu.dot_dimension_numbers<[1], [0], [0], [1], [0, 0, 1, 1], [], []>} : vector<8x8xf32>, vector<8x1024xf32>, vector<8x1024xf32> -> vector<8x1024xf32>
    %105 = arith.addf %97, %104 : vector<8x1024xf32>
    %c1_i32_52 = arith.constant 1 : i32
    %106 = tpu.dynamic_rotate %82 by %c1_i32_52 dim 1 : vector<8x1024xf32>, i32 -> vector<8x1024xf32>
    %107 = vector.extract_strided_slice %9 {offsets = [3, 0], sizes = [1, 1024], strides = [1, 1]} : vector<8x1024xf32> to vector<1x1024xf32>
    %108 = vector.broadcast %107 : vector<1x1024xf32> to vector<8x1024xf32>
    %109 = arith.mulf %106, %108 : vector<8x1024xf32>
    %c3_53 = arith.constant 3 : index
    %c0_54 = arith.constant 0 : index
    %c0_55 = arith.constant 0 : index
    %110 = vector.load %arg5[%c3_53, %c0_54, %c0_55] : memref<9x8x8xf32, #tpu.memory_space<vmem>>, vector<1x8x8xf32>
    %111 = vector.shape_cast %110 : vector<1x8x8xf32> to vector<8x8xf32>
    %cst_56 = arith.constant dense<0.000000e+00> : vector<8x1024xf32>
    %112 = tpu.matmul %111, %109, %cst_56 {dimension_numbers = #tpu.dot_dimension_numbers<[1], [0], [0], [1], [0, 0, 1, 1], [], []>} : vector<8x8xf32>, vector<8x1024xf32>, vector<8x1024xf32> -> vector<8x1024xf32>
    %113 = arith.addf %105, %112 : vector<8x1024xf32>
    %c4_57 = arith.constant 4 : index
    %c0_58 = arith.constant 0 : index
    %c0_59 = arith.constant 0 : index
    %114 = vector.load %arg5[%c4_57, %c0_58, %c0_59] : memref<9x8x8xf32, #tpu.memory_space<vmem>>, vector<1x8x8xf32>
    %115 = vector.shape_cast %114 : vector<1x8x8xf32> to vector<8x8xf32>
    %cst_60 = arith.constant dense<0.000000e+00> : vector<8x1024xf32>
    %116 = tpu.matmul %115, %82, %cst_60 {dimension_numbers = #tpu.dot_dimension_numbers<[1], [0], [0], [1], [0, 0, 1, 1], [], []>} : vector<8x8xf32>, vector<8x1024xf32>, vector<8x1024xf32> -> vector<8x1024xf32>
    %117 = arith.addf %113, %116 : vector<8x1024xf32>
    %c1023_i32_61 = arith.constant 1023 : i32
    %118 = tpu.dynamic_rotate %82 by %c1023_i32_61 dim 1 : vector<8x1024xf32>, i32 -> vector<8x1024xf32>
    %119 = vector.extract_strided_slice %9 {offsets = [4, 0], sizes = [1, 1024], strides = [1, 1]} : vector<8x1024xf32> to vector<1x1024xf32>
    %120 = vector.broadcast %119 : vector<1x1024xf32> to vector<8x1024xf32>
    %121 = arith.mulf %118, %120 : vector<8x1024xf32>
    %c5_62 = arith.constant 5 : index
    %c0_63 = arith.constant 0 : index
    %c0_64 = arith.constant 0 : index
    %122 = vector.load %arg5[%c5_62, %c0_63, %c0_64] : memref<9x8x8xf32, #tpu.memory_space<vmem>>, vector<1x8x8xf32>
    %123 = vector.shape_cast %122 : vector<1x8x8xf32> to vector<8x8xf32>
    %cst_65 = arith.constant dense<0.000000e+00> : vector<8x1024xf32>
    %124 = tpu.matmul %123, %121, %cst_65 {dimension_numbers = #tpu.dot_dimension_numbers<[1], [0], [0], [1], [0, 0, 1, 1], [], []>} : vector<8x8xf32>, vector<8x1024xf32>, vector<8x1024xf32> -> vector<8x1024xf32>
    %125 = arith.addf %117, %124 : vector<8x1024xf32>
    %c993_i32_66 = arith.constant 993 : i32
    %126 = tpu.dynamic_rotate %82 by %c993_i32_66 dim 1 : vector<8x1024xf32>, i32 -> vector<8x1024xf32>
    %127 = vector.extract_strided_slice %9 {offsets = [5, 0], sizes = [1, 1024], strides = [1, 1]} : vector<8x1024xf32> to vector<1x1024xf32>
    %128 = vector.broadcast %127 : vector<1x1024xf32> to vector<8x1024xf32>
    %129 = arith.mulf %126, %128 : vector<8x1024xf32>
    %c6_67 = arith.constant 6 : index
    %c0_68 = arith.constant 0 : index
    %c0_69 = arith.constant 0 : index
    %130 = vector.load %arg5[%c6_67, %c0_68, %c0_69] : memref<9x8x8xf32, #tpu.memory_space<vmem>>, vector<1x8x8xf32>
    %131 = vector.shape_cast %130 : vector<1x8x8xf32> to vector<8x8xf32>
    %cst_70 = arith.constant dense<0.000000e+00> : vector<8x1024xf32>
    %132 = tpu.matmul %131, %129, %cst_70 {dimension_numbers = #tpu.dot_dimension_numbers<[1], [0], [0], [1], [0, 0, 1, 1], [], []>} : vector<8x8xf32>, vector<8x1024xf32>, vector<8x1024xf32> -> vector<8x1024xf32>
    %133 = arith.addf %125, %132 : vector<8x1024xf32>
    %c992_i32_71 = arith.constant 992 : i32
    %134 = tpu.dynamic_rotate %82 by %c992_i32_71 dim 1 : vector<8x1024xf32>, i32 -> vector<8x1024xf32>
    %135 = vector.extract_strided_slice %9 {offsets = [6, 0], sizes = [1, 1024], strides = [1, 1]} : vector<8x1024xf32> to vector<1x1024xf32>
    %136 = vector.broadcast %135 : vector<1x1024xf32> to vector<8x1024xf32>
    %137 = arith.mulf %134, %136 : vector<8x1024xf32>
    %c7_72 = arith.constant 7 : index
    %c0_73 = arith.constant 0 : index
    %c0_74 = arith.constant 0 : index
    %138 = vector.load %arg5[%c7_72, %c0_73, %c0_74] : memref<9x8x8xf32, #tpu.memory_space<vmem>>, vector<1x8x8xf32>
    %139 = vector.shape_cast %138 : vector<1x8x8xf32> to vector<8x8xf32>
    %cst_75 = arith.constant dense<0.000000e+00> : vector<8x1024xf32>
    %140 = tpu.matmul %139, %137, %cst_75 {dimension_numbers = #tpu.dot_dimension_numbers<[1], [0], [0], [1], [0, 0, 1, 1], [], []>} : vector<8x8xf32>, vector<8x1024xf32>, vector<8x1024xf32> -> vector<8x1024xf32>
    %141 = arith.addf %133, %140 : vector<8x1024xf32>
    %c991_i32_76 = arith.constant 991 : i32
    %142 = tpu.dynamic_rotate %82 by %c991_i32_76 dim 1 : vector<8x1024xf32>, i32 -> vector<8x1024xf32>
    %143 = vector.extract_strided_slice %9 {offsets = [7, 0], sizes = [1, 1024], strides = [1, 1]} : vector<8x1024xf32> to vector<1x1024xf32>
    %144 = vector.broadcast %143 : vector<1x1024xf32> to vector<8x1024xf32>
    %145 = arith.mulf %142, %144 : vector<8x1024xf32>
    %c8_77 = arith.constant 8 : index
    %c0_78 = arith.constant 0 : index
    %c0_79 = arith.constant 0 : index
    %146 = vector.load %arg5[%c8_77, %c0_78, %c0_79] : memref<9x8x8xf32, #tpu.memory_space<vmem>>, vector<1x8x8xf32>
    %147 = vector.shape_cast %146 : vector<1x8x8xf32> to vector<8x8xf32>
    %cst_80 = arith.constant dense<0.000000e+00> : vector<8x1024xf32>
    %148 = tpu.matmul %147, %145, %cst_80 {dimension_numbers = #tpu.dot_dimension_numbers<[1], [0], [0], [1], [0, 0, 1, 1], [], []>} : vector<8x8xf32>, vector<8x1024xf32>, vector<8x1024xf32> -> vector<8x1024xf32>
    %149 = arith.addf %141, %148 : vector<8x1024xf32>
    %150 = vector.broadcast %7 : vector<8x1xf32> to vector<8x1024xf32>
    %151 = arith.mulf %149, %150 : vector<8x1024xf32>
    %152 = vector.broadcast %8 : vector<8x1xf32> to vector<8x1024xf32>
    %153 = arith.addf %151, %152 : vector<8x1024xf32>
    %cst_81 = arith.constant 0.000000e+00 : f32
    %154 = vector.broadcast %cst_81 : f32 to vector<8x1024xf32>
    %155 = arith.maximumf %153, %154 : vector<8x1024xf32>
    %c0_82 = arith.constant 0 : index
    %c0_83 = arith.constant 0 : index
    %c0_84 = arith.constant 0 : index
    %156 = vector.load %arg7[%c0_82, %c0_83, %c0_84] : memref<1x8x1024xf32, #tpu.memory_space<vmem>>, vector<1x8x1024xf32>
    %157 = vector.shape_cast %156 : vector<1x8x1024xf32> to vector<8x1024xf32>
    %158 = vector.shape_cast %155 : vector<8x1024xf32> to vector<1x8x1024xf32>
    tpu.vector_store %arg7[%c0_82, %c0_83, %c0_84], %158 {strides = array<i32>} : memref<1x8x1024xf32, #tpu.memory_space<vmem>>, vector<1x8x1024xf32>,
    return
  }
  func.func @transform_0(%arg0: i32) -> (i32, i32, i32) {
    %c0_i32 = arith.constant 0 : i32
    %c0_i32_0 = arith.constant 0 : i32
    %c0_i32_1 = arith.constant 0 : i32
    return %arg0, %c0_i32, %c0_i32_0 : i32, i32, i32
  }
  func.func @transform_1(%arg0: i32) -> (i32, i32) {
    %c0_i32 = arith.constant 0 : i32
    %c0_i32_0 = arith.constant 0 : i32
    %c0_i32_1 = arith.constant 0 : i32
    return %c0_i32, %c0_i32_0 : i32, i32
  }
  func.func @transform_2(%arg0: i32) -> (i32, i32) {
    %c0_i32 = arith.constant 0 : i32
    %c0_i32_0 = arith.constant 0 : i32
    %c0_i32_1 = arith.constant 0 : i32
    return %c0_i32, %c0_i32_0 : i32, i32
  }
  func.func @transform_3(%arg0: i32) -> (i32, i32, i32) {
    %c0_i32 = arith.constant 0 : i32
    %c0_i32_0 = arith.constant 0 : i32
    %c0_i32_1 = arith.constant 0 : i32
    %c0_i32_2 = arith.constant 0 : i32
    return %c0_i32, %c0_i32_0, %c0_i32_1 : i32, i32, i32
  }
  func.func @transform_4(%arg0: i32) -> (i32, i32, i32) {
    %c0_i32 = arith.constant 0 : i32
    %c0_i32_0 = arith.constant 0 : i32
    %c0_i32_1 = arith.constant 0 : i32
    %c0_i32_2 = arith.constant 0 : i32
    return %c0_i32, %c0_i32_0, %c0_i32_1 : i32, i32, i32
  }
  func.func @transform_5(%arg0: i32) -> (i32, i32) {
    %c0_i32 = arith.constant 0 : i32
    %c0_i32_0 = arith.constant 0 : i32
    %c0_i32_1 = arith.constant 0 : i32
    return %c0_i32, %c0_i32_0 : i32, i32
  }
  func.func @transform_6(%arg0: i32) -> (i32, i32, i32) {
    %c0_i32 = arith.constant 0 : i32
    %c0_i32_0 = arith.constant 0 : i32
    %c0_i32_1 = arith.constant 0 : i32
    return %arg0, %c0_i32, %c0_i32_0 : i32, i32, i32
  }
}

</mosaic_0001>

<bundles_post_ra>
// kernel: tpu_custom_call.1
= control target key start
LH: loop header
LB: loop body
LE: loop exit
PB: predicated region body
PF: predicated region fallthrough
CT: control target
= control target key end

     0   :  { %11 = vsyncpa [#allocation3], 0  ;;  %s9182_s0 = inlined_call_operand.vmem [shape: f32[2,8,256], index: 0, kind: input, shape index: {}]   ;;  %s9183_s1 = inlined_call_operand.hbm [shape: f32[256,1024], index: 1, kind: input, shape index: {}]   ;;  %s9184_s2 = inlined_call_operand.vmem [shape: f32[8,1024], index: 2, kind: input, shape index: {}]   ;;  %s9185_s3 = inlined_call_operand.vmem [shape: f32[9,8,8], index: 3, kind: input, shape index: {}]   ;;  %s9186_s4 = inlined_call_operand.vmem [shape: f32[9,8,8], index: 4, kind: input, shape index: {}]   ;;  %s9187_s5 = inlined_call_operand.vmem [shape: f32[8,4], index: 5, kind: input, shape index: {}]   ;;  %s9188_s6 = inlined_call_operand.hbm [shape: f32[2,8,1024], index: 6, kind: output, shape index: {}]  }
   0x1   :  { %12 = vsyncpa [#allocation4], 0 }
   0x2   :  { %14 = vsyncpa [#allocation4 + $0x1], 0  ;;  %s7384_s21 = smov 0   ;;  %s7386_s22 = smov 0  }
   0x3   :  { %s7388_s23 = smov 0   ;;  %s7390_s24 = smov 0  }
   0x4 LB: > { %s7405_s25 = sadd.s32 4294967295, %s7330_s24   ;;  %s7066_s26 = sadd.s32 4294967294, %s7330_s24   ;;  %s7330_s24 = sphi %s7390_s24, %s9406_s24   ;;  %s7326_s23 = sphi %s7388_s23, %s9405_s23   ;;  %s7322_s22 = sphi %s7386_s22, %s9404_s22   ;;  %s7318_s21 = sphi %s7384_s21, %s9403_s21  }
   0x5   : > { %s7409_s27 = sadd.s32 1, %s7330_s24   ;;  %s158_s28 = sadd.s32 1, %s7326_s23 }
   0x6   : > { %s155_s29 = ssub.s32 %s7330_s24, %s7409_s27  ;;  %p168_p0 = scmp.ne.s32.totalorder %s7326_s23, %s7322_s22 }
   0x7   : > { %p156_p1 = scmp.eq.s32.totalorder %s155_s29, 0  ;;  %p169_p2 = scmp.eq.s32.totalorder %s7405_s25, 1 }
   0x8   : > { %p174_p3 = scmp.ne.s32.totalorder %s7322_s22, %s7318_s21  ;;  %p175_p4 = scmp.eq.s32.totalorder %s7066_s26, 1 }
   0x9   : > { %s7420_s30 = scalar_select %p156_p1, %s7326_s23, %s158_s28  }
   0xa   : > { %p7422_p5 = por %p169_p2, %p168_p0  ;;  %p7426_p6 = por %p175_p4, %p174_p3 }
   0xb   : > { %p7067_p7 = scmp.ge.s32.totalorder %s7330_s24, 1  ;;  %p182_p8 = scmp.lt.s32.totalorder %s7330_s24, 3 }
   0xc   : > { %s9258_s8 = scalar_select %p7426_p6, 1, 0 }
   0xd   : > { %p7184_p9 = scmp.eq.s32.totalorder %s7405_s25, 0  ;;  %p7433_p10 = pnand %p7067_p7, %p182_p8 }
   0xe   : > { %s7332_s10 = smov [#allocation2]  }
   0xf   : > { %s194_s11 = sshll.u32 %s7332_s10, 4  ;;  %p7176_p11 = pneg %p7433_p10  ;;  %s195_s11 = int_to_ptr.vmem [resolvable:$true] %s194_s11 }
  0x10   : > { %s7251_s12 = scalar_lea.vmem %s195_s11, 32768  ;;  %p7259_p3 = scmp.lt.s32.totalorder %s195_s11, %s195_s11 }
  0x11   : > { %p7177_p12 = pnand %p7184_p9, %p7176_p11  ;;  %p7252_p0 = scmp.ne.s32.totalorder %s195_s11, %s7251_s12 }
  0x12   : > { %p7260_p4 = scmp.lt.s32.totalorder %s7251_s12, %s7251_s12 }
  0x13   : > { %p7242_p13 = pneg %p7177_p12 }
  0x14   : > { %p7261_p6 = por %p7260_p4, %p7259_p3 }
  0x15   : > { %p7254_p1 = pnand %p7252_p0, %p7242_p13 }
  0x17   : > { %p7255_p2 = pneg %p7254_p1 }
  0x19   : > { %p7262_p7 = pnand %p7261_p6, %p7255_p2 }
  0x1b   : > { %7265 = shalt.err (!%p7262_p7)
}
  0x1c   : > { %s7333_s13 = smov 1024   ;;  %s7334_s14 = smov 64  }
  0x1d   : > { %7179 = dma.hbm_to_vmem [thread:$0]  (!%p7177_p12), %s9183_s1, 32768, %s195_s11, [#allocation3], %s7333_s13, %s7333_s13, %s7334_s14  }
  0x1e   : > { %230 = sbr.rel (%p7433_p10) target bundleno = 1229 (0x4cd), region = 44 }
  0x23   : > { %7309 = dma.done.wait (%p7184_p9), [#allocation3], 32768  }
  0x24   : > { %7311 = vsyncadd (%p7184_p9), [#allocation3], 4294934528  ;;  %v388_v0 = vld [vmem:[#allocation2 + $0x3c8] sm:$0xff]  ;;  %v390_v1 = vld [vmem:[#allocation2 + $0x3d8] sm:$0xff]  ;;  %p260_p6 = scmp.lt.s32.totalorder %s7405_s25, 1  ;;  %s7335_s28 = smov 32  }
  0x25   : > { %v387_v2 = vld [vmem:[#allocation2 + $0x3c0] sm:$0xff]  ;;  %523 = vmatprep.subr.mxu0 %v388_v0  ;;  %594 = vmatprep.subr.mxu1 %v390_v1  ;;  %v389_v3 = vld [vmem:[#allocation2 + $0x3d0] sm:$0xff]  ;;  %v380_v4 = vld [vmem:[#allocation2 + $0x388] sm:$0xff]  ;;  %s7336_s29 = smov 33   ;;  %s7337_s9 = smov 31   ;;  %vm951_vm1 = vcmask 64512  }
  0x26   : > { %v382_v5 = vld [vmem:[#allocation2 + $0x398] sm:$0xff]  ;;  %524 = vmatpush1.msra.mxu0 %v387_v2  ;;  %595 = vmatpush1.msra.mxu1 %v389_v3  ;;  %v379_v6 = vld [vmem:[#allocation2 + $0x380] sm:$0xff]  ;;  %v381_v7 = vld [vmem:[#allocation2 + $0x390] sm:$0xff]  ;;  %s7454_s17 = scalar_select %p260_p6, %s7405_s25, 1 }
  0x27   : > { %v372_v8 = vld [vmem:[#allocation2 + $0x348] sm:$0xff]  ;;  %525 = vmatprep.subr.mxu0 %v380_v4  ;;  %596 = vmatprep.subr.mxu1 %v382_v5  ;;  %v374_v9 = vld [vmem:[#allocation2 + $0x358] sm:$0xff]  ;;  %v371_v10 = vld [vmem:[#allocation2 + $0x340] sm:$0xff]  ;;  %s7338_s10 = smov 1   ;;  %s7339_s11 = smov 127  }
  0x28   : > { %v373_v11 = vld [vmem:[#allocation2 + $0x350] sm:$0xff]  ;;  %526 = vmatpush1.msra.mxu0 %v379_v6  ;;  %597 = vmatpush1.msra.mxu1 %v381_v7  ;;  %v364_v12 = vld [vmem:[#allocation2 + $0x308] sm:$0xff]  ;;  %v366_v13 = vld [vmem:[#allocation2 + $0x318] sm:$0xff]  ;;  %s7168_s18 = sshll.u32 %s7454_s17, 4  ;;  %s7341_s12 = smov 97  }
  0x29   : > { %527 = vmatprep.subr.mxu0 %v372_v8  ;;  %598 = vmatprep.subr.mxu1 %v374_v9  ;;  %v363_v14 = vld [vmem:[#allocation2 + $0x300] sm:$0xff]  ;;  %v365_v15 = vld [vmem:[#allocation2 + $0x310] sm:$0xff]  ;;  %v356_v16 = vld [vmem:[#allocation2 + $0x2c8] sm:$0xff]  ;;  %s264_s26 = scalar_lea.vmem %s9182_s0, %s7168_s18  ;;  %s7342_s13 = smov 96  }
  0x2a   : > { %528 = vmatpush1.msra.mxu0 %v371_v10  ;;  %599 = vmatpush1.msra.mxu1 %v373_v11  ;;  %v358_v17 = vld [vmem:[#allocation2 + $0x2d8] sm:$0xff]  ;;  %v355_v18 = vld [vmem:[#allocation2 + $0x2c0] sm:$0xff]  ;;  %v357_v19 = vld [vmem:[#allocation2 + $0x2d0] sm:$0xff]  ;;  %s9189_s14 = smov 95  }
  0x2b   : > { %529 = vmatprep.subr.mxu0 %v364_v12  ;;  %600 = vmatprep.subr.mxu1 %v366_v13  ;;  %v348_v20 = vld [vmem:[#allocation2 + $0x288] sm:$0xff]  ;;  %v350_v21 = vld [vmem:[#allocation2 + $0x298] sm:$0xff]  ;;  %v347_v22 = vld [vmem:[#allocation2 + $0x280] sm:$0xff] }
  0x2c   : > { %530 = vmatpush1.msra.mxu0 %v363_v14  ;;  %601 = vmatpush1.msra.mxu1 %v365_v15  ;;  %v349_v23 = vld [vmem:[#allocation2 + $0x290] sm:$0xff]  ;;  %v340_v24 = vld [vmem:[#allocation2 + $0x248] sm:$0xff]  ;;  %v342_v25 = vld [vmem:[#allocation2 + $0x258] sm:$0xff] }
  0x2d   : > { %531 = vmatprep.subr.mxu0 %v356_v16  ;;  %602 = vmatprep.subr.mxu1 %v358_v17  ;;  %v339_v26 = vld [vmem:[#allocation2 + $0x240] sm:$0xff]  ;;  %v341_v27 = vld [vmem:[#allocation2 + $0x250] sm:$0xff]  ;;  %v332_v28 = vld [vmem:[#allocation2 + $0x208] sm:$0xff] }
  0x2e   : > { %532 = vmatpush1.msra.mxu0 %v355_v18  ;;  %603 = vmatpush1.msra.mxu1 %v357_v19  ;;  %v334_v29 = vld [vmem:[#allocation2 + $0x218] sm:$0xff]  ;;  %v331_v30 = vld [vmem:[#allocation2 + $0x200] sm:$0xff]  ;;  %v333_v31 = vld [vmem:[#allocation2 + $0x210] sm:$0xff] }
  0x2f   : > { %533 = vmatprep.subr.mxu0 %v348_v20  ;;  %604 = vmatprep.subr.mxu1 %v350_v21  ;;  %v324_v32 = vld [vmem:[#allocation2 + $0x1c8] sm:$0xff]  ;;  %v326_v33 = vld [vmem:[#allocation2 + $0x1d8] sm:$0xff]  ;;  %v323_v34 = vld [vmem:[#allocation2 + $0x1c0] sm:$0xff] }
  0x30   : > { %534 = vmatpush1.msra.mxu0 %v347_v22  ;;  %605 = vmatpush1.msra.mxu1 %v349_v23  ;;  %v325_v35 = vld [vmem:[#allocation2 + $0x1d0] sm:$0xff]  ;;  %v316_v36 = vld [vmem:[#allocation2 + $0x188] sm:$0xff]  ;;  %v318_v37 = vld [vmem:[#allocation2 + $0x198] sm:$0xff] }
  0x31   : > { %535 = vmatprep.subr.mxu0 %v340_v24  ;;  %606 = vmatprep.subr.mxu1 %v342_v25  ;;  %v315_v38 = vld [vmem:[#allocation2 + $0x180] sm:$0xff]  ;;  %v317_v39 = vld [vmem:[#allocation2 + $0x190] sm:$0xff]  ;;  %v308_v40 = vld [vmem:[#allocation2 + $0x148] sm:$0xff] }
  0x32   : > { %536 = vmatpush1.msra.mxu0 %v339_v26  ;;  %607 = vmatpush1.msra.mxu1 %v341_v27  ;;  %v310_v41 = vld [vmem:[#allocation2 + $0x158] sm:$0xff]  ;;  %v307_v42 = vld [vmem:[#allocation2 + $0x140] sm:$0xff]  ;;  %v309_v43 = vld [vmem:[#allocation2 + $0x150] sm:$0xff] }
  0x33   : > { %537 = vmatprep.subr.mxu0 %v332_v28  ;;  %608 = vmatprep.subr.mxu1 %v334_v29  ;;  %v300_v44 = vld [vmem:[#allocation2 + $0x108] sm:$0xff]  ;;  %v302_v45 = vld [vmem:[#allocation2 + $0x118] sm:$0xff]  ;;  %v299_v46 = vld [vmem:[#allocation2 + $0x100] sm:$0xff] }
  0x34   : > { %538 = vmatpush1.msra.mxu0 %v331_v30  ;;  %609 = vmatpush1.msra.mxu1 %v333_v31  ;;  %v301_v47 = vld [vmem:[#allocation2 + $0x110] sm:$0xff]  ;;  %v292_v48 = vld [vmem:[#allocation2 + $0xc8] sm:$0xff]  ;;  %v294_v49 = vld [vmem:[#allocation2 + $0xd8] sm:$0xff] }
  0x35   : > { %539 = vmatprep.subr.mxu0 %v324_v32  ;;  %610 = vmatprep.subr.mxu1 %v326_v33  ;;  %v291_v50 = vld [vmem:[#allocation2 + $0xc0] sm:$0xff]  ;;  %v293_v51 = vld [vmem:[#allocation2 + $0xd0] sm:$0xff]  ;;  %v284_v52 = vld [vmem:[#allocation2 + $0x88] sm:$0xff] }
  0x36   : > { %540 = vmatpush1.msra.mxu0 %v323_v34  ;;  %611 = vmatpush1.msra.mxu1 %v325_v35  ;;  %v286_v53 = vld [vmem:[#allocation2 + $0x98] sm:$0xff]  ;;  %v283_v54 = vld [vmem:[#allocation2 + $0x80] sm:$0xff]  ;;  %v285_v55 = vld [vmem:[#allocation2 + $0x90] sm:$0xff] }
  0x37   : > { %541 = vmatprep.subr.mxu0 %v316_v36  ;;  %612 = vmatprep.subr.mxu1 %v318_v37  ;;  %v276_v56 = vld [vmem:[#allocation2 + $0x48] sm:$0xff]  ;;  %v278_v57 = vld [vmem:[#allocation2 + $0x58] sm:$0xff]  ;;  %v275_v58 = vld [vmem:[#allocation2 + $0x40] sm:$0xff] }
  0x38   : > { %542 = vmatpush1.msra.mxu0 %v315_v38  ;;  %613 = vmatpush1.msra.mxu1 %v317_v39  ;;  %v277_v59 = vld [vmem:[#allocation2 + $0x50] sm:$0xff]  ;;  %v268_v60 = vld [vmem:[#allocation2 + $0x8] sm:$0xff]  ;;  %v270_v61 = vld [vmem:[#allocation2 + $0x18] sm:$0xff] }
  0x39   : > { %543 = vmatprep.subr.mxu0 %v308_v40  ;;  %614 = vmatprep.subr.mxu1 %v310_v41  ;;  %v267_v62 = vld [vmem:[#allocation2] sm:$0xff]  ;;  %v269_v63 = vld [vmem:[#allocation2 + $0x10] sm:$0xff]  ;;  %v516_v0 = vld [vmem:[#allocation2 + $0x7c8] sm:$0xff] }
  0x3a   : > { %544 = vmatpush1.msra.mxu0 %v307_v42  ;;  %615 = vmatpush1.msra.mxu1 %v309_v43  ;;  %v518_v1 = vld [vmem:[#allocation2 + $0x7d8] sm:$0xff]  ;;  %v515_v2 = vld [vmem:[#allocation2 + $0x7c0] sm:$0xff]  ;;  %v517_v3 = vld [vmem:[#allocation2 + $0x7d0] sm:$0xff] }
  0x3b   : > { %545 = vmatprep.subr.mxu0 %v300_v44  ;;  %616 = vmatprep.subr.mxu1 %v302_v45  ;;  %v508_v4 = vld [vmem:[#allocation2 + $0x788] sm:$0xff]  ;;  %v510_v5 = vld [vmem:[#allocation2 + $0x798] sm:$0xff]  ;;  %v507_v6 = vld [vmem:[#allocation2 + $0x780] sm:$0xff] }
  0x3c   : > { %546 = vmatpush1.msra.mxu0 %v299_v46  ;;  %617 = vmatpush1.msra.mxu1 %v301_v47  ;;  %v509_v7 = vld [vmem:[#allocation2 + $0x790] sm:$0xff]  ;;  %v500_v8 = vld [vmem:[#allocation2 + $0x748] sm:$0xff]  ;;  %v502_v9 = vld [vmem:[#allocation2 + $0x758] sm:$0xff] }
  0x3d   : > { %547 = vmatprep.subr.mxu0 %v292_v48  ;;  %618 = vmatprep.subr.mxu1 %v294_v49  ;;  %v499_v10 = vld [vmem:[#allocation2 + $0x740] sm:$0xff]  ;;  %v501_v11 = vld [vmem:[#allocation2 + $0x750] sm:$0xff]  ;;  %v492_v12 = vld [vmem:[#allocation2 + $0x708] sm:$0xff] }
  0x3e   : > { %548 = vmatpush1.msra.mxu0 %v291_v50  ;;  %619 = vmatpush1.msra.mxu1 %v293_v51  ;;  %v494_v13 = vld [vmem:[#allocation2 + $0x718] sm:$0xff]  ;;  %v491_v14 = vld [vmem:[#allocation2 + $0x700] sm:$0xff]  ;;  %v493_v15 = vld [vmem:[#allocation2 + $0x710] sm:$0xff] }
  0x3f   : > { %549 = vmatprep.subr.mxu0 %v284_v52  ;;  %620 = vmatprep.subr.mxu1 %v286_v53  ;;  %v484_v16 = vld [vmem:[#allocation2 + $0x6c8] sm:$0xff]  ;;  %v486_v17 = vld [vmem:[#allocation2 + $0x6d8] sm:$0xff]  ;;  %v483_v18 = vld [vmem:[#allocation2 + $0x6c0] sm:$0xff] }
  0x40   : > { %550 = vmatpush1.msra.mxu0 %v283_v54  ;;  %621 = vmatpush1.msra.mxu1 %v285_v55  ;;  %v485_v19 = vld [vmem:[#allocation2 + $0x6d0] sm:$0xff]  ;;  %v476_v20 = vld [vmem:[#allocation2 + $0x688] sm:$0xff]  ;;  %v478_v21 = vld [vmem:[#allocation2 + $0x698] sm:$0xff] }
  0x41   : > { %551 = vmatprep.subr.mxu0 %v276_v56  ;;  %622 = vmatprep.subr.mxu1 %v278_v57  ;;  %v475_v22 = vld [vmem:[#allocation2 + $0x680] sm:$0xff]  ;;  %v477_v23 = vld [vmem:[#allocation2 + $0x690] sm:$0xff]  ;;  %v468_v24 = vld [vmem:[#allocation2 + $0x648] sm:$0xff] }
  0x42   : > { %552 = vmatpush1.msra.mxu0 %v275_v58  ;;  %623 = vmatpush1.msra.mxu1 %v277_v59  ;;  %v470_v25 = vld [vmem:[#allocation2 + $0x658] sm:$0xff]  ;;  %v467_v26 = vld [vmem:[#allocation2 + $0x640] sm:$0xff]  ;;  %v469_v27 = vld [vmem:[#allocation2 + $0x650] sm:$0xff] }
  0x43   : > { %553 = vmatprep.subr.mxu0 %v268_v60  ;;  %624 = vmatprep.subr.mxu1 %v270_v61  ;;  %v460_v28 = vld [vmem:[#allocation2 + $0x608] sm:$0xff]  ;;  %v462_v29 = vld [vmem:[#allocation2 + $0x618] sm:$0xff]  ;;  %v459_v30 = vld [vmem:[#allocation2 + $0x600] sm:$0xff] }
  0x44   : > { %554 = vmatpush1.msra.mxu0 %v267_v62  ;;  %625 = vmatpush1.msra.mxu1 %v269_v63  ;;  %v461_v31 = vld [vmem:[#allocation2 + $0x610] sm:$0xff]  ;;  %v452_v32 = vld [vmem:[#allocation2 + $0x5c8] sm:$0xff]  ;;  %v454_v33 = vld [vmem:[#allocation2 + $0x5d8] sm:$0xff] }
  0x45   : > { %555 = vmatprep.subr.mxu0 %v516_v0  ;;  %626 = vmatprep.subr.mxu1 %v518_v1  ;;  %v451_v34 = vld [vmem:[#allocation2 + $0x5c0] sm:$0xff]  ;;  %v453_v35 = vld [vmem:[#allocation2 + $0x5d0] sm:$0xff]  ;;  %v444_v36 = vld [vmem:[#allocation2 + $0x588] sm:$0xff] }
  0x46   : > { %556 = vmatpush2.msra.mxu0 %v515_v2  ;;  %627 = vmatpush2.msra.mxu1 %v517_v3  ;;  %v446_v37 = vld [vmem:[#allocation2 + $0x598] sm:$0xff]  ;;  %v443_v38 = vld [vmem:[#allocation2 + $0x580] sm:$0xff]  ;;  %v445_v39 = vld [vmem:[#allocation2 + $0x590] sm:$0xff] }
  0x47   : > { %557 = vmatprep.subr.mxu0 %v508_v4  ;;  %628 = vmatprep.subr.mxu1 %v510_v5  ;;  %v436_v40 = vld [vmem:[#allocation2 + $0x548] sm:$0xff]  ;;  %v438_v41 = vld [vmem:[#allocation2 + $0x558] sm:$0xff]  ;;  %v435_v42 = vld [vmem:[#allocation2 + $0x540] sm:$0xff] }
  0x48   : > { %558 = vmatpush2.msra.mxu0 %v507_v6  ;;  %629 = vmatpush2.msra.mxu1 %v509_v7  ;;  %v437_v43 = vld [vmem:[#allocation2 + $0x550] sm:$0xff]  ;;  %v428_v44 = vld [vmem:[#allocation2 + $0x508] sm:$0xff]  ;;  %v430_v45 = vld [vmem:[#allocation2 + $0x518] sm:$0xff] }
  0x49   : > { %559 = vmatprep.subr.mxu0 %v500_v8  ;;  %630 = vmatprep.subr.mxu1 %v502_v9  ;;  %v427_v46 = vld [vmem:[#allocation2 + $0x500] sm:$0xff]  ;;  %v429_v47 = vld [vmem:[#allocation2 + $0x510] sm:$0xff]  ;;  %v420_v48 = vld [vmem:[#allocation2 + $0x4c8] sm:$0xff] }
  0x4a   : > { %560 = vmatpush2.msra.mxu0 %v499_v10  ;;  %631 = vmatpush2.msra.mxu1 %v501_v11  ;;  %v422_v49 = vld [vmem:[#allocation2 + $0x4d8] sm:$0xff]  ;;  %v419_v50 = vld [vmem:[#allocation2 + $0x4c0] sm:$0xff]  ;;  %v421_v51 = vld [vmem:[#allocation2 + $0x4d0] sm:$0xff] }
  0x4b   : > { %561 = vmatprep.subr.mxu0 %v492_v12  ;;  %632 = vmatprep.subr.mxu1 %v494_v13  ;;  %v412_v52 = vld [vmem:[#allocation2 + $0x488] sm:$0xff]  ;;  %v414_v53 = vld [vmem:[#allocation2 + $0x498] sm:$0xff]  ;;  %v411_v54 = vld [vmem:[#allocation2 + $0x480] sm:$0xff] }
  0x4c   : > { %562 = vmatpush2.msra.mxu0 %v491_v14  ;;  %633 = vmatpush2.msra.mxu1 %v493_v15  ;;  %v413_v55 = vld [vmem:[#allocation2 + $0x490] sm:$0xff]  ;;  %v404_v56 = vld [vmem:[#allocation2 + $0x448] sm:$0xff]  ;;  %v406_v57 = vld [vmem:[#allocation2 + $0x458] sm:$0xff] }
  0x4d   : > { %563 = vmatprep.subr.mxu0 %v484_v16  ;;  %634 = vmatprep.subr.mxu1 %v486_v17  ;;  %v403_v58 = vld [vmem:[#allocation2 + $0x440] sm:$0xff]  ;;  %v405_v59 = vld [vmem:[#allocation2 + $0x450] sm:$0xff]  ;;  %v396_v60 = vld [vmem:[#allocation2 + $0x408] sm:$0xff] }
  0x4e   : > { %564 = vmatpush2.msra.mxu0 %v483_v18  ;;  %635 = vmatpush2.msra.mxu1 %v485_v19  ;;  %v398_v61 = vld [vmem:[#allocation2 + $0x418] sm:$0xff]  ;;  %v395_v62 = vld [vmem:[#allocation2 + $0x400] sm:$0xff]  ;;  %v7460_v63 = vld [vmem:[%s264_s26 + $0x8] sm:$0xff] }
  0x4f   : > { %565 = vmatprep.subr.mxu0 %v476_v20  ;;  %636 = vmatprep.subr.mxu1 %v478_v21  ;;  %v397_v0 = vld [vmem:[#allocation2 + $0x410] sm:$0xff]  ;;  %v7462_v1 = vld [vmem:[%s264_s26] sm:$0xff]  ;;  %v392_v2 = vld [vmem:[#allocation2 + $0x3e8] sm:$0xff]  ;;  %s7169_s26 = sshll.u32 %s7405_s25, 10  ;;  %s7348_s25 = smov [#allocation5]  }
  0x50   : > { %566 = vmatpush2.msra.mxu0 %v475_v22  ;;  %637 = vmatpush2.msra.mxu1 %v477_v23  ;;  %v394_v3 = vld [vmem:[#allocation2 + $0x3f8] sm:$0xff]  ;;  %v391_v4 = vld [vmem:[#allocation2 + $0x3e0] sm:$0xff]  ;;  %v393_v5 = vld [vmem:[#allocation2 + $0x3f0] sm:$0xff]  ;;  %s9145_s18 = scalar_lea.hbm %s9188_s6, %s7169_s26 }
  0x51   : > { %567 = vmatprep.subr.mxu0 %v468_v24  ;;  %638 = vmatprep.subr.mxu1 %v470_v25  ;;  %v384_v6 = vld [vmem:[#allocation2 + $0x3a8] sm:$0xff]  ;;  %v386_v7 = vld [vmem:[#allocation2 + $0x3b8] sm:$0xff]  ;;  %v383_v8 = vld [vmem:[#allocation2 + $0x3a0] sm:$0xff] }
  0x52   : > { %568 = vmatpush2.msra.mxu0 %v467_v26  ;;  %639 = vmatpush2.msra.mxu1 %v469_v27  ;;  %v385_v9 = vld [vmem:[#allocation2 + $0x3b0] sm:$0xff]  ;;  %v376_v10 = vld [vmem:[#allocation2 + $0x368] sm:$0xff]  ;;  %v378_v11 = vld [vmem:[#allocation2 + $0x378] sm:$0xff] }
  0x53   : > { %569 = vmatprep.subr.mxu0 %v460_v28  ;;  %640 = vmatprep.subr.mxu1 %v462_v29  ;;  %v375_v12 = vld [vmem:[#allocation2 + $0x360] sm:$0xff]  ;;  %v377_v13 = vld [vmem:[#allocation2 + $0x370] sm:$0xff]  ;;  %v368_v14 = vld [vmem:[#allocation2 + $0x328] sm:$0xff] }
  0x54   : > { %570 = vmatpush2.msra.mxu0 %v459_v30  ;;  %641 = vmatpush2.msra.mxu1 %v461_v31  ;;  %v370_v15 = vld [vmem:[#allocation2 + $0x338] sm:$0xff]  ;;  %v367_v16 = vld [vmem:[#allocation2 + $0x320] sm:$0xff]  ;;  %v369_v17 = vld [vmem:[#allocation2 + $0x330] sm:$0xff] }
  0x55   : > { %571 = vmatprep.subr.mxu0 %v452_v32  ;;  %642 = vmatprep.subr.mxu1 %v454_v33  ;;  %v360_v18 = vld [vmem:[#allocation2 + $0x2e8] sm:$0xff]  ;;  %v362_v19 = vld [vmem:[#allocation2 + $0x2f8] sm:$0xff]  ;;  %v359_v20 = vld [vmem:[#allocation2 + $0x2e0] sm:$0xff] }
  0x56   : > { %572 = vmatpush2.msra.mxu0 %v451_v34  ;;  %643 = vmatpush2.msra.mxu1 %v453_v35  ;;  %v361_v21 = vld [vmem:[#allocation2 + $0x2f0] sm:$0xff]  ;;  %v352_v22 = vld [vmem:[#allocation2 + $0x2a8] sm:$0xff]  ;;  %v354_v23 = vld [vmem:[#allocation2 + $0x2b8] sm:$0xff] }
  0x57   : > { %573 = vmatprep.subr.mxu0 %v444_v36  ;;  %644 = vmatprep.subr.mxu1 %v446_v37  ;;  %v351_v24 = vld [vmem:[#allocation2 + $0x2a0] sm:$0xff]  ;;  %v353_v25 = vld [vmem:[#allocation2 + $0x2b0] sm:$0xff]  ;;  %v344_v26 = vld [vmem:[#allocation2 + $0x268] sm:$0xff] }
  0x58   : > { %574 = vmatpush2.msra.mxu0 %v443_v38  ;;  %645 = vmatpush2.msra.mxu1 %v445_v39  ;;  %v346_v27 = vld [vmem:[#allocation2 + $0x278] sm:$0xff]  ;;  %v343_v28 = vld [vmem:[#allocation2 + $0x260] sm:$0xff]  ;;  %v345_v29 = vld [vmem:[#allocation2 + $0x270] sm:$0xff] }
  0x59   : > { %575 = vmatprep.subr.mxu0 %v436_v40  ;;  %646 = vmatprep.subr.mxu1 %v438_v41  ;;  %v336_v30 = vld [vmem:[#allocation2 + $0x228] sm:$0xff]  ;;  %v338_v31 = vld [vmem:[#allocation2 + $0x238] sm:$0xff]  ;;  %v335_v32 = vld [vmem:[#allocation2 + $0x220] sm:$0xff] }
  0x5a   : > { %576 = vmatpush2.msra.mxu0 %v435_v42  ;;  %647 = vmatpush2.msra.mxu1 %v437_v43  ;;  %v337_v33 = vld [vmem:[#allocation2 + $0x230] sm:$0xff]  ;;  %v328_v34 = vld [vmem:[#allocation2 + $0x1e8] sm:$0xff]  ;;  %v330_v35 = vld [vmem:[#allocation2 + $0x1f8] sm:$0xff] }
  0x5b   : > { %577 = vmatprep.subr.mxu0 %v428_v44  ;;  %648 = vmatprep.subr.mxu1 %v430_v45  ;;  %v327_v36 = vld [vmem:[#allocation2 + $0x1e0] sm:$0xff]  ;;  %v329_v37 = vld [vmem:[#allocation2 + $0x1f0] sm:$0xff]  ;;  %v320_v38 = vld [vmem:[#allocation2 + $0x1a8] sm:$0xff] }
  0x5c   : > { %578 = vmatpush2.msra.mxu0 %v427_v46  ;;  %649 = vmatpush2.msra.mxu1 %v429_v47  ;;  %v322_v39 = vld [vmem:[#allocation2 + $0x1b8] sm:$0xff]  ;;  %v319_v40 = vld [vmem:[#allocation2 + $0x1a0] sm:$0xff]  ;;  %v321_v41 = vld [vmem:[#allocation2 + $0x1b0] sm:$0xff] }
  0x5d   : > { %579 = vmatprep.subr.mxu0 %v420_v48  ;;  %650 = vmatprep.subr.mxu1 %v422_v49  ;;  %v312_v42 = vld [vmem:[#allocation2 + $0x168] sm:$0xff]  ;;  %v314_v43 = vld [vmem:[#allocation2 + $0x178] sm:$0xff]  ;;  %v311_v44 = vld [vmem:[#allocation2 + $0x160] sm:$0xff] }
  0x5e   : > { %580 = vmatpush2.msra.mxu0 %v419_v50  ;;  %651 = vmatpush2.msra.mxu1 %v421_v51  ;;  %v313_v45 = vld [vmem:[#allocation2 + $0x170] sm:$0xff]  ;;  %v304_v46 = vld [vmem:[#allocation2 + $0x128] sm:$0xff]  ;;  %v306_v47 = vld [vmem:[#allocation2 + $0x138] sm:$0xff] }
  0x5f   : > { %581 = vmatprep.subr.mxu0 %v412_v52  ;;  %652 = vmatprep.subr.mxu1 %v414_v53  ;;  %v303_v48 = vld [vmem:[#allocation2 + $0x120] sm:$0xff]  ;;  %v305_v49 = vld [vmem:[#allocation2 + $0x130] sm:$0xff]  ;;  %v296_v50 = vld [vmem:[#allocation2 + $0xe8] sm:$0xff] }
  0x60   : > { %582 = vmatpush2.msra.mxu0 %v411_v54  ;;  %653 = vmatpush2.msra.mxu1 %v413_v55  ;;  %v298_v51 = vld [vmem:[#allocation2 + $0xf8] sm:$0xff]  ;;  %v295_v52 = vld [vmem:[#allocation2 + $0xe0] sm:$0xff]  ;;  %v297_v53 = vld [vmem:[#allocation2 + $0xf0] sm:$0xff] }
  0x61   : > { %583 = vmatprep.subr.mxu0 %v404_v56  ;;  %654 = vmatprep.subr.mxu1 %v406_v57  ;;  %v288_v54 = vld [vmem:[#allocation2 + $0xa8] sm:$0xff]  ;;  %v290_v55 = vld [vmem:[#allocation2 + $0xb8] sm:$0xff]  ;;  %v287_v56 = vld [vmem:[#allocation2 + $0xa0] sm:$0xff] }
  0x62   : > { %584 = vmatpush2.msra.mxu0 %v403_v58  ;;  %655 = vmatpush2.msra.mxu1 %v405_v59  ;;  %v289_v57 = vld [vmem:[#allocation2 + $0xb0] sm:$0xff]  ;;  %v280_v58 = vld [vmem:[#allocation2 + $0x68] sm:$0xff]  ;;  %v282_v59 = vld [vmem:[#allocation2 + $0x78] sm:$0xff] }
  0x63   : > { %585 = vmatprep.subr.mxu0 %v396_v60  ;;  %656 = vmatprep.subr.mxu1 %v398_v61  ;;  %v279_v60 = vld [vmem:[#allocation2 + $0x60] sm:$0xff]  ;;  %v281_v61 = vld [vmem:[#allocation2 + $0x70] sm:$0xff] }
  0x64   : > { %586 = vmatpush2.msra.mxu0 %v395_v62  ;;  %587 = vmatprep.mubr.f32.mxu0 %v7460_v63  ;;  %v272_v62 = vld [vmem:[#allocation2 + $0x28] sm:$0xff] }
  0x65   : > { %657 = vmatpush2.msra.mxu1 %v397_v0  ;;  %658 = vmatprep.mubr.f32.mxu1 %v7460_v63  ;;  %v274_v0 = vld [vmem:[#allocation2 + $0x38] sm:$0xff] }
  0x66   : > { %588 = vmatmul.mubr.f32.vlgmr.msra.gmra.mxu0 %v7462_v1  ;;  %659 = vmatmul.mubr.f32.vlgmr.msra.gmra.mxu1 %v7462_v1 }
  0x67   : > { %665 = vmatprep.subr.mxu0 %v392_v2  ;;  %736 = vmatprep.subr.mxu1 %v394_v3  ;;  %v271_v2 = vld [vmem:[#allocation2 + $0x20] sm:$0xff]  ;;  %v273_v3 = vld [vmem:[#allocation2 + $0x30] sm:$0xff] }
  0x68   : > { %666 = vmatpush1.msra.mxu0 %v391_v4  ;;  %737 = vmatpush1.msra.mxu1 %v393_v5  ;;  %v520_v4 = vld [vmem:[#allocation2 + $0x7e8] sm:$0xff]  ;;  %v522_v5 = vld [vmem:[#allocation2 + $0x7f8] sm:$0xff] }
  0x69   : > { %667 = vmatprep.subr.mxu0 %v384_v6  ;;  %738 = vmatprep.subr.mxu1 %v386_v7  ;;  %v519_v6 = vld [vmem:[#allocation2 + $0x7e0] sm:$0xff]  ;;  %v521_v7 = vld [vmem:[#allocation2 + $0x7f0] sm:$0xff] }
  0x6a   : > { %668 = vmatpush1.msra.mxu0 %v383_v8  ;;  %739 = vmatpush1.msra.mxu1 %v385_v9  ;;  %v512_v8 = vld [vmem:[#allocation2 + $0x7a8] sm:$0xff]  ;;  %v514_v9 = vld [vmem:[#allocation2 + $0x7b8] sm:$0xff] }
  0x6b   : > { %669 = vmatprep.subr.mxu0 %v376_v10  ;;  %740 = vmatprep.subr.mxu1 %v378_v11  ;;  %v511_v10 = vld [vmem:[#allocation2 + $0x7a0] sm:$0xff]  ;;  %v513_v11 = vld [vmem:[#allocation2 + $0x7b0] sm:$0xff] }
  0x6c   : > { %670 = vmatpush1.msra.mxu0 %v375_v12  ;;  %741 = vmatpush1.msra.mxu1 %v377_v13  ;;  %v504_v12 = vld [vmem:[#allocation2 + $0x768] sm:$0xff]  ;;  %v506_v13 = vld [vmem:[#allocation2 + $0x778] sm:$0xff] }
  0x6d   : > { %671 = vmatprep.subr.mxu0 %v368_v14  ;;  %742 = vmatprep.subr.mxu1 %v370_v15  ;;  %v503_v14 = vld [vmem:[#allocation2 + $0x760] sm:$0xff]  ;;  %v505_v15 = vld [vmem:[#allocation2 + $0x770] sm:$0xff] }
  0x6e   : > { %672 = vmatpush1.msra.mxu0 %v367_v16  ;;  %743 = vmatpush1.msra.mxu1 %v369_v17  ;;  %v496_v16 = vld [vmem:[#allocation2 + $0x728] sm:$0xff]  ;;  %v498_v17 = vld [vmem:[#allocation2 + $0x738] sm:$0xff] }
  0x6f   : > { %673 = vmatprep.subr.mxu0 %v360_v18  ;;  %744 = vmatprep.subr.mxu1 %v362_v19  ;;  %v495_v18 = vld [vmem:[#allocation2 + $0x720] sm:$0xff]  ;;  %v497_v19 = vld [vmem:[#allocation2 + $0x730] sm:$0xff] }
  0x70   : > { %674 = vmatpush1.msra.mxu0 %v359_v20  ;;  %745 = vmatpush1.msra.mxu1 %v361_v21  ;;  %v488_v20 = vld [vmem:[#allocation2 + $0x6e8] sm:$0xff]  ;;  %v490_v21 = vld [vmem:[#allocation2 + $0x6f8] sm:$0xff] }
  0x71   : > { %675 = vmatprep.subr.mxu0 %v352_v22  ;;  %746 = vmatprep.subr.mxu1 %v354_v23  ;;  %v487_v22 = vld [vmem:[#allocation2 + $0x6e0] sm:$0xff]  ;;  %v489_v23 = vld [vmem:[#allocation2 + $0x6f0] sm:$0xff] }
  0x72   : > { %676 = vmatpush1.msra.mxu0 %v351_v24  ;;  %747 = vmatpush1.msra.mxu1 %v353_v25  ;;  %v480_v24 = vld [vmem:[#allocation2 + $0x6a8] sm:$0xff]  ;;  %v482_v25 = vld [vmem:[#allocation2 + $0x6b8] sm:$0xff] }
  0x73   : > { %677 = vmatprep.subr.mxu0 %v344_v26  ;;  %748 = vmatprep.subr.mxu1 %v346_v27  ;;  %v479_v26 = vld [vmem:[#allocation2 + $0x6a0] sm:$0xff]  ;;  %v481_v27 = vld [vmem:[#allocation2 + $0x6b0] sm:$0xff] }
  0x74   : > { %678 = vmatpush1.msra.mxu0 %v343_v28  ;;  %749 = vmatpush1.msra.mxu1 %v345_v29  ;;  %v472_v28 = vld [vmem:[#allocation2 + $0x668] sm:$0xff]  ;;  %v474_v29 = vld [vmem:[#allocation2 + $0x678] sm:$0xff] }
  0x75   : > { %679 = vmatprep.subr.mxu0 %v336_v30  ;;  %750 = vmatprep.subr.mxu1 %v338_v31  ;;  %v471_v30 = vld [vmem:[#allocation2 + $0x660] sm:$0xff]  ;;  %v473_v31 = vld [vmem:[#allocation2 + $0x670] sm:$0xff] }
  0x76   : > { %680 = vmatpush1.msra.mxu0 %v335_v32  ;;  %751 = vmatpush1.msra.mxu1 %v337_v33  ;;  %v464_v32 = vld [vmem:[#allocation2 + $0x628] sm:$0xff]  ;;  %v466_v33 = vld [vmem:[#allocation2 + $0x638] sm:$0xff] }
  0x77   : > { %681 = vmatprep.subr.mxu0 %v328_v34  ;;  %752 = vmatprep.subr.mxu1 %v330_v35  ;;  %v463_v34 = vld [vmem:[#allocation2 + $0x620] sm:$0xff]  ;;  %v465_v35 = vld [vmem:[#allocation2 + $0x630] sm:$0xff] }
  0x78   : > { %682 = vmatpush1.msra.mxu0 %v327_v36  ;;  %753 = vmatpush1.msra.mxu1 %v329_v37  ;;  %v456_v36 = vld [vmem:[#allocation2 + $0x5e8] sm:$0xff]  ;;  %v458_v37 = vld [vmem:[#allocation2 + $0x5f8] sm:$0xff] }
  0x79   : > { %683 = vmatprep.subr.mxu0 %v320_v38  ;;  %754 = vmatprep.subr.mxu1 %v322_v39  ;;  %v455_v38 = vld [vmem:[#allocation2 + $0x5e0] sm:$0xff]  ;;  %v457_v39 = vld [vmem:[#allocation2 + $0x5f0] sm:$0xff] }
  0x7a   : > { %684 = vmatpush1.msra.mxu0 %v319_v40  ;;  %755 = vmatpush1.msra.mxu1 %v321_v41  ;;  %v448_v40 = vld [vmem:[#allocation2 + $0x5a8] sm:$0xff]  ;;  %v450_v41 = vld [vmem:[#allocation2 + $0x5b8] sm:$0xff] }
  0x7b   : > { %685 = vmatprep.subr.mxu0 %v312_v42  ;;  %756 = vmatprep.subr.mxu1 %v314_v43  ;;  %v447_v42 = vld [vmem:[#allocation2 + $0x5a0] sm:$0xff]  ;;  %v449_v43 = vld [vmem:[#allocation2 + $0x5b0] sm:$0xff] }
  0x7c   : > { %686 = vmatpush1.msra.mxu0 %v311_v44  ;;  %757 = vmatpush1.msra.mxu1 %v313_v45  ;;  %v440_v44 = vld [vmem:[#allocation2 + $0x568] sm:$0xff]  ;;  %v442_v45 = vld [vmem:[#allocation2 + $0x578] sm:$0xff] }
  0x7d   : > { %687 = vmatprep.subr.mxu0 %v304_v46  ;;  %758 = vmatprep.subr.mxu1 %v306_v47  ;;  %v439_v46 = vld [vmem:[#allocation2 + $0x560] sm:$0xff]  ;;  %v441_v47 = vld [vmem:[#allocation2 + $0x570] sm:$0xff] }
  0x7e   : > { %688 = vmatpush1.msra.mxu0 %v303_v48  ;;  %759 = vmatpush1.msra.mxu1 %v305_v49  ;;  %v432_v48 = vld [vmem:[#allocation2 + $0x528] sm:$0xff]  ;;  %v434_v49 = vld [vmem:[#allocation2 + $0x538] sm:$0xff] }
  0x7f   : > { %689 = vmatprep.subr.mxu0 %v296_v50  ;;  %760 = vmatprep.subr.mxu1 %v298_v51  ;;  %v431_v50 = vld [vmem:[#allocation2 + $0x520] sm:$0xff]  ;;  %v433_v51 = vld [vmem:[#allocation2 + $0x530] sm:$0xff] }
  0x80   : > { %690 = vmatpush1.msra.mxu0 %v295_v52  ;;  %761 = vmatpush1.msra.mxu1 %v297_v53  ;;  %v424_v52 = vld [vmem:[#allocation2 + $0x4e8] sm:$0xff]  ;;  %v426_v53 = vld [vmem:[#allocation2 + $0x4f8] sm:$0xff] }
  0x81   : > { %691 = vmatprep.subr.mxu0 %v288_v54  ;;  %762 = vmatprep.subr.mxu1 %v290_v55  ;;  %v423_v54 = vld [vmem:[#allocation2 + $0x4e0] sm:$0xff]  ;;  %v425_v55 = vld [vmem:[#allocation2 + $0x4f0] sm:$0xff] }
  0x82   : > { %692 = vmatpush1.msra.mxu0 %v287_v56  ;;  %763 = vmatpush1.msra.mxu1 %v289_v57  ;;  %v416_v56 = vld [vmem:[#allocation2 + $0x4a8] sm:$0xff]  ;;  %v418_v57 = vld [vmem:[#allocation2 + $0x4b8] sm:$0xff] }
  0x83   : > { %693 = vmatprep.subr.mxu0 %v280_v58  ;;  %764 = vmatprep.subr.mxu1 %v282_v59  ;;  %v415_v58 = vld [vmem:[#allocation2 + $0x4a0] sm:$0xff]  ;;  %v417_v59 = vld [vmem:[#allocation2 + $0x4b0] sm:$0xff] }
  0x84   : > { %694 = vmatpush1.msra.mxu0 %v279_v60  ;;  %765 = vmatpush1.msra.mxu1 %v281_v61  ;;  %v408_v60 = vld [vmem:[#allocation2 + $0x468] sm:$0xff]  ;;  %v410_v61 = vld [vmem:[#allocation2 + $0x478] sm:$0xff] }
  0x85   : > { %695 = vmatprep.subr.mxu0 %v272_v62  ;;  %766 = vmatprep.subr.mxu1 %v274_v0  ;;  %v407_v62 = vld [vmem:[#allocation2 + $0x460] sm:$0xff]  ;;  %v409_v0 = vld [vmem:[#allocation2 + $0x470] sm:$0xff] }
  0x86   : > { %696 = vmatpush1.msra.mxu0 %v271_v2  ;;  %767 = vmatpush1.msra.mxu1 %v273_v3  ;;  %v400_v2 = vld [vmem:[#allocation2 + $0x428] sm:$0xff]  ;;  %v402_v3 = vld [vmem:[#allocation2 + $0x438] sm:$0xff] }
  0x87   : > { %697 = vmatprep.subr.mxu0 %v520_v4  ;;  %768 = vmatprep.subr.mxu1 %v522_v5  ;;  %v399_v4 = vld [vmem:[#allocation2 + $0x420] sm:$0xff]  ;;  %v401_v5 = vld [vmem:[#allocation2 + $0x430] sm:$0xff] }
  0x88   : > { %698 = vmatpush2.msra.mxu0 %v519_v6  ;;  %769 = vmatpush2.msra.mxu1 %v521_v7 }
  0x89   : > { %699 = vmatprep.subr.mxu0 %v512_v8  ;;  %770 = vmatprep.subr.mxu1 %v514_v9 }
  0x8a   : > { %700 = vmatpush2.msra.mxu0 %v511_v10  ;;  %771 = vmatpush2.msra.mxu1 %v513_v11  ;;  %v9191_v10 = vmov 0.0  }
  0x8b   : > { %701 = vmatprep.subr.mxu0 %v504_v12  ;;  %772 = vmatprep.subr.mxu1 %v506_v13 }
  0x8c   : > { %702 = vmatpush2.msra.mxu0 %v503_v14  ;;  %773 = vmatpush2.msra.mxu1 %v505_v15  ;;  %v832_v15 = vlaneseq }
  0x8d   : > { %703 = vmatprep.subr.mxu0 %v496_v16  ;;  %774 = vmatprep.subr.mxu1 %v498_v17 }
  0x8e   : > { %704 = vmatpush2.msra.mxu0 %v495_v18  ;;  %775 = vmatpush2.msra.mxu1 %v497_v19  ;;  %v7592_v18 = vshrl.u32 %v832_v15, 7 }
  0x8f   : > { %705 = vmatprep.subr.mxu0 %v488_v20  ;;  %776 = vmatprep.subr.mxu1 %v490_v21  ;;  %v7602_v21 = vand.u32 127, %v832_v15 }
  0x90   : > { %706 = vmatpush2.msra.mxu0 %v487_v22  ;;  %777 = vmatpush2.msra.mxu1 %v489_v23  ;;  %v7605_v22 = vsub.s32 1, %v7592_v18  ;;  %v7610_v23 = vld [vmem:[%s9184_s2 + $0x8] sm:$0xff] }
  0x91   : > { %707 = vmatprep.subr.mxu0 %v480_v24  ;;  %778 = vmatprep.subr.mxu1 %v482_v25  ;;  %vm900_vm0 = vcmp.lt.s32.totalorder %v7602_v21, 32  ;;  %vm834_vm2 = vcmp.lt.s32.totalorder %v7602_v21, 33  ;;  %vm1542_vm3 = vcmp.lt.s32.totalorder %v7602_v21, 31  ;;  %vm1904_vm4 = vcmp.lt.s32.totalorder %v7602_v21, 1 }
  0x92   : > { %708 = vmatpush2.msra.mxu0 %v479_v26  ;;  %779 = vmatpush2.msra.mxu1 %v481_v27  ;;  %v7623_v26 = vrot.slane %v7610_v23, %v7605_v22  ;;  %vm2563_vm5 = vcmp.lt.s32.totalorder %v7602_v21, 127  ;;  %vm2925_vm6 = vcmp.lt.s32.totalorder %v7602_v21, 97  ;;  %vm3287_vm7 = vcmp.lt.s32.totalorder %v7602_v21, 96 }
  0x93   : > { %709 = vmatprep.subr.mxu0 %v472_v28  ;;  %780 = vmatprep.subr.mxu1 %v474_v29  ;;  %vm3649_vm8 = vcmp.lt.s32.totalorder %v7602_v21, 95 }
  0x94   : > { %710 = vmatpush2.msra.mxu0 %v471_v30  ;;  %781 = vmatpush2.msra.mxu1 %v473_v31  ;;  %9261 = vst [vmem:[#allocation9_spill] sm:$0xff] %v7623_v26 }
  0x95   : > { %711 = vmatprep.subr.mxu0 %v464_v32  ;;  %782 = vmatprep.subr.mxu1 %v466_v33  ;;  %v7644_v32 = vld [vmem:[%s9184_s2 + $0x10] sm:$0xff]  ;;  %v7649_v33 = vld [vmem:[%s9184_s2 + $0x18] sm:$0xff] }
  0x96   : > { %712 = vmatpush2.msra.mxu0 %v463_v34  ;;  %783 = vmatpush2.msra.mxu1 %v465_v35  ;;  %v7653_v34 = vrot.slane %v7649_v33, %v7605_v22  ;;  %v7657_v35 = vrot.slane %v7644_v32, %v7605_v22 }
  0x97   : > { %713 = vmatprep.subr.mxu0 %v456_v36  ;;  %784 = vmatprep.subr.mxu1 %v458_v37 }
  0x98   : > { %714 = vmatpush2.msra.mxu0 %v455_v38  ;;  %785 = vmatpush2.msra.mxu1 %v457_v39  ;;  %9263 = vst [vmem:[#allocation11_spill] sm:$0xff] %v7653_v34  ;;  %9264 = vst [vmem:[#allocation12_spill] sm:$0xff] %v7657_v35 }
  0x99   : > { %715 = vmatprep.subr.mxu0 %v448_v40  ;;  %786 = vmatprep.subr.mxu1 %v450_v41  ;;  %v7679_v41 = vld [vmem:[%s9185_s3 + $0x8] sm:$0xff] }
  0x9a   : > { %716 = vmatpush2.msra.mxu0 %v447_v42  ;;  %787 = vmatpush2.msra.mxu1 %v449_v43  ;;  %v807_v42 = vld [vmem:[%s9187_s5] sm:$0xff]  ;;  %v7344_v43 = vmov 0  }
  0x9b   : > { %717 = vmatprep.subr.mxu0 %v440_v44  ;;  %788 = vmatprep.subr.mxu1 %v442_v45  ;;  %v7345_v44 = vmov 1  }
  0x9c   : > { %718 = vmatpush2.msra.mxu0 %v439_v46  ;;  %789 = vmatpush2.msra.mxu1 %v441_v47 }
  0x9d   : > { %719 = vmatprep.subr.mxu0 %v432_v48  ;;  %790 = vmatprep.subr.mxu1 %v434_v49 }
  0x9e   : > { %720 = vmatpush2.msra.mxu0 %v431_v50  ;;  %791 = vmatpush2.msra.mxu1 %v433_v51 }
  0x9f   : > { %721 = vmatprep.subr.mxu0 %v424_v52  ;;  %792 = vmatprep.subr.mxu1 %v426_v53 }
  0xa0   : > { %722 = vmatpush2.msra.mxu0 %v423_v54  ;;  %793 = vmatpush2.msra.mxu1 %v425_v55 }
  0xa1   : > { %723 = vmatprep.subr.mxu0 %v416_v56  ;;  %794 = vmatprep.subr.mxu1 %v418_v57 }
  0xa2   : > { %724 = vmatpush2.msra.mxu0 %v415_v58  ;;  %795 = vmatpush2.msra.mxu1 %v417_v59 }
  0xa3   : > { %725 = vmatprep.subr.mxu0 %v408_v60  ;;  %796 = vmatprep.subr.mxu1 %v410_v61  ;;  %v7720_v61 = vsub.s32 0, %v7592_v18 }
  0xa4   : > { %726 = vmatpush2.msra.mxu0 %v407_v62  ;;  %797 = vmatpush2.msra.mxu1 %v409_v0  ;;  %v7725_v62 = vld [vmem:[%s9184_s2 + $0x38] sm:$0xff]  ;;  %v7730_v0 = vld [vmem:[%s9184_s2] sm:$0xff] }
  0xa5   : > { %727 = vmatprep.subr.mxu0 %v400_v2  ;;  %798 = vmatprep.subr.mxu1 %v402_v3  ;;  %v7751_v15 = vrot.slane %v7730_v0, %v7605_v22 }
  0xa6   : > { %728 = vmatpush2.msra.mxu0 %v399_v4  ;;  %729 = vmatprep.mubr.f32.mxu0 %v7460_v63  ;;  %v7737_v4 = vld [vmem:[%s9184_s2 + $0x20] sm:$0xff] }
  0xa7   : > { %799 = vmatpush2.msra.mxu1 %v401_v5  ;;  %800 = vmatprep.mubr.f32.mxu1 %v7460_v63  ;;  %v7742_v5 = vld [vmem:[%s9184_s2 + $0x30] sm:$0xff]  ;;  %9265 = vst [vmem:[#allocation13_spill] sm:$0xff] %v7751_v15 }
  0xa8   : > { %730 = vmatmul.mubr.f32.vlgmr.msra.gmra.mxu0 %v7462_v1  ;;  %801 = vmatmul.mubr.f32.vlgmr.msra.gmra.mxu1 %v7462_v1 }
  0xa9   : > { %1090 = vmatprep.mubr.f32.mxu1 %v9191_v10  ;;  %1019 = vmatprep.mubr.f32.mxu0 %v9191_v10 }
  0xaa   : > { %7235 = vset.pattern.permute.xlu0 %v7344_v43  ;;  %7236 = vset.pattern.permute.xlu1 %v7345_v44  ;;  %v7782_v43 = vrot.slane %v7610_v23, %v7720_v61 }
  0xac   : > { %9270 = vst [vmem:[#allocation18_spill] sm:$0xff] %v7782_v43 }
 0x126   : > { %v7472_v6 = vpop.f32.mrf.mxu0  ;;  %v7474_v7 = vpop.f32.mrf.mxu1 }
 0x127   : > { %888 = vrot.lane.b32.xlu0 %v7474_v7, %s7335_s28  ;;  %884 = vrot.lane.b32.xlu1 %v7472_v6, %s7335_s28 }
 0x128   : > { %v7492_v63 = vpop.f32.mrf.mxu0  ;;  %v7498_v1 = vpop.f32.mrf.mxu1 }
 0x12b   : > { %820 = vrot.lane.b32.xlu0 %v7474_v7, %s7336_s29  ;;  %816 = vrot.lane.b32.xlu1 %v7472_v6, %s7336_s29 }
 0x12f   : > { %1530 = vrot.lane.b32.xlu0 %v7474_v7, %s7337_s9  ;;  %1526 = vrot.lane.b32.xlu1 %v7472_v6, %s7337_s9 }
 0x133   : > { %1892 = vrot.lane.b32.xlu0 %v7474_v7, %s7338_s10  ;;  %1888 = vrot.lane.b32.xlu1 %v7472_v6, %s7338_s10 }
 0x137   : > { %2551 = vrot.lane.b32.xlu0 %v7474_v7, %s7339_s11  ;;  %886 = vrot.lane.b32.xlu1 %v7492_v63, %s7335_s28 }
 0x13b   : > { %2547 = vrot.lane.b32.xlu0 %v7472_v6, %s7339_s11  ;;  %822 = vrot.lane.b32.xlu1 %v7498_v1, %s7336_s29 }
 0x13f   : > { %890 = vrot.lane.b32.xlu0 %v7498_v1, %s7335_s28  ;;  %1532 = vrot.lane.b32.xlu1 %v7498_v1, %s7337_s9 }
 0x143   : > { %818 = vrot.lane.b32.xlu0 %v7492_v63, %s7336_s29  ;;  %1894 = vrot.lane.b32.xlu1 %v7498_v1, %s7338_s10 }
 0x147   : > { %1528 = vrot.lane.b32.xlu0 %v7492_v63, %s7337_s9  ;;  %2549 = vrot.lane.b32.xlu1 %v7492_v63, %s7339_s11 }
 0x14b   : > { %1890 = vrot.lane.b32.xlu0 %v7492_v63, %s7338_s10 }
 0x14f   : > { %2553 = vrot.lane.b32.xlu0 %v7498_v1, %s7339_s11 }
 0x168   : > { %v7520_v8 = vpop.f32.mrf.mxu0  ;;  %v7522_v9 = vpop.f32.mrf.mxu1 }
 0x169   : > { %9260 = vst [vmem:[#allocation8_spill] sm:$0xff] %v7520_v8  ;;  %896 = vrot.lane.b32.xlu0 %v7522_v9, %s7335_s28  ;;  %892 = vrot.lane.b32.xlu1 %v7520_v8, %s7335_s28 }
 0x16a   : > { %v7542_v11 = vpop.f32.mrf.mxu0  ;;  %v7548_v12 = vpop.f32.mrf.mxu1 }
 0x16d   : > { %828 = vrot.lane.b32.xlu0 %v7522_v9, %s7336_s29  ;;  %824 = vrot.lane.b32.xlu1 %v7520_v8, %s7336_s29 }
 0x171   : > { %1538 = vrot.lane.b32.xlu0 %v7522_v9, %s7337_s9  ;;  %1534 = vrot.lane.b32.xlu1 %v7520_v8, %s7337_s9 }
 0x175   : > { %1900 = vrot.lane.b32.xlu0 %v7522_v9, %s7338_s10  ;;  %1896 = vrot.lane.b32.xlu1 %v7520_v8, %s7338_s10 }
 0x179   : > { %2555 = vrot.lane.b32.xlu1 %v7520_v8, %s7339_s11  ;;  %894 = vrot.lane.b32.xlu0 %v7542_v11, %s7335_s28 }
 0x17d   : > { %898 = vrot.lane.b32.xlu1 %v7548_v12, %s7335_s28  ;;  %2559 = vrot.lane.b32.xlu0 %v7522_v9, %s7339_s11 }
 0x181   : > { %830 = vrot.lane.b32.xlu1 %v7548_v12, %s7336_s29  ;;  %826 = vrot.lane.b32.xlu0 %v7542_v11, %s7336_s29 }
 0x185   : > { %2917 = vrot.lane.b32.xlu1 %v7520_v8, %s7341_s12  ;;  %2915 = vrot.lane.b32.xlu0 %v7498_v1, %s7341_s12 }
 0x189   : > { %1540 = vrot.lane.b32.xlu1 %v7548_v12, %s7337_s9  ;;  %1536 = vrot.lane.b32.xlu0 %v7542_v11, %s7337_s9 }
 0x18d   : > { %2911 = vrot.lane.b32.xlu1 %v7492_v63, %s7341_s12  ;;  %2913 = vrot.lane.b32.xlu0 %v7474_v7, %s7341_s12 }
 0x191   : > { %1902 = vrot.lane.b32.xlu1 %v7548_v12, %s7338_s10  ;;  %1898 = vrot.lane.b32.xlu0 %v7542_v11, %s7338_s10 }
 0x195   : > { %3279 = vrot.lane.b32.xlu1 %v7520_v8, %s7342_s13  ;;  %2909 = vrot.lane.b32.xlu0 %v7472_v6, %s7341_s12 }
 0x199   : > { %3273 = vrot.lane.b32.xlu1 %v7492_v63, %s7342_s13  ;;  %2921 = vrot.lane.b32.xlu0 %v7522_v9, %s7341_s12  ;;  %v889_v13 = vpop.permute.xlu0 %888  ;;  %v7582_v14 = vpop.permute.xlu1 %884 }
 0x19d   : > { %3641 = vrot.lane.b32.xlu1 %v7520_v8, %s9189_s14  ;;  %3277 = vrot.lane.b32.xlu0 %v7498_v1, %s7342_s13  ;;  %v7588_v16 = vpop.permute.xlu0 %820  ;;  %v7590_v17 = vpop.permute.xlu1 %816  ;;  %v7800_v8 = vrot.slane %v7730_v0, %v7720_v61 }
 0x19f   : > { %9271 = vst [vmem:[#allocation19_spill] sm:$0xff] %v7800_v8 }
 0x1a1   : > { %3635 = vrot.lane.b32.xlu1 %v7492_v63, %s9189_s14  ;;  %3275 = vrot.lane.b32.xlu0 %v7474_v7, %s7342_s13  ;;  %v7598_v19 = vpop.permute.xlu0 %1530  ;;  %v7600_v20 = vpop.permute.xlu1 %1526 }
 0x1a5   : > { %2561 = vrot.lane.b32.xlu1 %v7548_v12, %s7339_s11  ;;  %3271 = vrot.lane.b32.xlu0 %v7472_v6, %s7342_s13  ;;  %v7616_v24 = vpop.permute.xlu0 %1892  ;;  %v7618_v25 = vpop.permute.xlu1 %1888 }
 0x1a9   : > { %2557 = vrot.lane.b32.xlu1 %v7542_v11, %s7339_s11  ;;  %3283 = vrot.lane.b32.xlu0 %v7522_v9, %s7342_s13  ;;  %v7629_v27 = vpop.permute.xlu0 %2551  ;;  %v887_v28 = vpop.permute.xlu1 %886 }
 0x1aa   : > { %v907_v29 = vsel %vm900_vm0, %v7582_v14, %v887_v28  ;;  %v906_v37 = vsel %vm900_vm0, %v887_v28, %v889_v13  ;;  %v7755_v28 = vrot.slane %v7725_v62, %v7605_v22 }
 0x1ab   : > { %v942_v30 = vmul.f32 %v7623_v26, %v907_v29  ;;  %v943_v40 = vmul.f32 %v7657_v35, %v906_v37  ;;  %v7760_v29 = vrot.slane %v7644_v32, %v7720_v61  ;;  %v7768_v37 = vrot.slane %v7737_v4, %v7605_v22 }
 0x1ac   : > { %9266 = vst [vmem:[#allocation14_spill] sm:$0xff] %v7755_v28 }
 0x1ad   : > { %2923 = vrot.lane.b32.xlu1 %v7548_v12, %s7341_s12  ;;  %3639 = vrot.lane.b32.xlu0 %v7498_v1, %s9189_s14  ;;  %v7639_v31 = vpop.permute.xlu0 %2547  ;;  %v7695_v45 = vpop.permute.xlu1 %822  ;;  %9267 = vst [vmem:[#allocation15_spill] sm:$0xff] %v7760_v29 }
 0x1ae   : > { %9262 = vst [vmem:[#allocation10_spill] sm:$0xff] %v7639_v31  ;;  %985 = vmatprep.subr.mxu0 %v942_v30  ;;  %v7764_v30 = vrot.slane %v7649_v33, %v7720_v61 }
 0x1b0   : > { %9268 = vst [vmem:[#allocation16_spill] sm:$0xff] %v7764_v30 }
 0x1b1   : > { %2919 = vrot.lane.b32.xlu1 %v7542_v11, %s7341_s12  ;;  %3637 = vrot.lane.b32.xlu0 %v7474_v7, %s9189_s14  ;;  %v7663_v36 = vpop.permute.xlu0 %890  ;;  %v7697_v47 = vpop.permute.xlu1 %1532 }
 0x1b2   : > { %v905_v38 = vsel %vm900_vm0, %v889_v13, %v7663_v36  ;;  %v7747_v13 = vld [vmem:[%s9184_s2 + $0x28] sm:$0xff] }
 0x1b3   : > { %v944_v39 = vmul.f32 %v7653_v34, %v905_v38  ;;  %v7772_v38 = vrot.slane %v7742_v5, %v7605_v22 }
 0x1b5   : > { %3285 = vrot.lane.b32.xlu1 %v7548_v12, %s7342_s13  ;;  %3633 = vrot.lane.b32.xlu0 %v7472_v6, %s9189_s14  ;;  %v819_v46 = vpop.permute.xlu0 %818  ;;  %v7701_v49 = vpop.permute.xlu1 %1894 }
 0x1b6   : > { %1056 = vmatprep.subr.mxu1 %v944_v39 }
 0x1b7   : > { %1057 = vmatpush1.msra.mxu1 %v943_v40 }
 0x1b8   : > { %7077 = vmatmul.mubr.msk.f32.vlgmr.msra.gmra.mxu1 %vm951_vm1, %v7679_v41 }
 0x1b9   : > { %3281 = vrot.lane.b32.xlu1 %v7542_v11, %s7342_s13  ;;  %3645 = vrot.lane.b32.xlu0 %v7522_v9, %s9189_s14  ;;  %v7699_v48 = vpop.permute.xlu0 %1528  ;;  %v7705_v51 = vpop.permute.xlu1 %2549 }
 0x1ba   : > { %1232 = vmatprep.mubr.f32.mxu1 %v9191_v10 }
 0x1bd   : > { %3647 = vrot.lane.b32.xlu1 %v7548_v12, %s9189_s14  ;;  %3997 = vperm.xlu0 %7235, %v807_v42   ;;  %v7703_v50 = vpop.permute.xlu0 %1890 }
 0x1c1   : > { %3643 = vrot.lane.b32.xlu1 %v7542_v11, %s9189_s14  ;;  %v7707_v52 = vpop.permute.xlu0 %2553 }
 0x1c5   : > { %4009 = vperm.xlu1 %7236, %v807_v42   ;;  %v7778_v42 = vrot.slane %v7747_v13, %v7605_v22 }
 0x1db   : > { %v897_v53 = vpop.permute.xlu0 %896  ;;  %v893_v54 = vpop.permute.xlu1 %892 }
 0x1dc   : > { %v904_v22 = vsel %vm900_vm0, %v7663_v36, %v893_v54  ;;  %v841_v36 = vsel %vm834_vm2, %v7590_v17, %v819_v46 }
 0x1df   : > { %v829_v55 = vpop.permute.xlu0 %828  ;;  %v7709_v56 = vpop.permute.xlu1 %824 }
 0x1e3   : > { %v7711_v57 = vpop.permute.xlu0 %1538  ;;  %v7713_v58 = vpop.permute.xlu1 %1534 }
 0x1e7   : > { %v7715_v59 = vpop.permute.xlu0 %1900  ;;  %v7717_v60 = vpop.permute.xlu1 %1896 }
 0x1eb   : > { %v7732_v2 = vpop.permute.xlu1 %2555  ;;  %v895_v3 = vpop.permute.xlu0 %894 }
 0x1ec   : > { %v902_v44 = vsel %vm900_vm0, %v895_v3, %v897_v53  ;;  %v903_v10 = vsel %vm900_vm0, %v893_v54, %v895_v3 }
 0x1ed   : > { %v947_v54 = vmul.f32 %v7772_v38, %v902_v44  ;;  %v876_v44 = vmul.f32 %v7782_v43, %v841_v36  ;;  %v1547_v36 = vsel %vm1542_vm3, %v7598_v19, %v7697_v47 }
 0x1ef   : > { %v899_v39 = vpop.permute.xlu1 %898  ;;  %v7774_v40 = vpop.permute.xlu0 %2559 }
 0x1f0   : > { %9269 = vst [vmem:[#allocation17_spill] sm:$0xff] %v7774_v40  ;;  %v901_v35 = vsel %vm900_vm0, %v897_v53, %v899_v39  ;;  %v908_v26 = vsel %vm900_vm0, %v899_v39, %v7582_v14  ;;  %v839_v53 = vsel %vm834_vm2, %v7588_v16, %v7695_v45  ;;  %v840_v14 = vsel %vm834_vm2, %v819_v46, %v7588_v16 }
 0x1f1   : > { %v941_v34 = vmul.f32 %v7751_v15, %v908_v26  ;;  %v948_v40 = vmul.f32 %v7755_v28, %v901_v35  ;;  %v7814_v26 = vrot.slane %v7725_v62, %v7720_v61  ;;  %v7817_v35 = vsub.s32 2, %v7592_v18 }
 0x1f2   : > { %v7822_v39 = vrot.slane %v7747_v13, %v7720_v61  ;;  %v946_v28 = vmul.f32 %v7778_v42, %v903_v10  ;;  %v945_v46 = vmul.f32 %v7768_v37, %v904_v22  ;;  %v877_v10 = vmul.f32 %v7760_v29, %v840_v14 }
 0x1f3   : > { %9272 = vst [vmem:[#allocation20_spill] sm:$0xff] %v7814_v26  ;;  %986 = vmatpush1.msra.mxu0 %v941_v34  ;;  %1198 = vmatprep.subr.mxu1 %v948_v40  ;;  %v831_v3 = vpop.permute.xlu1 %830  ;;  %v827_v16 = vpop.permute.xlu0 %826  ;;  %v7833_v34 = vrot.slane %v7742_v5, %v7720_v61  ;;  %v878_v40 = vmul.f32 %v7764_v30, %v839_v53 }
 0x1f4   : > { %9273 = vst [vmem:[#allocation21_spill] sm:$0xff] %v7822_v39  ;;  %v835_v15 = vsel %vm834_vm2, %v829_v55, %v831_v3  ;;  %v842_v31 = vsel %vm834_vm2, %v831_v3, %v7590_v17  ;;  %7076 = vmatmul.mubr.msk.f32.vlgmr.msra.gmra.mxu0 %vm951_vm1, %v7679_v41  ;;  %1127 = vmatprep.subr.mxu0 %v946_v28 }
 0x1f5   : > { %9274 = vst [vmem:[#allocation22_spill] sm:$0xff] %v7833_v34  ;;  %1199 = vmatpush1.msra.mxu1 %v947_v54  ;;  %v875_v22 = vmul.f32 %v7800_v8, %v842_v31  ;;  %v837_v17 = vsel %vm834_vm2, %v7709_v56, %v827_v16  ;;  %1128 = vmatpush1.msra.mxu0 %v945_v46  ;;  %v883_v54 = vld [vmem:[%s9185_s3] sm:$0xff]  ;;  %v7875_v46 = vsub.s32 3, %v7592_v18 }
 0x1f6   : > { %7079 = vmatmul.mubr.msk.f32.vlgmr.msra.gmra.mxu1 %vm951_vm1, %v7679_v41  ;;  %v882_v3 = vmul.f32 %v7814_v26, %v835_v15  ;;  %v836_v28 = vsel %vm834_vm2, %v827_v16, %v829_v55  ;;  %1343 = vmatprep.subr.mxu1 %v878_v40  ;;  %v7856_v31 = vrot.slane %v7649_v33, %v7817_v35  ;;  %v9277_v55 = vmov 0.0  }
 0x1f7   : > { %1272 = vmatprep.subr.mxu0 %v876_v44  ;;  %v7850_v53 = vpop.permute.xlu1 %2917  ;;  %v7852_v14 = vpop.permute.xlu0 %2915  ;;  %v7864_v15 = vrot.slane %v7644_v32, %v7817_v35  ;;  %1344 = vmatpush1.msra.mxu1 %v877_v10  ;;  %v7872_v16 = vrot.slane %v7610_v23, %v7817_v35  ;;  %v7879_v40 = vrot.slane %v7737_v4, %v7720_v61 }
 0x1f8   : > { %9275 = vst [vmem:[#allocation23_spill] sm:$0xff] %v7856_v31  ;;  %1161 = vmatprep.mubr.f32.mxu0 %v9277_v55  ;;  %v880_v44 = vmul.f32 %v7822_v39, %v837_v17  ;;  %1485 = vmatprep.subr.mxu1 %v882_v3  ;;  %v7886_v10 = vrot.slane %v7725_v62, %v7817_v35 }
 0x1f9   : > { %9276 = vst [vmem:[#allocation24_spill] sm:$0xff] %v7864_v15  ;;  %9278 = vst [vmem:[#allocation25_spill] sm:$0xff] %v7872_v16  ;;  %7078 = vmatmul.mubr.msk.f32.vlgmr.msra.gmra.mxu0 %vm951_vm1, %v7679_v41  ;;  %v838_v26 = vsel %vm834_vm2, %v7695_v45, %v7709_v56  ;;  %v881_v8 = vmul.f32 %v7833_v34, %v836_v28  ;;  %1377 = vmatprep.mubr.f32.mxu1 %v9277_v55 }
 0x1fa   : > { %9279 = vst [vmem:[#allocation26_spill] sm:$0xff] %v7879_v40  ;;  %9280 = vst [vmem:[#allocation27_spill] sm:$0xff] %v7886_v10  ;;  %1273 = vmatpush1.msra.mxu0 %v875_v22  ;;  %v7896_v61 = vrot.slane %v7730_v0, %v7817_v35  ;;  %v1548_v41 = vsel %vm1542_vm3, %v7699_v48, %v7598_v19  ;;  %v1549_v17 = vsel %vm1542_vm3, %v7600_v20, %v7699_v48 }
 0x1fb   : > { %7081 = vmatmul.mubr.msk.f32.vlgmr.msra.gmra.mxu1 %vm951_vm1, %v883_v54  ;;  %1414 = vmatprep.subr.mxu0 %v880_v44  ;;  %v1586_v45 = vmul.f32 %v7856_v31, %v1547_v36  ;;  %v1541_v56 = vpop.permute.xlu1 %1540  ;;  %v1537_v22 = vpop.permute.xlu0 %1536  ;;  %v879_v48 = vmul.f32 %v7879_v40, %v838_v26  ;;  %v7920_v36 = vrot.slane %v7747_v13, %v7817_v35 }
 0x1fc   : > { %9281 = vst [vmem:[#allocation28_spill] sm:$0xff] %v7896_v61  ;;  %1486 = vmatpush1.msra.mxu1 %v881_v8  ;;  %v1543_v3 = vsel %vm1542_vm3, %v7711_v57, %v1541_v56  ;;  %v1550_v19 = vsel %vm1542_vm3, %v1541_v56, %v7600_v20  ;;  %1306 = vmatprep.mubr.f32.mxu0 %v9277_v55 }
 0x1fd   : > { %1697 = vmatprep.subr.mxu1 %v1586_v45  ;;  %v1590_v28 = vmul.f32 %v7886_v10, %v1543_v3  ;;  %9282 = vst [vmem:[#allocation29_spill] sm:$0xff] %v7920_v36  ;;  %v7924_v8 = vrot.slane %v7649_v33, %v7875_v46  ;;  %v1585_v44 = vmul.f32 %v7864_v15, %v1548_v41 }
 0x1fe   : > { %v7929_v20 = vrot.slane %v7742_v5, %v7817_v35  ;;  %7080 = vmatmul.mubr.msk.f32.vlgmr.msra.gmra.mxu0 %vm951_vm1, %v883_v54  ;;  %1519 = vmatprep.mubr.f32.mxu1 %v9277_v55  ;;  %v1584_v26 = vmul.f32 %v7872_v16, %v1549_v17  ;;  %v1583_v45 = vmul.f32 %v7896_v61, %v1550_v19 }
 0x1ff   : > { %9283 = vst [vmem:[#allocation30_spill] sm:$0xff] %v7924_v8  ;;  %v1544_v56 = vsel %vm1542_vm3, %v1537_v22, %v7711_v57  ;;  %v1545_v41 = vsel %vm1542_vm3, %v7713_v58, %v1537_v22  ;;  %1415 = vmatpush1.msra.mxu0 %v879_v48  ;;  %7083 = vmatmul.mubr.msk.f32.vlgmr.msra.gmra.mxu1 %vm951_vm1, %v883_v54  ;;  %v7942_v3 = vpop.permute.xlu1 %2911  ;;  %v7944_v10 = vpop.permute.xlu0 %2913  ;;  %v7084_v57 = vld [vmem:[%s9185_s3 + $0x10] sm:$0xff] }
 0x200   : > { %9284 = vst [vmem:[#allocation31_spill] sm:$0xff] %v7929_v20  ;;  %v1909_v17 = vsel %vm1904_vm4, %v7616_v24, %v7701_v49  ;;  %v7952_v19 = vrot.slane %v7644_v32, %v7875_v46  ;;  %1626 = vmatprep.subr.mxu0 %v1584_v26  ;;  %1698 = vmatpush1.msra.mxu1 %v1585_v44 }
 0x201   : > { %v7959_v22 = vrot.slane %v7610_v23, %v7875_v46  ;;  %v7963_v48 = vrot.slane %v7737_v4, %v7817_v35  ;;  %1448 = vmatprep.mubr.f32.mxu0 %v9277_v55  ;;  %1839 = vmatprep.subr.mxu1 %v1590_v28  ;;  %v7968_v61 = vrot.slane %v7730_v0, %v7875_v46 }
 0x202   : > { %9285 = vst [vmem:[#allocation32_spill] sm:$0xff] %v7952_v19  ;;  %v7972_v44 = vrot.slane %v7725_v62, %v7875_v46  ;;  %v1546_v26 = vsel %vm1542_vm3, %v7697_v47, %v7713_v58  ;;  %v1588_v15 = vmul.f32 %v7920_v36, %v1545_v41  ;;  %v1589_v35 = vmul.f32 %v7929_v20, %v1544_v56 }
 0x203   : > { %9286 = vst [vmem:[#allocation33_spill] sm:$0xff] %v7959_v22  ;;  %9287 = vst [vmem:[#allocation34_spill] sm:$0xff] %v7963_v48  ;;  %7082 = vmatmul.mubr.msk.f32.vlgmr.msra.gmra.mxu0 %vm951_vm1, %v883_v54  ;;  %1731 = vmatprep.mubr.f32.mxu1 %v9277_v55  ;;  %v1910_v28 = vsel %vm1904_vm4, %v7703_v50, %v7616_v24  ;;  %v1911_v16 = vsel %vm1904_vm4, %v7618_v25, %v7703_v50  ;;  %v1903_v58 = vpop.permute.xlu1 %1902  ;;  %v1899_v56 = vpop.permute.xlu0 %1898 }
 0x204   : > { %9288 = vst [vmem:[#allocation35_spill] sm:$0xff] %v7968_v61  ;;  %9289 = vst [vmem:[#allocation36_spill] sm:$0xff] %v7972_v44  ;;  %1627 = vmatpush1.msra.mxu0 %v1583_v45  ;;  %7086 = vmatmul.mubr.msk.f32.vlgmr.msra.gmra.mxu1 %vm951_vm1, %v7084_v57  ;;  %v1948_v47 = vmul.f32 %v7924_v8, %v1909_v17  ;;  %v1905_v54 = vsel %vm1904_vm4, %v7715_v59, %v1903_v58 }
 0x205   : > { %1768 = vmatprep.subr.mxu0 %v1588_v15  ;;  %1840 = vmatpush1.msra.mxu1 %v1589_v35  ;;  %v1912_v24 = vsel %vm1904_vm4, %v1903_v58, %v7618_v25  ;;  %v1587_v41 = vmul.f32 %v7963_v48, %v1546_v26  ;;  %v1952_v50 = vmul.f32 %v7972_v44, %v1905_v54 }
 0x206   : > { %2059 = vmatprep.subr.mxu1 %v1948_v47  ;;  %1660 = vmatprep.mubr.f32.mxu0 %v9277_v55  ;;  %v8003_v45 = vrot.slane %v7747_v13, %v7875_v46  ;;  %v1947_v15 = vmul.f32 %v7952_v19, %v1910_v28  ;;  %v8008_v17 = vrot.slane %v7742_v5, %v7875_v46 }
 0x207   : > { %7085 = vmatmul.mubr.msk.f32.vlgmr.msra.gmra.mxu0 %vm951_vm1, %v7084_v57  ;;  %1873 = vmatprep.mubr.f32.mxu1 %v9277_v55  ;;  %v1946_v25 = vmul.f32 %v7959_v22, %v1911_v16  ;;  %v1945_v26 = vmul.f32 %v7968_v61, %v1912_v24  ;;  %v1906_v35 = vsel %vm1904_vm4, %v1899_v56, %v7715_v59  ;;  %v8021_v47 = vpop.permute.xlu1 %3279  ;;  %v8023_v58 = vpop.permute.xlu0 %2909  ;;  %v7089_v16 = vld [vmem:[%s9185_s3 + $0x18] sm:$0xff] }
 0x208   : > { %9290 = vst [vmem:[#allocation37_spill] sm:$0xff] %v8003_v45  ;;  %9291 = vst [vmem:[#allocation38_spill] sm:$0xff] %v8008_v17  ;;  %v1907_v28 = vsel %vm1904_vm4, %v7717_v60, %v1899_v56  ;;  %1769 = vmatpush1.msra.mxu0 %v1587_v41  ;;  %7088 = vmatmul.mubr.msk.f32.vlgmr.msra.gmra.mxu1 %vm951_vm1, %v7084_v57  ;;  %v8030_v59 = vrot.slane %v7737_v4, %v7875_v46 }
 0x209   : > { %1988 = vmatprep.subr.mxu0 %v1946_v25  ;;  %2060 = vmatpush1.msra.mxu1 %v1947_v15  ;;  %v1908_v56 = vsel %vm1904_vm4, %v7701_v49, %v7717_v60  ;;  %v1950_v54 = vmul.f32 %v8003_v45, %v1907_v28  ;;  %v1951_v24 = vmul.f32 %v8008_v17, %v1906_v35  ;;  %v7094_v25 = vld [vmem:[%s9185_s3 + $0x20] sm:$0xff] }
 0x20a   : > { %9292 = vst [vmem:[#allocation39_spill] sm:$0xff] %v8030_v59  ;;  %1802 = vmatprep.mubr.f32.mxu0 %v9277_v55  ;;  %2201 = vmatprep.subr.mxu1 %v1952_v50  ;;  %v2574_v50 = vsub.s32 4, %v7592_v18  ;;  %v1949_v49 = vmul.f32 %v8030_v59, %v1908_v56  ;;  %v7099_v59 = vld [vmem:[%s9185_s3 + $0x28] sm:$0xff] }
 0x20b   : > { %7087 = vmatmul.mubr.msk.f32.vlgmr.msra.gmra.mxu0 %vm951_vm1, %v7084_v57  ;;  %2093 = vmatprep.mubr.f32.mxu1 %v9277_v55  ;;  %v8042_v46 = vpop.permute.xlu1 %3273  ;;  %v8044_v41 = vpop.permute.xlu0 %2921 }
 0x20c   : > { %1989 = vmatpush1.msra.mxu0 %v1945_v26  ;;  %7091 = vmatmul.mubr.msk.f32.vlgmr.msra.gmra.mxu1 %vm951_vm1, %v7089_v16  ;;  %v8059_v15 = vrot.slane %v7649_v33, %v2574_v50  ;;  %v8073_v26 = vrot.slane %v7644_v32, %v2574_v50  ;;  %v8078_v35 = vrot.slane %v7610_v23, %v2574_v50 }
 0x20d   : > { %2130 = vmatprep.subr.mxu0 %v1950_v54  ;;  %2202 = vmatpush1.msra.mxu1 %v1951_v24  ;;  %v8099_v54 = vrot.slane %v7730_v0, %v2574_v50  ;;  %v8112_v24 = vrot.slane %v7725_v62, %v2574_v50 }
 0x20e   : > { %2356 = vmatprep.subr.mxu1 %v7498_v1  ;;  %2022 = vmatprep.mubr.f32.mxu0 %v9277_v55  ;;  %9293 = vst [vmem:[#allocation40_spill] sm:$0xff] %v8059_v15  ;;  %v2567_v1 = vsel %vm2563_vm5, %v7707_v52, %v7732_v2  ;;  %9294 = vst [vmem:[#allocation41_spill] sm:$0xff] %v8073_v26 }
 0x20f   : > { %7090 = vmatmul.mubr.msk.f32.vlgmr.msra.gmra.mxu0 %vm951_vm1, %v7089_v16  ;;  %2235 = vmatprep.mubr.f32.mxu1 %v9277_v55  ;;  %v8054_v60 = vpop.permute.xlu1 %3641  ;;  %v8056_v57 = vpop.permute.xlu0 %3277  ;;  %9295 = vst [vmem:[#allocation42_spill] sm:$0xff] %v8078_v35  ;;  %v2607_v28 = vmul.f32 %v8059_v15, %v2567_v1  ;;  %9296 = vst [vmem:[#allocation43_spill] sm:$0xff] %v8099_v54 }
 0x210   : > { %2131 = vmatpush1.msra.mxu0 %v1949_v49  ;;  %7093 = vmatmul.mubr.msk.f32.vlgmr.msra.gmra.mxu1 %vm951_vm1, %v7089_v16  ;;  %9299 = vst [vmem:[#allocation44_spill] sm:$0xff] %v8112_v24 }
 0x211   : > { %2285 = vmatprep.subr.mxu0 %v7492_v63  ;;  %2357 = vmatpush1.msra.mxu1 %v7474_v7  ;;  %v2569_v7 = vsel %vm2563_vm5, %v7705_v51, %v7629_v27  ;;  %v2568_v63 = vsel %vm2563_vm5, %v7629_v27, %v7707_v52  ;;  %v9297_v27 = vld [vmem:[#allocation10_spill] sm:$0xff]  ;;  %v8109_v52 = vrot.slane %v7742_v5, %v2574_v50 }
 0x212   : > { %2498 = vmatprep.subr.mxu1 %v7548_v12  ;;  %2164 = vmatprep.mubr.f32.mxu0 %v9277_v55  ;;  %v8089_v12 = vsub.s32 5, %v7592_v18  ;;  %v2606_v49 = vmul.f32 %v8073_v26, %v2568_v63  ;;  %v8128_v63 = vrot.slane %v7737_v4, %v2574_v50  ;;  %v8131_v26 = vrot.slane %v7747_v13, %v2574_v50 }
 0x213   : > { %7092 = vmatmul.mubr.msk.f32.vlgmr.msra.gmra.mxu0 %vm951_vm1, %v7089_v16  ;;  %2390 = vmatprep.mubr.f32.mxu1 %v9277_v55  ;;  %v8094_v16 = vpop.permute.xlu1 %3635  ;;  %v8096_v56 = vpop.permute.xlu0 %3275  ;;  %9298 = vst [vmem:[#allocation10_spill] sm:$0xff] %v8109_v52  ;;  %v2929_v50 = vsel %vm2925_vm6, %v7852_v14, %v7850_v53 }
 0x214   : > { %2286 = vmatpush1.msra.mxu0 %v7472_v6  ;;  %7096 = vmatmul.mubr.msk.f32.vlgmr.msra.gmra.mxu1 %vm951_vm1, %v7094_v25  ;;  %v2570_v6 = vsel %vm2563_vm5, %v9297_v27, %v7705_v51  ;;  %v9301_v51 = vld [vmem:[#allocation8_spill] sm:$0xff]  ;;  %9303 = vst [vmem:[#allocation46_spill] sm:$0xff] %v8131_v26 }
 0x215   : > { %2427 = vmatprep.subr.mxu0 %v7542_v11  ;;  %2499 = vmatpush1.msra.mxu1 %v7522_v9  ;;  %v2605_v9 = vmul.f32 %v8078_v35, %v2569_v7  ;;  %v8121_v11 = vrot.slane %v7649_v33, %v8089_v12  ;;  %9302 = vst [vmem:[#allocation8_spill] sm:$0xff] %v8128_v63  ;;  %v9304_v7 = vld [vmem:[#allocation17_spill] sm:$0xff] }
 0x216   : > { %2718 = vmatprep.subr.mxu1 %v2607_v28  ;;  %2319 = vmatprep.mubr.f32.mxu0 %v9277_v55  ;;  %v2604_v15 = vmul.f32 %v8099_v54, %v2570_v6 }
 0x217   : > { %7095 = vmatmul.mubr.msk.f32.vlgmr.msra.gmra.mxu0 %vm951_vm1, %v7094_v25  ;;  %2532 = vmatprep.mubr.f32.mxu1 %v9277_v55  ;;  %9300 = vst [vmem:[#allocation45_spill] sm:$0xff] %v8121_v11  ;;  %v2562_v1 = vpop.permute.xlu1 %2561  ;;  %v8125_v28 = vpop.permute.xlu0 %3271 }
 0x218   : > { %2428 = vmatpush1.msra.mxu0 %v9301_v51  ;;  %7098 = vmatmul.mubr.msk.f32.vlgmr.msra.gmra.mxu1 %vm951_vm1, %v7094_v25  ;;  %v2564_v35 = vsel %vm2563_vm5, %v9304_v7, %v2562_v1  ;;  %v2571_v51 = vsel %vm2563_vm5, %v2562_v1, %v9297_v27  ;;  %v8153_v27 = vrot.slane %v7610_v23, %v8089_v12 }
 0x219   : > { %2647 = vmatprep.subr.mxu0 %v2605_v9  ;;  %2719 = vmatpush1.msra.mxu1 %v2606_v49  ;;  %v2610_v6 = vmul.f32 %v8109_v52, %v2564_v35  ;;  %v2611_v49 = vmul.f32 %v8112_v24, %v2571_v51  ;;  %v8157_v9 = vrot.slane %v7644_v32, %v8089_v12 }
 0x21a   : > { %2461 = vmatprep.mubr.f32.mxu0 %v9277_v55  ;;  %2752 = vmatprep.mubr.f32.mxu1 %v9277_v55  ;;  %9305 = vst [vmem:[#allocation17_spill] sm:$0xff] %v8153_v27  ;;  %v2930_v35 = vsel %vm2925_vm6, %v7944_v10, %v7852_v14  ;;  %v8166_v1 = vrot.slane %v7730_v0, %v8089_v12 }
 0x21b   : > { %9306 = vst [vmem:[#allocation47_spill] sm:$0xff] %v8157_v9  ;;  %7097 = vmatmul.mubr.msk.f32.vlgmr.msra.gmra.mxu0 %vm951_vm1, %v7094_v25  ;;  %v2558_v51 = vpop.permute.xlu1 %2557  ;;  %v8169_v52 = vpop.permute.xlu0 %3283  ;;  %v8173_v24 = vrot.slane %v7725_v62, %v8089_v12  ;;  %v2969_v25 = vmul.f32 %v8121_v11, %v2929_v50  ;;  %2860 = vmatprep.subr.mxu1 %v2611_v49  ;;  %v8196_v49 = vsub.s32 6, %v7592_v18 }
 0x21c   : > { %9307 = vst [vmem:[#allocation48_spill] sm:$0xff] %v8166_v1  ;;  %2648 = vmatpush1.msra.mxu0 %v2604_v15  ;;  %7101 = vmatmul.mubr.msk.f32.vlgmr.msra.gmra.mxu1 %vm951_vm1, %v7099_v59  ;;  %v2565_v14 = vsel %vm2563_vm5, %v2558_v51, %v9304_v7  ;;  %v2566_v54 = vsel %vm2563_vm5, %v7732_v2, %v2558_v51 }
 0x21d   : > { %9308 = vst [vmem:[#allocation49_spill] sm:$0xff] %v8173_v24  ;;  %2681 = vmatprep.mubr.f32.mxu0 %v9277_v55  ;;  %v2931_v15 = vsel %vm2925_vm6, %v7942_v3, %v7944_v10  ;;  %v2608_v17 = vmul.f32 %v8128_v63, %v2566_v54  ;;  %v2609_v50 = vmul.f32 %v8131_v26, %v2565_v14  ;;  %v7104_v14 = vld [vmem:[%s9185_s3 + $0x30] sm:$0xff] }
 0x21e   : > { %2861 = vmatpush1.msra.mxu1 %v2610_v6  ;;  %2894 = vmatprep.mubr.f32.mxu1 %v9277_v55  ;;  %v2968_v7 = vmul.f32 %v8157_v9, %v2930_v35  ;;  %v2932_v2 = vsel %vm2925_vm6, %v8023_v58, %v7942_v3  ;;  %v8201_v10 = vrot.slane %v7742_v5, %v8089_v12 }
 0x21f   : > { %7100 = vmatmul.mubr.msk.f32.vlgmr.msra.gmra.mxu0 %vm951_vm1, %v7099_v59  ;;  %3080 = vmatprep.subr.mxu1 %v2969_v25  ;;  %v2924_v54 = vpop.permute.xlu1 %2923  ;;  %v8204_v6 = vpop.permute.xlu0 %3639  ;;  %v8208_v35 = vrot.slane %v7737_v4, %v8089_v12  ;;  %v2967_v3 = vmul.f32 %v8153_v27, %v2931_v15 }
 0x220   : > { %9309 = vst [vmem:[#allocation50_spill] sm:$0xff] %v8201_v10  ;;  %7103 = vmatmul.mubr.msk.f32.vlgmr.msra.gmra.mxu1 %vm951_vm1, %v7099_v59  ;;  %2789 = vmatprep.subr.mxu0 %v2609_v50  ;;  %v2926_v51 = vsel %vm2925_vm6, %v8044_v41, %v2924_v54  ;;  %v2933_v25 = vsel %vm2925_vm6, %v2924_v54, %v8023_v58 }
 0x221   : > { %9310 = vst [vmem:[#allocation51_spill] sm:$0xff] %v8208_v35  ;;  %3081 = vmatpush1.msra.mxu1 %v2968_v7  ;;  %2790 = vmatpush1.msra.mxu0 %v2608_v17  ;;  %v2966_v50 = vmul.f32 %v8166_v1, %v2932_v2  ;;  %v2973_v15 = vmul.f32 %v8173_v24, %v2933_v25 }
 0x222   : > { %2823 = vmatprep.mubr.f32.mxu0 %v9277_v55  ;;  %3114 = vmatprep.mubr.f32.mxu1 %v9277_v55  ;;  %v8227_v7 = vrot.slane %v7747_v13, %v8089_v12  ;;  %v8231_v58 = vrot.slane %v7649_v33, %v8196_v49  ;;  %v2972_v17 = vmul.f32 %v8201_v10, %v2926_v51  ;;  %v8244_v12 = vsub.s32 7, %v7592_v18 }
 0x223   : > { %7102 = vmatmul.mubr.msk.f32.vlgmr.msra.gmra.mxu0 %vm951_vm1, %v7099_v59  ;;  %3009 = vmatprep.subr.mxu0 %v2967_v3  ;;  %v3291_v2 = vsel %vm3287_vm7, %v8056_v57, %v8021_v47  ;;  %v8241_v54 = vrot.slane %v7644_v32, %v8196_v49  ;;  %v2920_v25 = vpop.permute.xlu1 %2919  ;;  %v3638_v51 = vpop.permute.xlu0 %3637  ;;  %v8249_v59 = vrot.slane %v7610_v23, %v8196_v49 }
 0x224   : > { %9311 = vst [vmem:[#allocation52_spill] sm:$0xff] %v8227_v7  ;;  %9312 = vst [vmem:[#allocation53_spill] sm:$0xff] %v8231_v58  ;;  %7106 = vmatmul.mubr.msk.f32.vlgmr.msra.gmra.mxu1 %vm951_vm1, %v7104_v14  ;;  %3010 = vmatpush1.msra.mxu0 %v2966_v50  ;;  %v3292_v3 = vsel %vm3287_vm7, %v8096_v56, %v8056_v57  ;;  %v2927_v10 = vsel %vm2925_vm6, %v2920_v25, %v8044_v41 }
 0x225   : > { %9313 = vst [vmem:[#allocation54_spill] sm:$0xff] %v8241_v54  ;;  %9314 = vst [vmem:[#allocation55_spill] sm:$0xff] %v8249_v59  ;;  %v2928_v18 = vsel %vm2925_vm6, %v7850_v53, %v2920_v25  ;;  %3222 = vmatprep.subr.mxu1 %v2973_v15  ;;  %v8263_v50 = vrot.slane %v7730_v0, %v8196_v49  ;;  %v2971_v1 = vmul.f32 %v8227_v7, %v2927_v10 }
 0x226   : > { %v2970_v24 = vmul.f32 %v8208_v35, %v2928_v18  ;;  %3043 = vmatprep.mubr.f32.mxu0 %v9277_v55  ;;  %v8270_v57 = vrot.slane %v7725_v62, %v8196_v49  ;;  %v3331_v41 = vmul.f32 %v8231_v58, %v3291_v2  ;;  %v3293_v53 = vsel %vm3287_vm7, %v8042_v46, %v8096_v56 }
 0x227   : > { %9315 = vst [vmem:[#allocation56_spill] sm:$0xff] %v8263_v50  ;;  %3223 = vmatpush1.msra.mxu1 %v2972_v17  ;;  %3256 = vmatprep.mubr.f32.mxu1 %v9277_v55  ;;  %v8280_v15 = vrot.slane %v7742_v5, %v8196_v49  ;;  %v3330_v10 = vmul.f32 %v8241_v54, %v3292_v3  ;;  %v3286_v56 = vpop.permute.xlu1 %3285  ;;  %v3634_v54 = vpop.permute.xlu0 %3633 }
 0x228   : > { %9316 = vst [vmem:[#allocation57_spill] sm:$0xff] %v8270_v57  ;;  %v3294_v25 = vsel %vm3287_vm7, %v8125_v28, %v8042_v46  ;;  %v8290_v2 = vrot.slane %v7649_v33, %v8244_v12  ;;  %7105 = vmatmul.mubr.msk.f32.vlgmr.msra.gmra.mxu0 %vm951_vm1, %v7104_v14  ;;  %7108 = vmatmul.mubr.msk.f32.vlgmr.msra.gmra.mxu1 %vm951_vm1, %v7104_v14 }
 0x229   : > { %9317 = vst [vmem:[#allocation58_spill] sm:$0xff] %v8280_v15  ;;  %3442 = vmatprep.subr.mxu1 %v3331_v41  ;;  %v3288_v17 = vsel %vm3287_vm7, %v8169_v52, %v3286_v56  ;;  %v3295_v46 = vsel %vm3287_vm7, %v3286_v56, %v8125_v28  ;;  %3151 = vmatprep.subr.mxu0 %v2971_v1  ;;  %v7109_v41 = vld [vmem:[%s9185_s3 + $0x38] sm:$0xff] }
 0x22a   : > { %9318 = vst [vmem:[#allocation59_spill] sm:$0xff] %v8290_v2  ;;  %v8302_v3 = vrot.slane %v7737_v4, %v8196_v49  ;;  %v3329_v33 = vmul.f32 %v8249_v59, %v3293_v53  ;;  %3443 = vmatpush1.msra.mxu1 %v3330_v10  ;;  %v3335_v18 = vmul.f32 %v8270_v57, %v3295_v46 }
 0x22b   : > { %3152 = vmatpush1.msra.mxu0 %v2970_v24  ;;  %v8311_v58 = vrot.slane %v7747_v13, %v8196_v49  ;;  %v3328_v28 = vmul.f32 %v8263_v50, %v3294_v25  ;;  %v3653_v1 = vsel %vm3649_vm8, %v8204_v6, %v8054_v60  ;;  %v3334_v53 = vmul.f32 %v8280_v15, %v3288_v17  ;;  %v3282_v10 = vpop.permute.xlu1 %3281 }
 0x22c   : > { %9319 = vst [vmem:[#allocation60_spill] sm:$0xff] %v8302_v3  ;;  %3185 = vmatprep.mubr.f32.mxu0 %v9277_v55  ;;  %3476 = vmatprep.mubr.f32.mxu1 %v9277_v55  ;;  %v8323_v24 = vrot.slane %v7610_v23, %v8244_v12  ;;  %v8327_v49 = vrot.slane %v7644_v32, %v8244_v12 }
 0x22d   : > { %9320 = vst [vmem:[#allocation61_spill] sm:$0xff] %v8311_v58  ;;  %7107 = vmatmul.mubr.msk.f32.vlgmr.msra.gmra.mxu0 %vm951_vm1, %v7104_v14  ;;  %3371 = vmatprep.subr.mxu0 %v3329_v33  ;;  %v8332_v25 = vrot.slane %v7725_v62, %v8244_v12  ;;  %v3654_v56 = vsel %vm3649_vm8, %v3638_v51, %v8204_v6 }
 0x22e   : > { %9321 = vst [vmem:[#allocation62_spill] sm:$0xff] %v8323_v24  ;;  %9322 = vst [vmem:[#allocation63_spill] sm:$0xff] %v8327_v49  ;;  %7111 = vmatmul.mubr.msk.f32.vlgmr.msra.gmra.mxu1 %vm951_vm1, %v7109_v41  ;;  %3372 = vmatpush1.msra.mxu0 %v3328_v28  ;;  %v3289_v23 = vsel %vm3287_vm7, %v3282_v10, %v8169_v52  ;;  %v3290_v32 = vsel %vm3287_vm7, %v8021_v47, %v3282_v10 }
 0x22f   : > { %9323 = vst [vmem:[#allocation64_spill] sm:$0xff] %v8332_v25  ;;  %v3693_v14 = vmul.f32 %v8290_v2, %v3653_v1  ;;  %v3332_v62 = vmul.f32 %v8302_v3, %v3290_v32  ;;  %v3333_v17 = vmul.f32 %v8311_v58, %v3289_v23  ;;  %3584 = vmatprep.subr.mxu1 %v3335_v18  ;;  %v3646_v18 = vpop.permute.xlu0 %3645 }
 0x230   : > { %3405 = vmatprep.mubr.f32.mxu0 %v9277_v55  ;;  %v3655_v6 = vsel %vm3649_vm8, %v8094_v16, %v3638_v51  ;;  %v8353_v52 = vrot.slane %v7730_v0, %v8244_v12  ;;  %3585 = vmatpush1.msra.mxu1 %v3334_v53  ;;  %v8358_v47 = vrot.slane %v7742_v5, %v8244_v12  ;;  %v3648_v51 = vpop.permute.xlu1 %3647  ;;  %v7114_v53 = vld [vmem:[%s9185_s3 + $0x40] sm:$0xff] }
 0x231   : > { %3618 = vmatprep.mubr.f32.mxu1 %v9277_v55  ;;  %v3692_v46 = vmul.f32 %v8327_v49, %v3654_v56  ;;  %v3656_v33 = vsel %vm3649_vm8, %v3634_v54, %v8094_v16  ;;  %7110 = vmatmul.mubr.msk.f32.vlgmr.msra.gmra.mxu0 %vm951_vm1, %v7109_v41  ;;  %v3650_v0 = vsel %vm3649_vm8, %v3646_v18, %v3648_v51 }
 0x232   : > { %9324 = vst [vmem:[#allocation65_spill] sm:$0xff] %v8353_v52  ;;  %9325 = vst [vmem:[#allocation66_spill] sm:$0xff] %v8358_v47  ;;  %3804 = vmatprep.subr.mxu1 %v3693_v14  ;;  %7113 = vmatmul.mubr.msk.f32.vlgmr.msra.gmra.mxu1 %vm951_vm1, %v7109_v41  ;;  %v3657_v5 = vsel %vm3649_vm8, %v3648_v51, %v3634_v54  ;;  %v8372_v28 = vrot.slane %v7737_v4, %v8244_v12 }
 0x233   : > { %3513 = vmatprep.subr.mxu0 %v3333_v17  ;;  %v3691_v16 = vmul.f32 %v8323_v24, %v3655_v6  ;;  %3805 = vmatpush1.msra.mxu1 %v3692_v46  ;;  %v3697_v1 = vmul.f32 %v8332_v25, %v3657_v5  ;;  %v8381_v10 = vrot.slane %v7747_v13, %v8244_v12 }
 0x234   : > { %9326 = vst [vmem:[#allocation67_spill] sm:$0xff] %v8372_v28  ;;  %3514 = vmatpush1.msra.mxu0 %v3332_v62  ;;  %v3690_v54 = vmul.f32 %v8353_v52, %v3656_v33  ;;  %v3696_v56 = vmul.f32 %v8358_v47, %v3650_v0  ;;  %3547 = vmatprep.mubr.f32.mxu0 %v9277_v55  ;;  %v3644_v4 = vpop.permute.xlu1 %3643 }
 0x235   : > { %9327 = vst [vmem:[#allocation68_spill] sm:$0xff] %v8381_v10  ;;  %3838 = vmatprep.mubr.f32.mxu1 %v9277_v55  ;;  %7112 = vmatmul.mubr.msk.f32.vlgmr.msra.gmra.mxu0 %vm951_vm1, %v7109_v41  ;;  %v3651_v23 = vsel %vm3649_vm8, %v3644_v4, %v3646_v18  ;;  %v3652_v13 = vsel %vm3649_vm8, %v8054_v60, %v3644_v4 }
 0x236   : > { %3733 = vmatprep.subr.mxu0 %v3691_v16  ;;  %7116 = vmatmul.mubr.msk.f32.vlgmr.msra.gmra.mxu1 %vm951_vm1, %v7114_v53  ;;  %v3694_v12 = vmul.f32 %v8372_v28, %v3652_v13  ;;  %v3695_v32 = vmul.f32 %v8381_v10, %v3651_v23 }
 0x237   : > { %3734 = vmatpush1.msra.mxu0 %v3690_v54  ;;  %3946 = vmatprep.subr.mxu1 %v3697_v1 }
 0x238   : > { %3767 = vmatprep.mubr.f32.mxu0 %v9277_v55  ;;  %3947 = vmatpush1.msra.mxu1 %v3696_v56 }
 0x239   : > { %3980 = vmatprep.mubr.f32.mxu1 %v9277_v55  ;;  %7115 = vmatmul.mubr.msk.f32.vlgmr.msra.gmra.mxu0 %vm951_vm1, %v7114_v53 }
 0x23a   : > { %3875 = vmatprep.subr.mxu0 %v3695_v32  ;;  %7118 = vmatmul.mubr.msk.f32.vlgmr.msra.gmra.mxu1 %vm951_vm1, %v7114_v53 }
 0x23b   : > { %3876 = vmatpush1.msra.mxu0 %v3694_v12  ;;  %3909 = vmatprep.mubr.f32.mxu0 %v9277_v55 }
 0x23c   : > { %4233 = vmatprep.mubr.f32.mxu1 %v9277_v55 }
 0x23d   : > { %7117 = vmatmul.mubr.msk.f32.vlgmr.msra.gmra.mxu0 %vm951_vm1, %v7114_v53 }
 0x23e   : > { %4162 = vmatprep.mubr.f32.mxu0 %v9277_v55 }
 0x278   : > { %v1092_v60 = vpop.f32.mrf.mxu1 }
 0x27a   : > { %v1094_v41 = vpop.f32.mrf.mxu1 }
 0x2b4   : > { %v8404_v14 = vpop.f32.mrf.mxu0 }
 0x2b6   : > { %v8406_v62 = vpop.f32.mrf.mxu1  ;;  %v8408_v17 = vpop.f32.mrf.mxu0 }
 0x2b8   : > { %v1236_v6 = vpop.f32.mrf.mxu1 }
 0x2b9   : > { %v1163_v46 = vpop.f32.mrf.mxu0 }
 0x2bb   : > { %v1379_v33 = vpop.f32.mrf.mxu1  ;;  %v1165_v18 = vpop.f32.mrf.mxu0 }
 0x2bc   : > { %v1380_v63 = vadd.f32 %v1379_v33, %v1092_v60 }
 0x2bd   : > { %v1381_v51 = vpop.f32.mrf.mxu1 }
 0x2be   : > { %v8410_v0 = vpop.f32.mrf.mxu0  ;;  %v1382_v61 = vadd.f32 %v1381_v51, %v1094_v41 }
 0x2bf   : > { %v8412_v5 = vpop.f32.mrf.mxu1 }
 0x2c0   : > { %v8414_v16 = vpop.f32.mrf.mxu0 }
 0x2c1   : > { %v1523_v1 = vpop.f32.mrf.mxu1 }
 0x2c2   : > { %v1524_v53 = vadd.f32 %v1523_v1, %v1236_v6 }
 0x2c3   : > { %v1450_v54 = vpop.f32.mrf.mxu0 }
 0x2c4   : > { %v1451_v56 = vadd.f32 %v1450_v54, %v1163_v46  ;;  %v1733_v4 = vpop.f32.mrf.mxu1 }
 0x2c5   : > { %v1452_v23 = vpop.f32.mrf.mxu0  ;;  %v1882_v19 = vadd.f32 %v1733_v4, %v1380_v63  ;;  %v8464_v4 = vpop.permute.xlu0 %3997 }
 0x2c6   : > { %v1453_v13 = vadd.f32 %v1452_v23, %v1165_v18  ;;  %v1735_v12 = vpop.f32.mrf.mxu1 }
 0x2c7   : > { %v8416_v32 = vpop.f32.mrf.mxu0  ;;  %v1883_v20 = vadd.f32 %v1735_v12, %v1382_v61  ;;  %v1309_v61 = vadd.f32 %v8410_v0, %v8404_v14  ;;  %v8468_v12 = vpop.permute.xlu1 %4009 }
 0x2c8   : > { %v8418_v28 = vpop.f32.mrf.mxu1 }
 0x2c9   : > { %v8420_v47 = vpop.f32.mrf.mxu0 }
 0x2ca   : > { %v1877_v10 = vpop.f32.mrf.mxu1 }
 0x2cb   : > { %v1887_v25 = vadd.f32 %v1877_v10, %v1524_v53  ;;  %v1804_v24 = vpop.f32.mrf.mxu0 }
 0x2cc   : > { %v8422_v52 = vadd.f32 %v1804_v24, %v1451_v56  ;;  %v2095_v49 = vpop.f32.mrf.mxu1 }
 0x2cd   : > { %v1806_v2 = vpop.f32.mrf.mxu0  ;;  %v2244_v36 = vadd.f32 %v2095_v49, %v1882_v19 }
 0x2ce   : > { %v1885_v6 = vadd.f32 %v1806_v2, %v1453_v13  ;;  %v2097_v1 = vpop.f32.mrf.mxu1 }
 0x2cf   : > { %v8424_v46 = vpop.f32.mrf.mxu0  ;;  %v2245_v34 = vadd.f32 %v2097_v1, %v1883_v20 }
 0x2d0   : > { %v8426_v54 = vpop.f32.mrf.mxu1 }
 0x2d1   : > { %v8428_v18 = vpop.f32.mrf.mxu0 }
 0x2d2   : > { %v2239_v23 = vpop.f32.mrf.mxu1 }
 0x2d3   : > { %v8430_v58 = vadd.f32 %v2239_v23, %v1887_v25  ;;  %v8432_v3 = vpop.f32.mrf.mxu0 }
 0x2d4   : > { %v2392_v15 = vpop.f32.mrf.mxu1 }
 0x2d5   : > { %v2168_v10 = vpop.f32.mrf.mxu0  ;;  %v2541_v39 = vadd.f32 %v2392_v15, %v2244_v36  ;;  %v1522_v15 = vadd.f32 %v8412_v5, %v8406_v62 }
 0x2d6   : > { %v8434_v53 = vadd.f32 %v2168_v10, %v1885_v6  ;;  %v2394_v24 = vpop.f32.mrf.mxu1 }
 0x2d7   : > { %v2321_v56 = vpop.f32.mrf.mxu0  ;;  %v2542_v43 = vadd.f32 %v2394_v24, %v2245_v34  ;;  %v1886_v1 = vadd.f32 %v8418_v28, %v1522_v15 }
 0x2d8   : > { %v2534_v57 = vpop.f32.mrf.mxu1 }
 0x2d9   : > { %v8436_v2 = vpop.f32.mrf.mxu0  ;;  %v2248_v0 = vadd.f32 %v8426_v54, %v1886_v1 }
 0x2da   : > { %v8438_v13 = vpop.f32.mrf.mxu1 }
 0x2db   : > { %v8440_v50 = vpop.f32.mrf.mxu0 }
 0x2dc   : > { %v2754_v59 = vpop.f32.mrf.mxu1 }
 0x2dd   : > { %v8442_v7 = vpop.f32.mrf.mxu0  ;;  %v2903_v60 = vadd.f32 %v2754_v59, %v2541_v39 }
 0x2de   : > { %v2756_v25 = vpop.f32.mrf.mxu1 }
 0x2df   : > { %v2683_v23 = vpop.f32.mrf.mxu0  ;;  %v2904_v41 = vadd.f32 %v2756_v25, %v2542_v43  ;;  %v1880_v43 = vadd.f32 %v8416_v32, %v1309_v61  ;;  %v2545_v25 = vadd.f32 %v2534_v57, %v2248_v0 }
 0x2e0   : > { %v2896_v35 = vpop.f32.mrf.mxu1 }
 0x2e1   : > { %v8444_v9 = vpop.f32.mrf.mxu0  ;;  %v2242_v14 = vadd.f32 %v8424_v46, %v1880_v43 }
 0x2e2   : > { %v8446_v27 = vpop.f32.mrf.mxu1 }
 0x2e3   : > { %v8448_v6 = vpop.f32.mrf.mxu0  ;;  %v2539_v5 = vadd.f32 %v2321_v56, %v2242_v14 }
 0x2e4   : > { %v3116_v10 = vpop.f32.mrf.mxu1 }
 0x2e5   : > { %v8450_v11 = vpop.f32.mrf.mxu0  ;;  %v3265_v63 = vadd.f32 %v3116_v10, %v2903_v60  ;;  %v2901_v60 = vadd.f32 %v2683_v23, %v2539_v5 }
 0x2e6   : > { %v3118_v26 = vpop.f32.mrf.mxu1 }
 0x2e7   : > { %v3266_v19 = vadd.f32 %v3118_v26, %v2904_v41  ;;  %v2907_v41 = vadd.f32 %v2896_v35, %v2545_v25  ;;  %v1311_v35 = vadd.f32 %v8414_v16, %v8408_v17 }
 0x2e8   : > { %v3045_v45 = vpop.f32.mrf.mxu0  ;;  %v3258_v44 = vpop.f32.mrf.mxu1 }
 0x2e9   : > { %v3263_v46 = vadd.f32 %v3045_v45, %v2901_v60  ;;  %v3269_v54 = vadd.f32 %v3258_v44, %v2907_v41  ;;  %v1881_v44 = vadd.f32 %v8420_v47, %v1311_v35 }
 0x2ea   : > { %v8452_v22 = vpop.f32.mrf.mxu0  ;;  %v8454_v48 = vpop.f32.mrf.mxu1 }
 0x2ed   : > { %v8456_v8 = vpop.f32.mrf.mxu0 }
 0x2ee   : > { %v3478_v40 = vpop.f32.mrf.mxu1 }
 0x2ef   : > { %v8458_v31 = vpop.f32.mrf.mxu0  ;;  %v3627_v49 = vadd.f32 %v3478_v40, %v3265_v63 }
 0x2f0   : > { %v3480_v29 = vpop.f32.mrf.mxu1 }
 0x2f1   : > { %v3407_v33 = vpop.f32.mrf.mxu0  ;;  %v3628_v34 = vadd.f32 %v3480_v29, %v3266_v19 }
 0x2f2   : > { %v3620_v30 = vpop.f32.mrf.mxu1  ;;  %v3625_v61 = vadd.f32 %v3407_v33, %v3263_v46  ;;  %v2243_v33 = vadd.f32 %v8428_v18, %v1881_v44 }
 0x2f3   : > { %v3409_v20 = vpop.f32.mrf.mxu0  ;;  %v3631_v19 = vadd.f32 %v3620_v30, %v3269_v54 }
 0x2f4   : > { %v8460_v51 = vpop.f32.mrf.mxu1  ;;  %v2540_v17 = vadd.f32 %v8436_v2, %v2243_v33 }
 0x2f5   : > { %v8473_v40 = vpop.f32.mrf.mxu0 }
 0x2f6   : > { %v3840_v36 = vpop.f32.mrf.mxu1  ;;  %v2902_v47 = vadd.f32 %v8444_v9, %v2540_v17  ;;  %v2546_v9 = vadd.f32 %v8438_v13, %v8430_v58 }
 0x2f7   : > { %v3989_v39 = vadd.f32 %v3840_v36, %v3627_v49  ;;  %v8482_v28 = vpop.f32.mrf.mxu0 }
 0x2f8   : > { %v3842_v59 = vpop.f32.mrf.mxu1  ;;  %v3264_v18 = vadd.f32 %v8452_v22, %v2902_v47  ;;  %v2908_v43 = vadd.f32 %v8446_v27, %v2546_v9 }
 0x2f9   : > { %v3990_v24 = vadd.f32 %v3842_v59, %v3628_v34  ;;  %v4002_v26 = vmul.f32 %v8464_v4, %v3989_v39  ;;  %v3769_v56 = vpop.f32.mrf.mxu0 }
 0x2fa   : > { %v3982_v57 = vpop.f32.mrf.mxu1  ;;  %v3987_v23 = vadd.f32 %v3769_v56, %v3625_v61  ;;  %v3626_v2 = vadd.f32 %v3409_v20, %v3264_v18  ;;  %v3270_v22 = vadd.f32 %v8454_v48, %v2908_v43  ;;  %v7346_v56 = vmov 2   ;;  %v9329_v61 = vld [vmem:[#allocation11_spill] sm:$0xff] }
 0x2fb   : > { %v4003_v62 = vmul.f32 %v8464_v4, %v3990_v24  ;;  %v4014_v29 = vadd.f32 %v8468_v12, %v4002_v26  ;;  %v3993_v49 = vadd.f32 %v3982_v57, %v3631_v19  ;;  %v3771_v39 = vpop.f32.mrf.mxu0  ;;  %v2246_v24 = vadd.f32 %v8432_v3, %v8422_v52  ;;  %7237 = vset.pattern.permute.xlu1 %v7346_v56 }
 0x2fc   : > { %v4000_v30 = vmul.f32 %v8464_v4, %v3987_v23  ;;  %v3988_v59 = vadd.f32 %v3771_v39, %v3626_v2  ;;  %v3984_v1 = vpop.f32.mrf.mxu1  ;;  %v3632_v26 = vadd.f32 %v8460_v51, %v3270_v22  ;;  %v7347_v57 = vmov 3  }
 0x2fd   : > { %v4015_v10 = vadd.f32 %v8468_v12, %v4003_v62  ;;  %v8480_v32 = vmax.f32 %v4014_v29, 0.0  ;;  %v4006_v45 = vmul.f32 %v8464_v4, %v3993_v49  ;;  %v2543_v27 = vadd.f32 %v8440_v50, %v2246_v24  ;;  %v3911_v14 = vpop.f32.mrf.mxu0  ;;  %7238 = vset.pattern.permute.xlu0 %v7347_v57  ;;  %v9330_v24 = vld [vmem:[#allocation9_spill] sm:$0xff] }
 0x2fe   : > { %v4012_v16 = vadd.f32 %v8468_v12, %v4000_v30  ;;  %v4001_v20 = vmul.f32 %v8464_v4, %v3988_v59  ;;  %v3994_v13 = vadd.f32 %v3984_v1, %v3632_v26  ;;  %v7239_v30 = vld [vmem:[%s9187_s5] sm:$0xff] }
 0x2ff   : > { %5628 = vrot.lane.b32.xlu0 %v8480_v32, %s7339_s11  ;;  %4065 = vrot.lane.b32.xlu1 %v8480_v32, %s7335_s28  ;;  %v8488_v63 = vmax.f32 %v4015_v10, 0.0  ;;  %v4018_v36 = vadd.f32 %v8468_v12, %v4006_v45  ;;  %v2905_v48 = vadd.f32 %v8448_v6, %v2543_v27  ;;  %v2544_v6 = vadd.f32 %v8442_v7, %v8434_v53  ;;  %v3913_v25 = vpop.f32.mrf.mxu0  ;;  %v9331_v27 = vld [vmem:[#allocation12_spill] sm:$0xff] }
 0x300   : > { %v8517_v15 = vmax.f32 %v4012_v16, 0.0  ;;  %v4013_v58 = vadd.f32 %v8468_v12, %v4001_v20  ;;  %v4007_v51 = vmul.f32 %v8464_v4, %v3994_v13  ;;  %v7119_v13 = vld [vmem:[%s9186_s4 + $0x8] sm:$0xff] }
 0x301   : > { %v8519_v34 = vmax.f32 %v4018_v36, 0.0  ;;  %v3267_v3 = vadd.f32 %v8456_v8, %v2905_v48  ;;  %v2906_v8 = vadd.f32 %v8450_v11, %v2544_v6 }
 0x302   : > { %v8549_v52 = vmax.f32 %v4013_v58, 0.0  ;;  %v4019_v0 = vadd.f32 %v8468_v12, %v4007_v51 }
 0x303   : > { %4067 = vrot.lane.b32.xlu0 %v8488_v63, %s7335_s28  ;;  %4032 = vrot.lane.b32.xlu1 %v8480_v32, %s7336_s29  ;;  %v3629_v50 = vadd.f32 %v8473_v40, %v3267_v3  ;;  %v3268_v40 = vadd.f32 %v8458_v31, %v2906_v8  ;;  %v9333_v8 = vld [vmem:[#allocation14_spill] sm:$0xff] }
 0x304   : > { %v8566_v29 = vmax.f32 %v4019_v0, 0.0  ;;  %v9332_v0 = vld [vmem:[#allocation13_spill] sm:$0xff] }
 0x305   : > { %v3991_v62 = vadd.f32 %v3911_v14, %v3629_v50  ;;  %v3630_v7 = vadd.f32 %v8482_v28, %v3268_v40 }
 0x307   : > { %4034 = vrot.lane.b32.xlu0 %v8488_v63, %s7336_s29  ;;  %4673 = vrot.lane.b32.xlu1 %v8480_v32, %s7337_s9  ;;  %v4004_v5 = vmul.f32 %v8464_v4, %v3991_v62  ;;  %v3992_v53 = vadd.f32 %v3913_v25, %v3630_v7 }
 0x309   : > { %v4016_v11 = vadd.f32 %v8468_v12, %v4004_v5  ;;  %v4005_v10 = vmul.f32 %v8464_v4, %v3992_v53 }
 0x30b   : > { %4675 = vrot.lane.b32.xlu0 %v8488_v63, %s7337_s9  ;;  %5002 = vrot.lane.b32.xlu1 %v8480_v32, %s7338_s10  ;;  %v8579_v31 = vmax.f32 %v4016_v11, 0.0  ;;  %v4017_v28 = vadd.f32 %v8468_v12, %v4005_v10 }
 0x30d   : > { %v8591_v60 = vmax.f32 %v4017_v28, 0.0 }
 0x30f   : > { %5004 = vrot.lane.b32.xlu0 %v8488_v63, %s7338_s10  ;;  %5630 = vrot.lane.b32.xlu1 %v8488_v63, %s7339_s11 }
 0x313   : > { %4073 = vrot.lane.b32.xlu0 %v8519_v34, %s7335_s28  ;;  %4061 = vrot.lane.b32.xlu1 %v8517_v15, %s7335_s28 }
 0x317   : > { %4040 = vrot.lane.b32.xlu0 %v8519_v34, %s7336_s29  ;;  %4028 = vrot.lane.b32.xlu1 %v8517_v15, %s7336_s29 }
 0x31b   : > { %4681 = vrot.lane.b32.xlu0 %v8519_v34, %s7337_s9  ;;  %4669 = vrot.lane.b32.xlu1 %v8517_v15, %s7337_s9 }
 0x31f   : > { %5010 = vrot.lane.b32.xlu0 %v8519_v34, %s7338_s10  ;;  %4998 = vrot.lane.b32.xlu1 %v8517_v15, %s7338_s10 }
 0x323   : > { %4063 = vrot.lane.b32.xlu0 %v8549_v52, %s7335_s28  ;;  %5624 = vrot.lane.b32.xlu1 %v8517_v15, %s7339_s11 }
 0x327   : > { %4030 = vrot.lane.b32.xlu0 %v8549_v52, %s7336_s29  ;;  %5626 = vrot.lane.b32.xlu1 %v8549_v52, %s7339_s11 }
 0x32b   : > { %4671 = vrot.lane.b32.xlu0 %v8549_v52, %s7337_s9  ;;  %4075 = vrot.lane.b32.xlu1 %v8566_v29, %s7335_s28 }
 0x32f   : > { %5000 = vrot.lane.b32.xlu0 %v8549_v52, %s7338_s10  ;;  %4042 = vrot.lane.b32.xlu1 %v8566_v29, %s7336_s29 }
 0x333   : > { %4069 = vrot.lane.b32.xlu0 %v8579_v31, %s7335_s28  ;;  %4683 = vrot.lane.b32.xlu1 %v8566_v29, %s7337_s9 }
 0x337   : > { %4036 = vrot.lane.b32.xlu0 %v8579_v31, %s7336_s29  ;;  %5012 = vrot.lane.b32.xlu1 %v8566_v29, %s7338_s10 }
 0x33b   : > { %4677 = vrot.lane.b32.xlu0 %v8579_v31, %s7337_s9  ;;  %4071 = vrot.lane.b32.xlu1 %v8591_v60, %s7335_s28  ;;  %s9328_s28 = smov 95  }
 0x33f   : > { %5006 = vrot.lane.b32.xlu0 %v8579_v31, %s7338_s10  ;;  %5636 = vrot.lane.b32.xlu1 %v8519_v34, %s7339_s11 }
 0x343   : > { %5632 = vrot.lane.b32.xlu0 %v8579_v31, %s7339_s11  ;;  %4038 = vrot.lane.b32.xlu1 %v8591_v60, %s7336_s29  ;;  %s7270_s29 = sshll.u32 %s7348_s25, 4  ;;  %s7271_s29 = int_to_ptr.vmem [resolvable:$false] %s7270_s29 }
 0x347   : > { %5638 = vrot.lane.b32.xlu0 %v8566_v29, %s7339_s11  ;;  %5955 = vrot.lane.b32.xlu1 %v8549_v52, %s7341_s12 }
 0x34b   : > { %5957 = vrot.lane.b32.xlu0 %v8480_v32, %s7341_s12  ;;  %4679 = vrot.lane.b32.xlu1 %v8591_v60, %s7337_s9  ;;  %s7272_s9 = scalar_lea.vmem %s7271_s29, 2048 }
 0x34f   : > { %5961 = vrot.lane.b32.xlu0 %v8579_v31, %s7341_s12  ;;  %5959 = vrot.lane.b32.xlu1 %v8488_v63, %s7341_s12 }
 0x353   : > { %5967 = vrot.lane.b32.xlu0 %v8566_v29, %s7341_s12  ;;  %5008 = vrot.lane.b32.xlu1 %v8591_v60, %s7338_s10 }
 0x357   : > { %6286 = vrot.lane.b32.xlu0 %v8480_v32, %s7342_s13  ;;  %5953 = vrot.lane.b32.xlu1 %v8517_v15, %s7341_s12 }
 0x35b   : > { %6290 = vrot.lane.b32.xlu0 %v8579_v31, %s7342_s13  ;;  %5965 = vrot.lane.b32.xlu1 %v8519_v34, %s7341_s12 }
 0x35f   : > { %6296 = vrot.lane.b32.xlu0 %v8566_v29, %s7342_s13  ;;  %6284 = vrot.lane.b32.xlu1 %v8549_v52, %s7342_s13 }
 0x363   : > { %5634 = vrot.lane.b32.xlu0 %v8591_v60, %s7339_s11  ;;  %6288 = vrot.lane.b32.xlu1 %v8488_v63, %s7342_s13 }
 0x367   : > { %6615 = vrot.lane.b32.xlu0 %v8480_v32, %s9328_s28  ;;  %6282 = vrot.lane.b32.xlu1 %v8517_v15, %s7342_s13 }
 0x36b   : > { %5963 = vrot.lane.b32.xlu0 %v8591_v60, %s7341_s12  ;;  %6294 = vrot.lane.b32.xlu1 %v8519_v34, %s7342_s13 }
 0x36f   : > { %6619 = vrot.lane.b32.xlu0 %v8579_v31, %s9328_s28  ;;  %6613 = vrot.lane.b32.xlu1 %v8549_v52, %s9328_s28 }
 0x371   : > { %v8649_v4 = vpop.permute.xlu0 %5628  ;;  %v4066_v12 = vpop.permute.xlu1 %4065 }
 0x373   : > { %6292 = vrot.lane.b32.xlu0 %v8591_v60, %s7342_s13  ;;  %6617 = vrot.lane.b32.xlu1 %v8488_v63, %s9328_s28  ;;  %s257_s13 = sand.u32 1, %s7322_s22  }
 0x374   : > { %s7072_s14 = sshll.u32 %s257_s13, 6  ;;  %s6981_s19 = scalar_lea.sflag [#allocation4], %s257_s13 }
 0x375   : > { %v4068_v41 = vpop.permute.xlu0 %4067  ;;  %v8655_v46 = vpop.permute.xlu1 %4032  ;;  %s259_s20 = scalar_lea.vmem [#allocation5], %s7072_s14 }
 0x376   : > { %v4081_v54 = vsel %vm900_vm0, %v4066_v12, %v4068_v41  ;;  %s6995_s15 = sshll.u32 %s259_s20, 4  ;;  %s6996_s15 = int_to_ptr.vmem [resolvable:$true] %s6995_s15 }
 0x377   : > { %v4088_v19 = vmul.f32 %v4081_v54, %v9329_v61  ;;  %6621 = vrot.lane.b32.xlu0 %v8591_v60, %s9328_s28  ;;  %6611 = vrot.lane.b32.xlu1 %v8517_v15, %s9328_s28  ;;  %p7273_p11 = scmp.lt.s32.totalorder %s6996_s15, %s7271_s29 }
 0x379   : > { %v8664_v35 = vpop.permute.xlu0 %4034  ;;  %4199 = vmatprep.subr.mxu1 %v4088_v19  ;;  %v8666_v23 = vpop.permute.xlu1 %4673 }
 0x37a   : > { %v4048_v56 = vsel %vm834_vm2, %v8655_v46, %v8664_v35 }
 0x37b   : > { %6625 = vrot.lane.b32.xlu0 %v8566_v29, %s9328_s28  ;;  %6623 = vrot.lane.b32.xlu1 %v8519_v34, %s9328_s28  ;;  %s7266_s28 = scalar_lea.vmem %s6996_s15, 1024 }
 0x37c   : > { %p7267_p8 = scmp.ne.s32.totalorder %s6996_s15, %s7266_s28  ;;  %p7274_p12 = scmp.lt.s32.totalorder %s7272_s9, %s7266_s28 }
 0x37d   : > { %v8672_v49 = vpop.permute.xlu0 %4675  ;;  %v8674_v44 = vpop.permute.xlu1 %5002 }
 0x37e   : > { %p7268_p9 = pnand %p7267_p8, %p7422_p5  ;;  %p7275_p13 = por %p7274_p12, %p7273_p11 }
 0x37f   : > { %6941 = vperm.xlu1 %7237, %v7239_v30   ;;  %6953 = vperm.xlu0 %7238, %v7239_v30  }
 0x380   : > { %p7269_p10 = pneg %p7268_p9 }
 0x381   : > { %v8679_v45 = vpop.permute.xlu0 %5004  ;;  %v8681_v33 = vpop.permute.xlu1 %5630 }
 0x382   : > { %v8687_v17 = vsel %vm2563_vm5, %v8649_v4, %v8681_v33  ;;  %p7276_p0 = pnand %p7275_p13, %p7269_p10 }
 0x385   : > { %v4074_v16 = vpop.permute.xlu0 %4073  ;;  %v4062_v36 = vpop.permute.xlu1 %4061 }
 0x389   : > { %v8689_v47 = vpop.permute.xlu0 %4040  ;;  %v4029_v18 = vpop.permute.xlu1 %4028 }
 0x38d   : > { %v8691_v39 = vpop.permute.xlu0 %4681  ;;  %v8693_v2 = vpop.permute.xlu1 %4669 }
 0x391   : > { %v8695_v9 = vpop.permute.xlu0 %5010  ;;  %v8697_v59 = vpop.permute.xlu1 %4998 }
 0x395   : > { %v4064_v43 = vpop.permute.xlu0 %4063  ;;  %v8699_v22 = vpop.permute.xlu1 %5624 }
 0x396   : > { %v4082_v20 = vsel %vm900_vm0, %v4064_v43, %v4066_v12  ;;  %v4083_v1 = vsel %vm900_vm0, %v4062_v36, %v4064_v43 }
 0x397   : > { %v4086_v26 = vmul.f32 %v4083_v1, %v9330_v24  ;;  %v4087_v58 = vmul.f32 %v4082_v20, %v9331_v27  ;;  %v9334_v1 = vld [vmem:[#allocation16_spill] sm:$0xff] }
 0x398   : > { %v4055_v24 = vmul.f32 %v4048_v56, %v9334_v1  ;;  %v9346_v1 = vld [vmem:[#allocation27_spill] sm:$0xff] }
 0x399   : > { %4200 = vmatpush1.msra.mxu1 %v4087_v58  ;;  %v4031_v48 = vpop.permute.xlu0 %4030  ;;  %4128 = vmatprep.subr.mxu0 %v4086_v26  ;;  %v8710_v3 = vpop.permute.xlu1 %5626  ;;  %v9336_v58 = vld [vmem:[#allocation15_spill] sm:$0xff] }
 0x39a   : > { %7121 = vmatmul.mubr.msk.f32.vlgmr.msra.gmra.mxu1 %vm951_vm1, %v7119_v13  ;;  %v4049_v19 = vsel %vm834_vm2, %v4031_v48, %v8655_v46 }
 0x39b   : > { %4375 = vmatprep.mubr.f32.mxu1 %v9277_v55 }
 0x39d   : > { %v4672_v51 = vpop.permute.xlu0 %4671  ;;  %v4076_v14 = vpop.permute.xlu1 %4075 }
 0x39e   : > { %v4077_v50 = vsel %vm900_vm0, %v4074_v16, %v4076_v14  ;;  %v4084_v6 = vsel %vm900_vm0, %v4076_v14, %v4062_v36  ;;  %v9338_v14 = vld [vmem:[#allocation20_spill] sm:$0xff] }
 0x39f   : > { %v4085_v62 = vmul.f32 %v4084_v6, %v9332_v0  ;;  %v4092_v40 = vmul.f32 %v4077_v50, %v9333_v8  ;;  %v4060_v6 = vld [vmem:[%s9186_s4] sm:$0xff]  ;;  %v9339_v0 = vld [vmem:[#allocation23_spill] sm:$0xff] }
 0x3a1   : > { %v8720_v5 = vpop.permute.xlu0 %5000  ;;  %4129 = vmatpush1.msra.mxu0 %v4085_v62  ;;  %4341 = vmatprep.subr.mxu1 %v4092_v40  ;;  %v4043_v25 = vpop.permute.xlu1 %4042 }
 0x3a2   : > { %7120 = vmatmul.mubr.msk.f32.vlgmr.msra.gmra.mxu0 %vm951_vm1, %v7119_v13  ;;  %v4044_v43 = vsel %vm834_vm2, %v8689_v47, %v4043_v25 }
 0x3a3   : > { %4304 = vmatprep.mubr.f32.mxu0 %v9277_v55  ;;  %v4059_v50 = vmul.f32 %v4044_v43, %v9338_v14 }
 0x3a5   : > { %v4070_v7 = vpop.permute.xlu0 %4069  ;;  %v4684_v11 = vpop.permute.xlu1 %4683 }
 0x3a6   : > { %v4080_v28 = vsel %vm900_vm0, %v4068_v41, %v4070_v7  ;;  %v4050_v41 = vsel %vm834_vm2, %v4029_v18, %v4031_v48  ;;  %v4054_v48 = vmul.f32 %v4049_v19, %v9336_v58 }
 0x3a7   : > { %v4089_v20 = vmul.f32 %v4080_v28, %v7768_v37  ;;  %v9337_v37 = vld [vmem:[#allocation19_spill] sm:$0xff] }
 0x3a9   : > { %v4037_v53 = vpop.permute.xlu0 %4036  ;;  %v8724_v10 = vpop.permute.xlu1 %5012 }
 0x3aa   : > { %v4047_v8 = vsel %vm834_vm2, %v8664_v35, %v4037_v53  ;;  %v4691_v35 = vsel %vm1542_vm3, %v8693_v2, %v4672_v51 }
 0x3ad   : > { %v8728_v12 = vpop.permute.xlu0 %4677  ;;  %v4072_v54 = vpop.permute.xlu1 %4071 }
 0x3ae   : > { %v4078_v57 = vsel %vm900_vm0, %v4072_v54, %v4074_v16  ;;  %v4079_v61 = vsel %vm900_vm0, %v4070_v7, %v4072_v54  ;;  %v4051_v16 = vsel %vm834_vm2, %v4043_v25, %v4029_v18  ;;  %v9340_v54 = vld [vmem:[#allocation21_spill] sm:$0xff]  ;;  %v4688_v58 = vsel %vm1542_vm3, %v8672_v49, %v8728_v12 }
 0x3af   : > { %v4090_v30 = vmul.f32 %v4079_v61, %v7778_v42  ;;  %v4091_v36 = vmul.f32 %v4078_v57, %v7772_v38  ;;  %v4689_v38 = vsel %vm1542_vm3, %v8666_v23, %v8672_v49  ;;  %v9335_v42 = vld [vmem:[#allocation18_spill] sm:$0xff]  ;;  %v4052_v18 = vmul.f32 %v4051_v16, %v9337_v37  ;;  %v9345_v16 = vld [vmem:[#allocation28_spill] sm:$0xff] }
 0x3b0   : > { %v4053_v27 = vmul.f32 %v4050_v41, %v9335_v42  ;;  %v4696_v62 = vmul.f32 %v4689_v38, %v9339_v0  ;;  %v9341_v57 = vld [vmem:[#allocation22_spill] sm:$0xff] }
 0x3b1   : > { %v8752_v26 = vpop.permute.xlu0 %5006  ;;  %4270 = vmatprep.subr.mxu0 %v4090_v30  ;;  %4342 = vmatpush1.msra.mxu1 %v4091_v36  ;;  %v8754_v46 = vpop.permute.xlu1 %5636  ;;  %v5018_v30 = vsel %vm1904_vm4, %v8674_v44, %v8679_v45  ;;  %v9343_v36 = vld [vmem:[#allocation25_spill] sm:$0xff]  ;;  %v7128_v38 = vld [vmem:[%s9186_s4 + $0x10] sm:$0xff] }
 0x3b2   : > { %4271 = vmatpush1.msra.mxu0 %v4089_v20  ;;  %7123 = vmatmul.mubr.msk.f32.vlgmr.msra.gmra.mxu1 %vm951_vm1, %v7119_v13  ;;  %v4694_v43 = vmul.f32 %v4691_v35, %v9343_v36  ;;  %v9347_v42 = vld [vmem:[#allocation30_spill] sm:$0xff]  ;;  %v9352_v35 = vld [vmem:[#allocation32_spill] sm:$0xff]  ;;  %v9355_v36 = vld [vmem:[#allocation37_spill] sm:$0xff] }
 0x3b3   : > { %4486 = vmatprep.subr.mxu1 %v4055_v24  ;;  %7122 = vmatmul.mubr.msk.f32.vlgmr.msra.gmra.mxu0 %vm951_vm1, %v7119_v13  ;;  %v4690_v13 = vsel %vm1542_vm3, %v4672_v51, %v8666_v23  ;;  %v4685_v23 = vsel %vm1542_vm3, %v8691_v39, %v4684_v11 }
 0x3b4   : > { %4415 = vmatprep.subr.mxu0 %v4053_v27  ;;  %4487 = vmatpush1.msra.mxu1 %v4054_v48  ;;  %v4700_v24 = vmul.f32 %v4685_v23, %v9346_v1  ;;  %v5025_v27 = vmul.f32 %v5018_v30, %v9347_v42  ;;  %v5017_v23 = vsel %vm1904_vm4, %v8679_v45, %v8752_v26  ;;  %v9356_v45 = vld [vmem:[#allocation38_spill] sm:$0xff]  ;;  %v7138_v1 = vld [vmem:[%s9186_s4 + $0x20] sm:$0xff] }
 0x3b5   : > { %4416 = vmatpush1.msra.mxu0 %v4052_v18  ;;  %4628 = vmatprep.subr.mxu1 %v4059_v50  ;;  %v8773_v40 = vpop.permute.xlu0 %5632  ;;  %v4039_v25 = vpop.permute.xlu1 %4038  ;;  %v5019_v18 = vsel %vm1904_vm4, %v8720_v5, %v8674_v44  ;;  %v5020_v50 = vsel %vm1904_vm4, %v8697_v59, %v8720_v5  ;;  %v9349_v44 = vld [vmem:[#allocation31_spill] sm:$0xff] }
 0x3b6   : > { %4520 = vmatprep.mubr.f32.mxu1 %v9277_v55  ;;  %v4045_v7 = vsel %vm834_vm2, %v4039_v25, %v8689_v47  ;;  %v4046_v28 = vsel %vm834_vm2, %v4037_v53, %v4039_v25  ;;  %4449 = vmatprep.mubr.f32.mxu0 %v9277_v55  ;;  %v4692_v47 = vsel %vm1542_vm3, %v4684_v11, %v8693_v2  ;;  %v9342_v53 = vld [vmem:[#allocation26_spill] sm:$0xff]  ;;  %v9344_v2 = vld [vmem:[#allocation24_spill] sm:$0xff] }
 0x3b7   : > { %v4057_v56 = vmul.f32 %v4046_v28, %v9340_v54  ;;  %v4058_v61 = vmul.f32 %v4045_v7, %v9341_v57  ;;  %7125 = vmatmul.mubr.msk.f32.vlgmr.msra.gmra.mxu1 %vm951_vm1, %v4060_v6  ;;  %7124 = vmatmul.mubr.msk.f32.vlgmr.msra.gmra.mxu0 %vm951_vm1, %v4060_v6  ;;  %v4056_v19 = vmul.f32 %v4047_v8, %v9342_v53  ;;  %v9350_v8 = vld [vmem:[#allocation34_spill] sm:$0xff]  ;;  %v9351_v7 = vld [vmem:[#allocation33_spill] sm:$0xff] }
 0x3b8   : > { %4662 = vmatprep.mubr.f32.mxu1 %v9277_v55  ;;  %4591 = vmatprep.mubr.f32.mxu0 %v9277_v55  ;;  %v4695_v11 = vmul.f32 %v4690_v13, %v9344_v2  ;;  %v4693_v20 = vmul.f32 %v4692_v47, %v9345_v16  ;;  %v4697_v5 = vmul.f32 %v4688_v58, %v9350_v8  ;;  %v9361_v58 = vld [vmem:[#allocation43_spill] sm:$0xff] }
 0x3b9   : > { %v8801_v51 = vpop.permute.xlu0 %5638  ;;  %4557 = vmatprep.subr.mxu0 %v4057_v56  ;;  %4629 = vmatpush1.msra.mxu1 %v4058_v61  ;;  %v8803_v41 = vpop.permute.xlu1 %5955  ;;  %v5023_v28 = vmul.f32 %v5020_v50, %v9351_v7  ;;  %v5024_v54 = vmul.f32 %v5019_v18, %v9352_v35  ;;  %v9353_v56 = vld [vmem:[#allocation35_spill] sm:$0xff] }
 0x3ba   : > { %4558 = vmatpush1.msra.mxu0 %v4056_v19  ;;  %4807 = vmatprep.subr.mxu1 %v4696_v62  ;;  %v7133_v61 = vld [vmem:[%s9186_s4 + $0x18] sm:$0xff] }
 0x3bb   : > { %7127 = vmatmul.mubr.msk.f32.vlgmr.msra.gmra.mxu1 %vm951_vm1, %v4060_v6  ;;  %7126 = vmatmul.mubr.msk.f32.vlgmr.msra.gmra.mxu0 %vm951_vm1, %v4060_v6  ;;  %v9348_v6 = vld [vmem:[#allocation29_spill] sm:$0xff] }
 0x3bc   : > { %4736 = vmatprep.subr.mxu0 %v4694_v43  ;;  %4808 = vmatpush1.msra.mxu1 %v4695_v11  ;;  %v9357_v11 = vld [vmem:[#allocation39_spill] sm:$0xff] }
 0x3bd   : > { %4737 = vmatpush1.msra.mxu0 %v4693_v20  ;;  %4949 = vmatprep.subr.mxu1 %v4700_v24  ;;  %v8823_v48 = vpop.permute.xlu0 %5957  ;;  %v4680_v37 = vpop.permute.xlu1 %4679  ;;  %v5026_v16 = vmul.f32 %v5017_v23, %v9357_v11  ;;  %v5643_v20 = vsel %vm2563_vm5, %v8681_v33, %v8773_v40  ;;  %v9372_v11 = vld [vmem:[#allocation51_spill] sm:$0xff] }
 0x3be   : > { %4841 = vmatprep.mubr.f32.mxu1 %v9277_v55  ;;  %v4686_v14 = vsel %vm1542_vm3, %v4680_v37, %v8691_v39  ;;  %v4687_v49 = vsel %vm1542_vm3, %v8728_v12, %v4680_v37  ;;  %4770 = vmatprep.mubr.f32.mxu0 %v9277_v55  ;;  %v5014_v39 = vsel %vm1904_vm4, %v8695_v9, %v8724_v10 }
 0x3bf   : > { %v4698_v0 = vmul.f32 %v4687_v49, %v9348_v6  ;;  %v4699_v62 = vmul.f32 %v4686_v14, %v9349_v44  ;;  %7130 = vmatmul.mubr.msk.f32.vlgmr.msra.gmra.mxu1 %vm951_vm1, %v7128_v38  ;;  %7129 = vmatmul.mubr.msk.f32.vlgmr.msra.gmra.mxu0 %vm951_vm1, %v7128_v38  ;;  %v5021_v12 = vsel %vm1904_vm4, %v8724_v10, %v8697_v59  ;;  %v9354_v10 = vld [vmem:[#allocation36_spill] sm:$0xff]  ;;  %v7143_v49 = vld [vmem:[%s9186_s4 + $0x28] sm:$0xff]  ;;  %v9363_v6 = vld [vmem:[#allocation10_spill] sm:$0xff] }
 0x3c0   : > { %4983 = vmatprep.mubr.f32.mxu1 %v9277_v55  ;;  %4912 = vmatprep.mubr.f32.mxu0 %v9277_v55  ;;  %v5022_v59 = vmul.f32 %v5021_v12, %v9353_v56  ;;  %v5029_v57 = vmul.f32 %v5014_v39, %v9354_v10  ;;  %v9364_v44 = vld [vmem:[#allocation8_spill] sm:$0xff]  ;;  %v9365_v39 = vld [vmem:[#allocation46_spill] sm:$0xff]  ;;  %v5974_v8 = vsel %vm2925_vm6, %v8803_v41, %v8823_v48  ;;  %v9368_v56 = vld [vmem:[#allocation47_spill] sm:$0xff] }
 0x3c1   : > { %v8856_v25 = vpop.permute.xlu0 %5961  ;;  %4878 = vmatprep.subr.mxu0 %v4698_v0  ;;  %4950 = vmatpush1.msra.mxu1 %v4699_v62  ;;  %v8858_v13 = vpop.permute.xlu1 %5959 }
 0x3c2   : > { %4879 = vmatpush1.msra.mxu0 %v4697_v5  ;;  %5136 = vmatprep.subr.mxu1 %v5025_v27  ;;  %v9360_v27 = vld [vmem:[#allocation41_spill] sm:$0xff] }
 0x3c3   : > { %7132 = vmatmul.mubr.msk.f32.vlgmr.msra.gmra.mxu1 %vm951_vm1, %v7128_v38  ;;  %7131 = vmatmul.mubr.msk.f32.vlgmr.msra.gmra.mxu0 %vm951_vm1, %v7128_v38  ;;  %v5647_v38 = vsel %vm2563_vm5, %v8801_v51, %v8699_v22 }
 0x3c4   : > { %5065 = vmatprep.subr.mxu0 %v5023_v28  ;;  %5137 = vmatpush1.msra.mxu1 %v5024_v54 }
 0x3c5   : > { %5066 = vmatpush1.msra.mxu0 %v5022_v59  ;;  %5278 = vmatprep.subr.mxu1 %v5029_v57  ;;  %v8873_v47 = vpop.permute.xlu0 %5967  ;;  %v5009_v53 = vpop.permute.xlu1 %5008  ;;  %v9370_v57 = vld [vmem:[#allocation49_spill] sm:$0xff] }
 0x3c6   : > { %5170 = vmatprep.mubr.f32.mxu1 %v9277_v55  ;;  %v5015_v19 = vsel %vm1904_vm4, %v5009_v53, %v8695_v9  ;;  %v5016_v30 = vsel %vm1904_vm4, %v8752_v26, %v5009_v53  ;;  %5099 = vmatprep.mubr.f32.mxu0 %v9277_v55 }
 0x3c7   : > { %v5027_v43 = vmul.f32 %v5016_v30, %v9355_v36  ;;  %v5028_v2 = vmul.f32 %v5015_v19, %v9356_v45  ;;  %7135 = vmatmul.mubr.msk.f32.vlgmr.msra.gmra.mxu1 %vm951_vm1, %v7133_v61  ;;  %7134 = vmatmul.mubr.msk.f32.vlgmr.msra.gmra.mxu0 %vm951_vm1, %v7133_v61  ;;  %v7148_v36 = vld [vmem:[%s9186_s4 + $0x30] sm:$0xff] }
 0x3c8   : > { %5312 = vmatprep.mubr.f32.mxu1 %v9277_v55  ;;  %5241 = vmatprep.mubr.f32.mxu0 %v9277_v55  ;;  %v9371_v45 = vld [vmem:[#allocation50_spill] sm:$0xff] }
 0x3c9   : > { %v8890_v9 = vpop.permute.xlu0 %6286  ;;  %5207 = vmatprep.subr.mxu0 %v5027_v43  ;;  %5279 = vmatpush1.msra.mxu1 %v5028_v2  ;;  %v5954_v26 = vpop.permute.xlu1 %5953 }
 0x3ca   : > { %5208 = vmatpush1.msra.mxu0 %v5026_v16  ;;  %5433 = vmatprep.subr.mxu1 %v8488_v63  ;;  %v5645_v63 = vsel %vm2563_vm5, %v8710_v3, %v8649_v4  ;;  %v5975_v7 = vsel %vm2925_vm6, %v5954_v26, %v8803_v41  ;;  %v5976_v28 = vsel %vm2925_vm6, %v8873_v47, %v5954_v26  ;;  %v9369_v41 = vld [vmem:[#allocation48_spill] sm:$0xff] }
 0x3cb   : > { %7137 = vmatmul.mubr.msk.f32.vlgmr.msra.gmra.mxu1 %vm951_vm1, %v7133_v61  ;;  %7136 = vmatmul.mubr.msk.f32.vlgmr.msra.gmra.mxu0 %vm951_vm1, %v7133_v61  ;;  %v5977_v10 = vmul.f32 %v5975_v7, %v9369_v41  ;;  %v5984_v61 = vmul.f32 %v5976_v28, %v9370_v57  ;;  %v9373_v26 = vld [vmem:[#allocation52_spill] sm:$0xff]  ;;  %v9384_v28 = vld [vmem:[#allocation65_spill] sm:$0xff] }
 0x3cc   : > { %5362 = vmatprep.subr.mxu0 %v8549_v52  ;;  %5434 = vmatpush1.msra.mxu1 %v8480_v32  ;;  %v9358_v32 = vld [vmem:[#allocation40_spill] sm:$0xff] }
 0x3cd   : > { %5363 = vmatpush1.msra.mxu0 %v8517_v15  ;;  %5575 = vmatprep.subr.mxu1 %v8566_v29  ;;  %v8910_v24 = vpop.permute.xlu0 %6290  ;;  %v8912_v33 = vpop.permute.xlu1 %5965  ;;  %v5651_v52 = vmul.f32 %v5643_v20, %v9358_v32  ;;  %v5646_v15 = vsel %vm2563_vm5, %v8699_v22, %v8710_v3  ;;  %v9359_v29 = vld [vmem:[#allocation42_spill] sm:$0xff]  ;;  %v5650_v3 = vmul.f32 %v8687_v17, %v9360_v27  ;;  %v9362_v22 = vld [vmem:[#allocation44_spill] sm:$0xff] }
 0x3ce   : > { %5467 = vmatprep.mubr.f32.mxu1 %v9277_v55  ;;  %5504 = vmatprep.subr.mxu0 %v8591_v60  ;;  %v5649_v4 = vmul.f32 %v5645_v63, %v9359_v29  ;;  %v5648_v37 = vmul.f32 %v5646_v15, %v9361_v58  ;;  %v5655_v18 = vmul.f32 %v5647_v38, %v9362_v22  ;;  %v9376_v27 = vld [vmem:[#allocation54_spill] sm:$0xff]  ;;  %v7158_v41 = vld [vmem:[%s9186_s4 + $0x40] sm:$0xff] }
 0x3cf   : > { %5396 = vmatprep.mubr.f32.mxu0 %v9277_v55  ;;  %7140 = vmatmul.mubr.msk.f32.vlgmr.msra.gmra.mxu1 %vm951_vm1, %v7138_v1  ;;  %v5969_v23 = vsel %vm2925_vm6, %v8912_v33, %v8873_v47 }
 0x3d0   : > { %5576 = vmatpush1.msra.mxu1 %v8519_v34  ;;  %7139 = vmatmul.mubr.msk.f32.vlgmr.msra.gmra.mxu0 %vm951_vm1, %v7138_v1  ;;  %v5640_v34 = vsel %vm2563_vm5, %v8754_v46, %v8801_v51  ;;  %v5983_v2 = vmul.f32 %v5969_v23, %v9371_v45  ;;  %v9386_v23 = vld [vmem:[#allocation64_spill] sm:$0xff] }
 0x3d1   : > { %5505 = vmatpush1.msra.mxu0 %v8579_v31  ;;  %5762 = vmatprep.subr.mxu1 %v5651_v52  ;;  %v8931_v60 = vpop.permute.xlu0 %6296  ;;  %v8933_v42 = vpop.permute.xlu1 %6284  ;;  %v5972_v31 = vsel %vm2925_vm6, %v8858_v13, %v8856_v25  ;;  %v5654_v0 = vmul.f32 %v5640_v34, %v9363_v6 }
 0x3d2   : > { %5691 = vmatprep.subr.mxu0 %v5649_v4  ;;  %5609 = vmatprep.mubr.f32.mxu1 %v9277_v55  ;;  %v9375_v4 = vld [vmem:[#allocation55_spill] sm:$0xff] }
 0x3d3   : > { %5538 = vmatprep.mubr.f32.mxu0 %v9277_v55  ;;  %7142 = vmatmul.mubr.msk.f32.vlgmr.msra.gmra.mxu1 %vm951_vm1, %v7138_v1 }
 0x3d4   : > { %5763 = vmatpush1.msra.mxu1 %v5650_v3  ;;  %7141 = vmatmul.mubr.msk.f32.vlgmr.msra.gmra.mxu0 %vm951_vm1, %v7138_v1  ;;  %v6303_v1 = vsel %vm3287_vm7, %v8933_v42, %v8890_v9 }
 0x3d5   : > { %5692 = vmatpush1.msra.mxu0 %v5648_v37  ;;  %5904 = vmatprep.subr.mxu1 %v5655_v18  ;;  %v5635_v17 = vpop.permute.xlu0 %5634  ;;  %v6289_v14 = vpop.permute.xlu1 %6288  ;;  %v6307_v38 = vmul.f32 %v6303_v1, %v9375_v4  ;;  %v9378_v37 = vld [vmem:[#allocation57_spill] sm:$0xff]  ;;  %v9379_v18 = vld [vmem:[#allocation58_spill] sm:$0xff] }
 0x3d6   : > { %v5641_v51 = vsel %vm2563_vm5, %v5635_v17, %v8754_v46  ;;  %v5642_v50 = vsel %vm2563_vm5, %v8773_v40, %v5635_v17  ;;  %5796 = vmatprep.mubr.f32.mxu1 %v9277_v55  ;;  %5725 = vmatprep.mubr.f32.mxu0 %v9277_v55  ;;  %v5973_v46 = vsel %vm2925_vm6, %v8823_v48, %v8858_v13  ;;  %v9366_v40 = vld [vmem:[#allocation45_spill] sm:$0xff]  ;;  %v7153_v17 = vld [vmem:[%s9186_s4 + $0x38] sm:$0xff] }
 0x3d7   : > { %v5652_v62 = vmul.f32 %v5642_v50, %v9364_v44  ;;  %v5653_v12 = vmul.f32 %v5641_v51, %v9365_v39  ;;  %v5980_v5 = vmul.f32 %v5972_v31, %v9366_v40  ;;  %7145 = vmatmul.mubr.msk.f32.vlgmr.msra.gmra.mxu1 %vm951_vm1, %v7143_v49  ;;  %v9367_v48 = vld [vmem:[#allocation17_spill] sm:$0xff]  ;;  %v5979_v59 = vmul.f32 %v5973_v46, %v9368_v56  ;;  %v9380_v50 = vld [vmem:[#allocation60_spill] sm:$0xff]  ;;  %v9382_v39 = vld [vmem:[#allocation59_spill] sm:$0xff] }
 0x3d8   : > { %7144 = vmatmul.mubr.msk.f32.vlgmr.msra.gmra.mxu0 %vm951_vm1, %v7143_v49  ;;  %5905 = vmatpush1.msra.mxu1 %v5654_v0  ;;  %v5978_v13 = vmul.f32 %v5974_v8, %v9367_v48  ;;  %v6301_v53 = vsel %vm3287_vm7, %v6289_v14, %v8910_v24  ;;  %v6302_v63 = vsel %vm3287_vm7, %v8890_v9, %v6289_v14  ;;  %v9381_v0 = vld [vmem:[#allocation61_spill] sm:$0xff]  ;;  %v9383_v8 = vld [vmem:[#allocation63_spill] sm:$0xff]  ;;  %v9385_v48 = vld [vmem:[#allocation62_spill] sm:$0xff] }
 0x3d9   : > { %v8982_v35 = vpop.permute.xlu0 %6615  ;;  %5833 = vmatprep.subr.mxu0 %v5653_v12  ;;  %v6283_v54 = vpop.permute.xlu1 %6282  ;;  %6091 = vmatprep.subr.mxu1 %v5980_v5  ;;  %v6308_v3 = vmul.f32 %v6302_v63, %v9376_v27 }
 0x3da   : > { %5938 = vmatprep.mubr.f32.mxu1 %v9277_v55  ;;  %5834 = vmatpush1.msra.mxu0 %v5652_v62  ;;  %v6304_v32 = vsel %vm3287_vm7, %v6283_v54, %v8933_v42  ;;  %v6305_v52 = vsel %vm3287_vm7, %v8931_v60, %v6283_v54  ;;  %v9377_v42 = vld [vmem:[#allocation56_spill] sm:$0xff] }
 0x3db   : > { %5867 = vmatprep.mubr.f32.mxu0 %v9277_v55  ;;  %7147 = vmatmul.mubr.msk.f32.vlgmr.msra.gmra.mxu1 %vm951_vm1, %v7143_v49  ;;  %v6306_v58 = vmul.f32 %v6304_v32, %v9377_v42  ;;  %v6313_v22 = vmul.f32 %v6305_v52, %v9378_v37 }
 0x3dc   : > { %7146 = vmatmul.mubr.msk.f32.vlgmr.msra.gmra.mxu0 %vm951_vm1, %v7143_v49  ;;  %6092 = vmatpush1.msra.mxu1 %v5979_v59 }
 0x3dd   : > { %6020 = vmatprep.subr.mxu0 %v5978_v13  ;;  %v5964_v19 = vpop.permute.xlu0 %5963  ;;  %v6295_v30 = vpop.permute.xlu1 %6294  ;;  %6233 = vmatprep.subr.mxu1 %v5984_v61 }
 0x3de   : > { %6021 = vmatpush1.msra.mxu0 %v5977_v10  ;;  %v5970_v47 = vsel %vm2925_vm6, %v5964_v19, %v8912_v33  ;;  %v5971_v43 = vsel %vm2925_vm6, %v8856_v25, %v5964_v19  ;;  %6125 = vmatprep.mubr.f32.mxu1 %v9277_v55  ;;  %v9374_v25 = vld [vmem:[#allocation53_spill] sm:$0xff]  ;;  %v6298_v9 = vsel %vm3287_vm7, %v6295_v30, %v8931_v60  ;;  %v9387_v19 = vld [vmem:[#allocation68_spill] sm:$0xff] }
 0x3df   : > { %v5981_v16 = vmul.f32 %v5971_v43, %v9372_v11  ;;  %v5982_v20 = vmul.f32 %v5970_v47, %v9373_v26  ;;  %6054 = vmatprep.mubr.f32.mxu0 %v9277_v55  ;;  %v6309_v33 = vmul.f32 %v6301_v53, %v9374_v25  ;;  %7150 = vmatmul.mubr.msk.f32.vlgmr.msra.gmra.mxu1 %vm951_vm1, %v7148_v36  ;;  %v9389_v43 = vld [vmem:[#allocation67_spill] sm:$0xff] }
 0x3e0   : > { %7149 = vmatmul.mubr.msk.f32.vlgmr.msra.gmra.mxu0 %vm951_vm1, %v7148_v36  ;;  %6234 = vmatpush1.msra.mxu1 %v5983_v2  ;;  %v6312_v60 = vmul.f32 %v6298_v9, %v9379_v18 }
 0x3e1   : > { %v6620_v15 = vpop.permute.xlu0 %6619  ;;  %6162 = vmatprep.subr.mxu0 %v5982_v20  ;;  %v6614_v29 = vpop.permute.xlu1 %6613  ;;  %6420 = vmatprep.subr.mxu1 %v6309_v33 }
 0x3e2   : > { %6267 = vmatprep.mubr.f32.mxu1 %v9277_v55  ;;  %6163 = vmatpush1.msra.mxu0 %v5981_v16 }
 0x3e3   : > { %6196 = vmatprep.mubr.f32.mxu0 %v9277_v55  ;;  %7152 = vmatmul.mubr.msk.f32.vlgmr.msra.gmra.mxu1 %vm951_vm1, %v7148_v36 }
 0x3e4   : > { %7151 = vmatmul.mubr.msk.f32.vlgmr.msra.gmra.mxu0 %vm951_vm1, %v7148_v36  ;;  %6421 = vmatpush1.msra.mxu1 %v6308_v3  ;;  %v9388_v36 = vld [vmem:[#allocation66_spill] sm:$0xff] }
 0x3e5   : > { %6349 = vmatprep.subr.mxu0 %v6307_v38  ;;  %v6293_v34 = vpop.permute.xlu0 %6292  ;;  %v6618_v31 = vpop.permute.xlu1 %6617  ;;  %6562 = vmatprep.subr.mxu1 %v6313_v22 }
 0x3e6   : > { %6350 = vmatpush1.msra.mxu0 %v6306_v58  ;;  %v6299_v14 = vsel %vm3287_vm7, %v6293_v34, %v6295_v30  ;;  %v6300_v49 = vsel %vm3287_vm7, %v8910_v24, %v6293_v34  ;;  %v6630_v51 = vsel %vm3649_vm8, %v6618_v31, %v6620_v15  ;;  %6454 = vmatprep.mubr.f32.mxu1 %v9277_v55 }
 0x3e7   : > { %v6310_v6 = vmul.f32 %v6300_v49, %v9380_v50  ;;  %v6311_v44 = vmul.f32 %v6299_v14, %v9381_v0  ;;  %v6631_v62 = vsel %vm3649_vm8, %v8982_v35, %v6618_v31  ;;  %v6638_v12 = vmul.f32 %v6630_v51, %v9382_v39  ;;  %6383 = vmatprep.mubr.f32.mxu0 %v9277_v55 }
 0x3e8   : > { %7155 = vmatmul.mubr.msk.f32.vlgmr.msra.gmra.mxu1 %vm951_vm1, %v7153_v17  ;;  %v6632_v24 = vsel %vm3649_vm8, %v6614_v29, %v8982_v35  ;;  %v6637_v46 = vmul.f32 %v6631_v62, %v9383_v8  ;;  %7154 = vmatmul.mubr.msk.f32.vlgmr.msra.gmra.mxu0 %vm951_vm1, %v7153_v17 }
 0x3e9   : > { %6563 = vmatpush1.msra.mxu1 %v6312_v60  ;;  %v6622_v40 = vpop.permute.xlu0 %6621  ;;  %v6612_v5 = vpop.permute.xlu1 %6611  ;;  %6491 = vmatprep.subr.mxu0 %v6311_v44  ;;  %v6636_v13 = vmul.f32 %v6632_v24, %v9385_v48 }
 0x3ea   : > { %6596 = vmatprep.mubr.f32.mxu1 %v9277_v55  ;;  %v6633_v7 = vsel %vm3649_vm8, %v6612_v5, %v6614_v29  ;;  %6749 = vmatprep.subr.mxu1 %v6638_v12  ;;  %v6629_v35 = vsel %vm3649_vm8, %v6620_v15, %v6622_v40 }
 0x3eb   : > { %v6635_v54 = vmul.f32 %v6633_v7, %v9384_v28  ;;  %6492 = vmatpush1.msra.mxu0 %v6310_v6  ;;  %6525 = vmatprep.mubr.f32.mxu0 %v9277_v55  ;;  %v6639_v45 = vmul.f32 %v6629_v35, %v9389_v43 }
 0x3ec   : > { %7157 = vmatmul.mubr.msk.f32.vlgmr.msra.gmra.mxu1 %vm951_vm1, %v7153_v17  ;;  %7156 = vmatmul.mubr.msk.f32.vlgmr.msra.gmra.mxu0 %vm951_vm1, %v7153_v17 }
 0x3ed   : > { %6750 = vmatpush1.msra.mxu1 %v6637_v46  ;;  %v6626_v56 = vpop.permute.xlu0 %6625  ;;  %v6624_v59 = vpop.permute.xlu1 %6623  ;;  %6678 = vmatprep.subr.mxu0 %v6636_v13 }
 0x3ee   : > { %v6634_v10 = vsel %vm3649_vm8, %v6626_v56, %v6612_v5  ;;  %6783 = vmatprep.mubr.f32.mxu1 %v9277_v55  ;;  %v6627_v57 = vsel %vm3649_vm8, %v6624_v59, %v6626_v56  ;;  %v6628_v61 = vsel %vm3649_vm8, %v6622_v40, %v6624_v59  ;;  %6679 = vmatpush1.msra.mxu0 %v6635_v54 }
 0x3ef   : > { %v6642_v53 = vmul.f32 %v6634_v10, %v9386_v23  ;;  %v6640_v30 = vmul.f32 %v6628_v61, %v9387_v19  ;;  %v6641_v47 = vmul.f32 %v6627_v57, %v9388_v36  ;;  %6712 = vmatprep.mubr.f32.mxu0 %v9277_v55 }
 0x3f0   : > { %7160 = vmatmul.mubr.msk.f32.vlgmr.msra.gmra.mxu1 %vm951_vm1, %v7158_v41  ;;  %7159 = vmatmul.mubr.msk.f32.vlgmr.msra.gmra.mxu0 %vm951_vm1, %v7158_v41 }
 0x3f1   : > { %6820 = vmatprep.subr.mxu0 %v6640_v30  ;;  %6891 = vmatprep.subr.mxu1 %v6642_v53 }
 0x3f2   : > { %6821 = vmatpush1.msra.mxu0 %v6639_v45  ;;  %6854 = vmatprep.mubr.f32.mxu0 %v9277_v55 }
 0x3f3   : > { %6892 = vmatpush1.msra.mxu1 %v6641_v47  ;;  %6925 = vmatprep.mubr.f32.mxu1 %v9277_v55 }
 0x3f4   : > { %7161 = vmatmul.mubr.msk.f32.vlgmr.msra.gmra.mxu0 %vm951_vm1, %v7158_v41  ;;  %7162 = vmatmul.mubr.msk.f32.vlgmr.msra.gmra.mxu1 %vm951_vm1, %v7158_v41 }
 0x45a   : > { %v4235_v21 = vpop.f32.mrf.mxu1 }
 0x45c   : > { %v4237_v11 = vpop.f32.mrf.mxu1 }
 0x462   : > { %v4164_v2 = vpop.f32.mrf.mxu0 }
 0x464   : > { %v4166_v16 = vpop.f32.mrf.mxu0 }
 0x472   : > { %v4377_v26 = vpop.f32.mrf.mxu1 }
 0x473   : > { %v4306_v20 = vpop.f32.mrf.mxu0 }
 0x474   : > { %v9096_v1 = vpop.f32.mrf.mxu1 }
 0x475   : > { %v9098_v63 = vpop.f32.mrf.mxu0 }
 0x477   : > { %v4522_v25 = vpop.f32.mrf.mxu1  ;;  %v4451_v33 = vpop.f32.mrf.mxu0 }
 0x478   : > { %v4523_v41 = vadd.f32 %v4522_v25, %v4235_v21  ;;  %v4452_v10 = vadd.f32 %v4451_v33, %v4164_v2 }
 0x479   : > { %v4524_v32 = vpop.f32.mrf.mxu1  ;;  %v4453_v52 = vpop.f32.mrf.mxu0 }
 0x47a   : > { %v4525_v23 = vadd.f32 %v4524_v32, %v4237_v11  ;;  %v4454_v19 = vadd.f32 %v4453_v52, %v4166_v16 }
 0x47b   : > { %v4664_v15 = vpop.f32.mrf.mxu1  ;;  %v4593_v55 = vpop.f32.mrf.mxu0 }
 0x47d   : > { %v9100_v29 = vpop.f32.mrf.mxu1  ;;  %v9102_v9 = vpop.f32.mrf.mxu0 }
 0x47e   : > { %v4667_v52 = vadd.f32 %v9100_v29, %v9096_v1 }
 0x47f   : > { %v4843_v4 = vpop.f32.mrf.mxu1  ;;  %v4772_v38 = vpop.f32.mrf.mxu0 }
 0x480   : > { %v4992_v53 = vadd.f32 %v4843_v4, %v4523_v41  ;;  %v4990_v30 = vadd.f32 %v4772_v38, %v4452_v10  ;;  %v4596_v4 = vadd.f32 %v9102_v9, %v9098_v63 }
 0x481   : > { %v4845_v27 = vpop.f32.mrf.mxu1  ;;  %v4774_v3 = vpop.f32.mrf.mxu0 }
 0x482   : > { %v4993_v43 = vadd.f32 %v4845_v27, %v4525_v23 }
 0x483   : > { %v4985_v42 = vpop.f32.mrf.mxu1  ;;  %v4914_v58 = vpop.f32.mrf.mxu0 }
 0x485   : > { %v9104_v37 = vpop.f32.mrf.mxu1  ;;  %v9106_v22 = vpop.f32.mrf.mxu0 }
 0x487   : > { %v5172_v18 = vpop.f32.mrf.mxu1  ;;  %v5101_v60 = vpop.f32.mrf.mxu0 }
 0x488   : > { %v5321_v45 = vadd.f32 %v5172_v18, %v4992_v53 }
 0x489   : > { %v5174_v34 = vpop.f32.mrf.mxu1  ;;  %v5103_v31 = vpop.f32.mrf.mxu0 }
 0x48b   : > { %v5314_v17 = vpop.f32.mrf.mxu1  ;;  %v5243_v14 = vpop.f32.mrf.mxu0 }
 0x48d   : > { %v9108_v49 = vpop.f32.mrf.mxu1  ;;  %v9110_v51 = vpop.f32.mrf.mxu0 }
 0x48e   : > { %9390 = vst [vmem:[#allocation11_spill] sm:$0xff] %v9108_v49  ;;  %9391 = vst [vmem:[#allocation9_spill] sm:$0xff] %v9110_v51  ;;  %v5322_v49 = vadd.f32 %v5174_v34, %v4993_v43 }
 0x48f   : > { %v5469_v50 = vpop.f32.mrf.mxu1 }
 0x490   : > { %v5398_v6 = vpop.f32.mrf.mxu0  ;;  %v5618_v21 = vadd.f32 %v5469_v50, %v5321_v45 }
 0x491   : > { %v5471_v0 = vpop.f32.mrf.mxu1 }
 0x492   : > { %v5400_v44 = vpop.f32.mrf.mxu0  ;;  %v5619_v38 = vadd.f32 %v5471_v0, %v5322_v49 }
 0x493   : > { %v5611_v62 = vpop.f32.mrf.mxu1 }
 0x494   : > { %v5540_v39 = vpop.f32.mrf.mxu0 }
 0x495   : > { %v9112_v12 = vpop.f32.mrf.mxu1  ;;  %v9396_v49 = vld [vmem:[#allocation11_spill] sm:$0xff] }
 0x496   : > { %9392 = vst [vmem:[#allocation12_spill] sm:$0xff] %v9112_v12  ;;  %v9114_v24 = vpop.f32.mrf.mxu0  ;;  %v5319_v12 = vadd.f32 %v5101_v60, %v4990_v30 }
 0x497   : > { %9393 = vst [vmem:[#allocation13_spill] sm:$0xff] %v9114_v24  ;;  %v5798_v8 = vpop.f32.mrf.mxu1  ;;  %v4991_v24 = vadd.f32 %v4774_v3, %v4454_v19 }
 0x498   : > { %v5727_v46 = vpop.f32.mrf.mxu0  ;;  %v5616_v32 = vadd.f32 %v5398_v6, %v5319_v12 }
 0x499   : > { %v5800_v40 = vpop.f32.mrf.mxu1  ;;  %v5320_v11 = vadd.f32 %v5103_v31, %v4991_v24 }
 0x49a   : > { %v5729_v5 = vpop.f32.mrf.mxu0  ;;  %v5945_v3 = vadd.f32 %v5727_v46, %v5616_v32  ;;  %v5948_v60 = vadd.f32 %v5800_v40, %v5619_v38  ;;  %v6942_v40 = vpop.permute.xlu1 %6941 }
 0x49b   : > { %v5940_v7 = vpop.f32.mrf.mxu1  ;;  %v5617_v27 = vadd.f32 %v5400_v44, %v5320_v11 }
 0x49c   : > { %v5869_v28 = vpop.f32.mrf.mxu0 }
 0x49d   : > { %v9116_v54 = vpop.f32.mrf.mxu1  ;;  %v5946_v29 = vadd.f32 %v5729_v5, %v5617_v27 }
 0x49e   : > { %9394 = vst [vmem:[#allocation14_spill] sm:$0xff] %v9116_v54  ;;  %v9118_v48 = vpop.f32.mrf.mxu0  ;;  %v4665_v54 = vadd.f32 %v4664_v15, %v4377_v26  ;;  %v5947_v26 = vadd.f32 %v5798_v8, %v5618_v21 }
 0x49f   : > { %9395 = vst [vmem:[#allocation16_spill] sm:$0xff] %v9118_v48  ;;  %v6127_v13 = vpop.f32.mrf.mxu1  ;;  %v4594_v48 = vadd.f32 %v4593_v55, %v4306_v20 }
 0x4a0   : > { %v6056_v35 = vpop.f32.mrf.mxu0  ;;  %v4996_v25 = vadd.f32 %v4985_v42, %v4665_v54  ;;  %v4997_v42 = vadd.f32 %v9104_v37, %v4667_v52  ;;  %v6276_v34 = vadd.f32 %v6127_v13, %v5947_v26 }
 0x4a1   : > { %v6129_v56 = vpop.f32.mrf.mxu1  ;;  %v4994_v33 = vadd.f32 %v4914_v58, %v4594_v48  ;;  %v4995_v58 = vadd.f32 %v9106_v22, %v4596_v4  ;;  %v6274_v63 = vadd.f32 %v6056_v35, %v5945_v3 }
 0x4a2   : > { %v6058_v59 = vpop.f32.mrf.mxu0  ;;  %v5325_v15 = vadd.f32 %v5314_v17, %v4996_v25  ;;  %v5326_v6 = vadd.f32 %v9396_v49, %v4997_v42  ;;  %v9397_v17 = vld [vmem:[#allocation9_spill] sm:$0xff]  ;;  %v6277_v0 = vadd.f32 %v6129_v56, %v5948_v60 }
 0x4a3   : > { %v6269_v57 = vpop.f32.mrf.mxu1  ;;  %v5323_v55 = vadd.f32 %v5243_v14, %v4994_v33  ;;  %v5324_v14 = vadd.f32 %v9397_v17, %v4995_v58  ;;  %v6275_v8 = vadd.f32 %v6058_v59, %v5946_v29 }
 0x4a4   : > { %v6198_v61 = vpop.f32.mrf.mxu0  ;;  %v5622_v50 = vadd.f32 %v5611_v62, %v5325_v15  ;;  %v9398_v62 = vld [vmem:[#allocation12_spill] sm:$0xff] }
 0x4a5   : > { %v9120_v36 = vpop.f32.mrf.mxu1  ;;  %v5620_v1 = vadd.f32 %v5540_v39, %v5323_v55  ;;  %v5623_v54 = vadd.f32 %v9398_v62, %v5326_v6  ;;  %v9399_v39 = vld [vmem:[#allocation13_spill] sm:$0xff] }
 0x4a6   : > { %v9122_v47 = vpop.f32.mrf.mxu0  ;;  %v5951_v24 = vadd.f32 %v5940_v7, %v5622_v50  ;;  %v5621_v5 = vadd.f32 %v9399_v39, %v5324_v14  ;;  %v6954_v7 = vpop.permute.xlu0 %6953  ;;  %v9401_v53 = vld [vmem:[#allocation16_spill] sm:$0xff] }
 0x4a7   : > { %v5949_v37 = vadd.f32 %v5869_v28, %v5620_v1  ;;  %v9400_v28 = vld [vmem:[#allocation14_spill] sm:$0xff] }
 0x4a8   : > { %v6456_v51 = vpop.f32.mrf.mxu1  ;;  %v6385_v2 = vpop.f32.mrf.mxu0  ;;  %v6280_v41 = vadd.f32 %v6269_v57, %v5951_v24  ;;  %v5952_v59 = vadd.f32 %v9400_v28, %v5623_v54  ;;  %v5950_v19 = vadd.f32 %v9401_v53, %v5621_v5 }
 0x4a9   : > { %v6605_v44 = vadd.f32 %v6456_v51, %v6276_v34  ;;  %v6603_v22 = vadd.f32 %v6385_v2, %v6274_v63  ;;  %v6278_v10 = vadd.f32 %v6198_v61, %v5949_v37 }
 0x4aa   : > { %v6458_v16 = vpop.f32.mrf.mxu1  ;;  %v6387_v20 = vpop.f32.mrf.mxu0  ;;  %v6281_v57 = vadd.f32 %v9120_v36, %v5952_v59  ;;  %v6279_v61 = vadd.f32 %v9122_v47, %v5950_v19 }
 0x4ab   : > { %v6606_v48 = vadd.f32 %v6458_v16, %v6277_v0  ;;  %v6604_v56 = vadd.f32 %v6387_v20, %v6275_v8 }
 0x4ac   : > { %v6598_v18 = vpop.f32.mrf.mxu1  ;;  %v6527_v31 = vpop.f32.mrf.mxu0 }
 0x4ad   : > { %v6609_v21 = vadd.f32 %v6598_v18, %v6280_v41  ;;  %v6607_v2 = vadd.f32 %v6527_v31, %v6278_v10 }
 0x4ae   : > { %v6600_v9 = vpop.f32.mrf.mxu1  ;;  %v6529_v12 = vpop.f32.mrf.mxu0 }
 0x4af   : > { %v6610_v15 = vadd.f32 %v6600_v9, %v6281_v57  ;;  %v6608_v55 = vadd.f32 %v6529_v12, %v6279_v61 }
 0x4b0   : > { %v6785_v46 = vpop.f32.mrf.mxu1  ;;  %v6714_v35 = vpop.f32.mrf.mxu0 }
 0x4b1   : > { %v6934_v13 = vadd.f32 %v6785_v46, %v6605_v44  ;;  %v6932_v51 = vadd.f32 %v6714_v35, %v6603_v22 }
 0x4b2   : > { %v6787_v23 = vpop.f32.mrf.mxu1  ;;  %v6716_v45 = vpop.f32.mrf.mxu0 }
 0x4b3   : > { %v6935_v30 = vadd.f32 %v6787_v23, %v6606_v48  ;;  %v6946_v43 = vmul.f32 %v6942_v40, %v6934_v13  ;;  %v6944_v25 = vmul.f32 %v6942_v40, %v6932_v51  ;;  %v6933_v33 = vadd.f32 %v6716_v45, %v6604_v56 }
 0x4b4   : > { %v6856_v16 = vpop.f32.mrf.mxu0  ;;  %v6927_v52 = vpop.f32.mrf.mxu1 }
 0x4b5   : > { %v6947_v11 = vmul.f32 %v6942_v40, %v6935_v30  ;;  %v6958_v32 = vadd.f32 %v6954_v7, %v6946_v43  ;;  %v6945_v4 = vmul.f32 %v6942_v40, %v6933_v33  ;;  %v6956_v38 = vadd.f32 %v6954_v7, %v6944_v25 }
 0x4b6   : > { %v6936_v26 = vadd.f32 %v6856_v16, %v6607_v2  ;;  %v6938_v20 = vadd.f32 %v6927_v52, %v6609_v21  ;;  %v6858_v18 = vpop.f32.mrf.mxu0  ;;  %v6929_v42 = vpop.f32.mrf.mxu1 }
 0x4b7   : > { %v6959_v27 = vadd.f32 %v6954_v7, %v6947_v11  ;;  %v6966_v3 = vmax.f32 %v6958_v32, 0.0  ;;  %v6957_v58 = vadd.f32 %v6954_v7, %v6945_v4  ;;  %v6964_v60 = vmax.f32 %v6956_v38, 0.0 }
 0x4b8   : > { %v6948_v34 = vmul.f32 %v6942_v40, %v6936_v26  ;;  %v6950_v36 = vmul.f32 %v6942_v40, %v6938_v20  ;;  %v6937_v31 = vadd.f32 %v6858_v18, %v6608_v55  ;;  %v6939_v50 = vadd.f32 %v6929_v42, %v6610_v15 }
 0x4b9   : > { %v6967_v47 = vmax.f32 %v6959_v27, 0.0  ;;  %6974 = vst [vmem:[%s259_s20 + $0x10] sm:$0xff] %v6966_v3  ;;  %v6965_v1 = vmax.f32 %v6957_v58, 0.0  ;;  %6972 = vst [vmem:[%s259_s20] sm:$0xff] %v6964_v60 }
 0x4ba   : > { %v6960_v29 = vadd.f32 %v6954_v7, %v6948_v34  ;;  %v6962_v63 = vadd.f32 %v6954_v7, %v6950_v36  ;;  %v6949_v9 = vmul.f32 %v6942_v40, %v6937_v31  ;;  %v6951_v49 = vmul.f32 %v6942_v40, %v6939_v50 }
 0x4bb   : > { %6975 = vst [vmem:[%s259_s20 + $0x18] sm:$0xff] %v6967_v47  ;;  %6973 = vst [vmem:[%s259_s20 + $0x8] sm:$0xff] %v6965_v1 }
 0x4bc   : > { %v6968_v6 = vmax.f32 %v6960_v29, 0.0  ;;  %v6970_v17 = vmax.f32 %v6962_v63, 0.0  ;;  %v6961_v14 = vadd.f32 %v6954_v7, %v6949_v9  ;;  %v6963_v0 = vadd.f32 %v6954_v7, %v6951_v49 }
 0x4be   : > { %6976 = vst [vmem:[%s259_s20 + $0x20] sm:$0xff] %v6968_v6  ;;  %6978 = vst [vmem:[%s259_s20 + $0x30] sm:$0xff] %v6970_v17  ;;  %v6969_v44 = vmax.f32 %v6961_v14, 0.0  ;;  %v6971_v12 = vmax.f32 %v6963_v0, 0.0 }
 0x4c0   : > { %6977 = vst [vmem:[%s259_s20 + $0x28] sm:$0xff] %v6969_v44  ;;  %6979 = vst [vmem:[%s259_s20 + $0x38] sm:$0xff] %v6971_v12 }
 0x4c1   : > { %7279 = shalt.err (!%p7276_p0)
}
 0x4c2   : > { %s7280_s10 = scalar_lea.hbm %s9145_s18, 1024  ;;  %s7284_s13 = scalar_lea.hbm %s9188_s6, 2048 }
 0x4c3   : > { %p7281_p1 = scmp.ne.s32.totalorder %s9145_s18, %s7280_s10  ;;  %p7285_p4 = scmp.lt.s32.totalorder %s9145_s18, %s9188_s6 }
 0x4c4   : > { %p7286_p7 = scmp.lt.s32.totalorder %s7284_s13, %s7280_s10 }
 0x4c5   : > { %p7282_p2 = pnand %p7281_p1, %p7422_p5 }
 0x4c6   : > { %p7287_p6 = por %p7286_p7, %p7285_p4 }
 0x4c7   : > { %p7283_p3 = pneg %p7282_p2 }
 0x4c9   : > { %p7288_p8 = pnand %p7287_p6, %p7283_p3 }
 0x4cb   : > { %7291 = shalt.err (!%p7288_p8)
}
 0x4cc   : > { %7174 = dma.vmem_to_hbm [thread:$0]  (%p7422_p5), %s6996_s15, 1024, %s9145_s18, %s6981_s19  }
 0x4cd PF: > { %p7186_p9 = scmp.ge.s32.totalorder %s7330_s24, 2  ;;  %s7007_s26 = sand.u32 1, %s7318_s21  }
 0x4ce   : > { %p9402_p10 = scmp.ne.s32.totalorder %s9258_s8, 0  ;;  %s7008_s16 = scalar_lea.sflag [#allocation4], %s7007_s26 }
 0x4d0   : > { %p7181_p11 = pnand %p7186_p9, %p9402_p10 }
 0x4d2   : > { %p7182_p12 = pneg %p7181_p11 }
 0x4d4   : > { %7313 = dma.done.wait (%p7182_p12), %s7008_s16, 1024  }
 0x4d5   : > { %7315 = vsyncadd (%p7182_p12), %s7008_s16, 4294966272  ;;  %p17_p13 = scmp.ge.s32.totalorder %s7409_s27, 4   ;;  %s9403_s21 = smov %s7322_s22 }
 0x4d6   : > { %s9404_s22 = smov %s7326_s23  ;;  %s9405_s23 = smov %s7420_s30 }
 0x4d7   : > { %s9406_s24 = smov %s7409_s27  ;;  %19 = sbr.rel (!%p17_p13) target bundleno = 4 (0x4), region = 100 }
 0x4dc   :  { %7013 = vsyncpa [#allocation3], 1 }
 0x4dd   :  { %7015 = vsyncpa [#allocation3 + $0x1], 1 }
 0x4de   :  { %7016 = vsyncpa [#allocation4], 1 }
 0x4df   :  { %7018 = vsyncpa [#allocation4 + $0x1], 1 }

</bundles_post_ra>
